<compile_context>
chip_gen: v6e
topology: v6e:2x2x1
jax: 0.10.0
libtpu: 0.0.40
codegen_flags: <defaults>
</compile_context>

<pallas_src>
import functools

import jax
import jax.numpy as jnp
from jax.experimental import pallas as pl
from jax.experimental.pallas import tpu as pltpu

K_SIZE = 4
STRIDE = 2
PAD = 2
BN_EPS = 1e-5
LRELU_SLOPE = 0.1  # matches nn.LeakyReLU(negative_slope=0.1) in the spec


# ----------------------------- Pallas kernel -------------------------------

def _gemm_bias_kernel(a_ref, b_ref, bias_ref, o_ref, *, activation):
    """One (M, tn) output tile: full-K contraction + fused bias/activation."""
    y = jnp.dot(a_ref[...], b_ref[...], preferred_element_type=jnp.float32)
    y = y + bias_ref[...]
    if activation == "relu":
        y = jnp.maximum(y, 0.0)
    o_ref[...] = y.astype(o_ref.dtype)


def gemm_bias(a, b, bias, activation="none", max_tn=1024):
    """act(a @ b + bias); a: (M, K), b: (K, N), bias: (N,) -> (M, N), all f32.

    Uses full-array blocks along M and K (legal when block == array extent),
    so no padding or slicing is materialized in HBM.  N is split into
    128-multiple tiles only when it exceeds `max_tn` (fc1 -> 2 parallel blocks).
    """
    M, K = a.shape
    K2, N = b.shape
    assert K == K2, (K, K2)
    bias2 = bias.reshape(1, N)

    tn = N
    if N > max_tn:
        for cand in (1024, 512, 256, 128):
            if N % cand == 0:
                tn = cand
                break

    return pl.pallas_call(
        functools.partial(_gemm_bias_kernel, activation=activation),
        out_shape=jax.ShapeDtypeStruct((M, N), jnp.float32),
        grid=(N // tn,),
        in_specs=[
            pl.BlockSpec((M, K), lambda j: (0, 0)),    # full M x full K
            pl.BlockSpec((K, tn), lambda j: (0, j)),   # full K x N-tile
            pl.BlockSpec((1, tn), lambda j: (0, j)),
        ],
        out_specs=pl.BlockSpec((M, tn), lambda j: (0, j)),
        compiler_params=pltpu.CompilerParams(
            dimension_semantics=("parallel",)),
    )(a, b, bias2)


# ------------------------------- glue (JAX) --------------------------------

def im2col_nhwc(x, k, stride, pad):
    """x: (N, H, W, C) -> patches (N*Ho*Wo, k*k*C) in (kh, kw, C) column order."""
    N, H, W, C = x.shape
    xp = jnp.pad(x, ((0, 0), (pad, pad), (pad, pad), (0, 0)))
    Ho = (H + 2 * pad - k) // stride + 1
    Wo = (W + 2 * pad - k) // stride + 1
    cols = []
    for i in range(k):
        for j in range(k):
            cols.append(xp[:, i:i + stride * Ho:stride, j:j + stride * Wo:stride, :])
    p = jnp.stack(cols, axis=3)                # (N, Ho, Wo, k*k, C)
    return p.reshape(N * Ho * Wo, k * k * C), Ho, Wo


def _out_spatial(h, w):
    for _ in range(4):
        h = (h + 2 * PAD - K_SIZE) // STRIDE + 1
        w = (w + 2 * PAD - K_SIZE) // STRIDE + 1
    return h, w


def init_params(key, in_channel, base_channel, in_dim_x, in_dim_y, out_dim):
    """PyTorch-layout parameters, init matching weights_init() in the spec."""
    keys = jax.random.split(key, 16)
    params = {}
    chans = [in_channel, base_channel, 2 * base_channel,
             4 * base_channel, 8 * base_channel]
    ki = 0
    for l in range(4):
        cin, cout = chans[l], chans[l + 1]
        params[f"conv{l+1}_w"] = 0.02 * jax.random.normal(
            keys[ki], (cout, cin, K_SIZE, K_SIZE), jnp.float32); ki += 1
        params[f"conv{l+1}_b"] = jnp.zeros((cout,), jnp.float32)
        params[f"bn{l+1}_gamma"] = 1.0 + 0.02 * jax.random.normal(
            keys[ki], (cout,), jnp.float32); ki += 1
        params[f"bn{l+1}_beta"] = jnp.zeros((cout,), jnp.float32)
    h, w = _out_spatial(in_dim_y, in_dim_x)
    cls_in = chans[-1] * h * w                      # == _get_classifier_in_dim()
    params["fc1_w"] = 0.02 * jax.random.normal(
        keys[ki], (2048, cls_in), jnp.float32); ki += 1
    params["fc1_b"] = jnp.zeros((2048,), jnp.float32)
    params["fc2_w"] = 0.02 * jax.random.normal(
        keys[ki], (out_dim, 2048), jnp.float32); ki += 1
    params["fc2_b"] = jnp.zeros((out_dim,), jnp.float32)
    return params


def prepare_forward_params(params, base_channel, in_dim_x, in_dim_y):
    """One-time weight permutations so the forward has zero layout shuffles."""
    prep = {}
    for l in range(4):
        w = params[f"conv{l+1}_w"]                  # (Cout, Cin, kH, kW)
        cout = w.shape[0]
        # (kh, kw, Cin, Cout) -> (kH*kW*Cin, Cout): matches im2col_nhwc columns.
        prep[f"conv{l+1}_w"] = w.transpose(2, 3, 1, 0).reshape(-1, cout)
        prep[f"conv{l+1}_b"] = params[f"conv{l+1}_b"]
        prep[f"bn{l+1}_gamma"] = params[f"bn{l+1}_gamma"]
        prep[f"bn{l+1}_beta"] = params[f"bn{l+1}_beta"]
    h, w_sp = _out_spatial(in_dim_y, in_dim_x)
    c_last = 8 * base_channel
    # fc1 columns are NCHW-flat (C, H, W) in torch; re-order once to (H, W, C)
    # so it consumes our NHWC flatten directly, then pre-transpose for the GEMM.
    fc1_w = params["fc1_w"].reshape(-1, c_last, h, w_sp)
    fc1_w = fc1_w.transpose(0, 2, 3, 1).reshape(fc1_w.shape[0], -1)
    prep["fc1_wT"] = fc1_w.T                        # (H*W*C, 2048)
    prep["fc1_b"] = params["fc1_b"]
    prep["fc2_wT"] = params["fc2_w"].T              # (2048, out_dim)
    prep["fc2_b"] = params["fc2_b"]
    return jax.tree_util.tree_map(jnp.asarray, prep)


@jax.jit
def deep_svdd_2d_forward(prep, x_nchw):
    """x_nchw: (N, C, H, W) float32 -> (N, out_dim)."""
    x = x_nchw.transpose(0, 2, 3, 1)                # NHWC once, up front
    N = x.shape[0]
    for l in range(4):
        w_mat = prep[f"conv{l+1}_w"]
        cout = w_mat.shape[1]
        patches, Ho, Wo = im2col_nhwc(x, K_SIZE, STRIDE, PAD)
        y = gemm_bias(patches, w_mat, prep[f"conv{l+1}_b"])   # (N*Ho*Wo, Cout)
        # BatchNorm2d, training-mode batch statistics over (N, H, W) per channel.
        # TODO(synk): eval-mode running-mean/var variant not modeled (fresh module is in train()).
        mean = jnp.mean(y, axis=0)
        var = jnp.var(y, axis=0)
        scale = prep[f"bn{l+1}_gamma"] * jax.lax.rsqrt(var + BN_EPS)
        shift = prep[f"bn{l+1}_beta"] - mean * scale
        y = y * scale + shift                        # XLA fuses affine + lrelu
        y = jnp.where(y > 0, y, LRELU_SLOPE * y)
        x = y.reshape(N, Ho, Wo, cout)               # stays NHWC
    feat = x.reshape(N, -1)                          # (H, W, C) order; fc1_wT matches
    h1 = gemm_bias(feat, prep["fc1_wT"], prep["fc1_b"], activation="relu")
    return gemm_bias(h1, prep["fc2_wT"], prep["fc2_b"])


if __name__ == "__main__":
    IN_DIM_X = 16
    IN_DIM_Y = 16
    IN_CHANNEL = 4
    BASE_CHANNEL = 16
    OUT_DIM = 8
    BATCH = 2

    key = jax.random.PRNGKey(0)
    pkey, xkey = jax.random.split(key)
    params = init_params(pkey, IN_CHANNEL, BASE_CHANNEL, IN_DIM_X, IN_DIM_Y, OUT_DIM)
    prep = prepare_forward_params(params, BASE_CHANNEL, IN_DIM_X, IN_DIM_Y)
    x = jax.random.normal(xkey, (BATCH, IN_CHANNEL, IN_DIM_Y, IN_DIM_X), jnp.float32)

    out = deep_svdd_2d_forward(prep, x)
    out = jax.block_until_ready(out)
    assert out.shape == (BATCH, OUT_DIM), out.shape
    assert bool(jnp.all(jnp.isfinite(out)))
    print("KERNEL_OK")
</pallas_src>

<mosaic_0001>
module attributes {stable_mosaic.version = 11 : i64} {
  func.func @_gemm_bias_kernel(%arg0: i32, %arg1: memref<162x64xf32, #tpu.memory_space<vmem>>, %arg2: memref<64x16xf32, #tpu.memory_space<vmem>>, %arg3: memref<1x16xf32, #tpu.memory_space<vmem>>, %arg4: memref<162x16xf32, #tpu.memory_space<vmem>>) attributes {dimension_semantics = [#tpu.dimension_semantics<parallel>], iteration_bounds = array<i64: 1>, scalar_prefetch = 0 : i64, scratch_operands = 0 : i64, tpu.core_type = #tpu.core_type<tc>, window_params = [{pipeline_mode = #tpu.pipeline_mode<synchronous>, transform_indices = @transform_0, window_bounds = array<i64: 162, 64>}, {transform_indices = @transform_1, window_bounds = array<i64: 64, 16>}, {transform_indices = @transform_2, window_bounds = array<i64: 1, 16>}, {transform_indices = @transform_3, window_bounds = array<i64: 162, 16>}]} {
    %c0 = arith.constant 0 : index
    %c0_0 = arith.constant 0 : index
    %0 = vector.load %arg1[%c0, %c0_0] : memref<162x64xf32, #tpu.memory_space<vmem>>, vector<162x64xf32>
    %c0_1 = arith.constant 0 : index
    %c0_2 = arith.constant 0 : index
    %1 = vector.load %arg2[%c0_1, %c0_2] : memref<64x16xf32, #tpu.memory_space<vmem>>, vector<64x16xf32>
    %cst = arith.constant dense<0.000000e+00> : vector<162x16xf32>
    %2 = tpu.matmul %0, %1, %cst {dimension_numbers = #tpu.dot_dimension_numbers<[1], [0], [0], [1], [0, 0, 1, 1], [], []>} : vector<162x64xf32>, vector<64x16xf32>, vector<162x16xf32> -> vector<162x16xf32>
    %c0_3 = arith.constant 0 : index
    %c0_4 = arith.constant 0 : index
    %3 = vector.load %arg3[%c0_3, %c0_4] : memref<1x16xf32, #tpu.memory_space<vmem>>, vector<1x16xf32>
    %4 = vector.broadcast %3 : vector<1x16xf32> to vector<162x16xf32>
    %5 = arith.addf %2, %4 : vector<162x16xf32>
    %c0_5 = arith.constant 0 : index
    %c0_6 = arith.constant 0 : index
    %6 = vector.load %arg4[%c0_5, %c0_6] : memref<162x16xf32, #tpu.memory_space<vmem>>, vector<162x16xf32>
    tpu.vector_store %arg4[%c0_5, %c0_6], %5 {strides = array<i32>} : memref<162x16xf32, #tpu.memory_space<vmem>>, vector<162x16xf32>,
    return
  }
  func.func @transform_0(%arg0: i32) -> (i32, i32) {
    %c0_i32 = arith.constant 0 : i32
    %c0_i32_0 = arith.constant 0 : i32
    %c0_i32_1 = arith.constant 0 : i32
    return %c0_i32, %c0_i32_0 : i32, i32
  }
  func.func @transform_1(%arg0: i32) -> (i32, i32) {
    %c0_i32 = arith.constant 0 : i32
    %c0_i32_0 = arith.constant 0 : i32
    return %c0_i32, %arg0 : i32, i32
  }
  func.func @transform_2(%arg0: i32) -> (i32, i32) {
    %c0_i32 = arith.constant 0 : i32
    %c0_i32_0 = arith.constant 0 : i32
    return %c0_i32, %arg0 : i32, i32
  }
  func.func @transform_3(%arg0: i32) -> (i32, i32) {
    %c0_i32 = arith.constant 0 : i32
    %c0_i32_0 = arith.constant 0 : i32
    return %c0_i32, %arg0 : i32, i32
  }
}

module attributes {stable_mosaic.version = 11 : i64} {
  func.func @_gemm_bias_kernel(%arg0: i32, %arg1: memref<50x256xf32, #tpu.memory_space<vmem>>, %arg2: memref<256x32xf32, #tpu.memory_space<vmem>>, %arg3: memref<1x32xf32, #tpu.memory_space<vmem>>, %arg4: memref<50x32xf32, #tpu.memory_space<vmem>>) attributes {dimension_semantics = [#tpu.dimension_semantics<parallel>], iteration_bounds = array<i64: 1>, scalar_prefetch = 0 : i64, scratch_operands = 0 : i64, tpu.core_type = #tpu.core_type<tc>, window_params = [{pipeline_mode = #tpu.pipeline_mode<synchronous>, transform_indices = @transform_0, window_bounds = array<i64: 50, 256>}, {transform_indices = @transform_1, window_bounds = array<i64: 256, 32>}, {transform_indices = @transform_2, window_bounds = array<i64: 1, 32>}, {transform_indices = @transform_3, window_bounds = array<i64: 50, 32>}]} {
    %c0 = arith.constant 0 : index
    %c0_0 = arith.constant 0 : index
    %0 = vector.load %arg1[%c0, %c0_0] : memref<50x256xf32, #tpu.memory_space<vmem>>, vector<50x256xf32>
    %c0_1 = arith.constant 0 : index
    %c0_2 = arith.constant 0 : index
    %1 = vector.load %arg2[%c0_1, %c0_2] : memref<256x32xf32, #tpu.memory_space<vmem>>, vector<256x32xf32>
    %cst = arith.constant dense<0.000000e+00> : vector<50x32xf32>
    %2 = tpu.matmul %0, %1, %cst {dimension_numbers = #tpu.dot_dimension_numbers<[1], [0], [0], [1], [0, 0, 1, 1], [], []>} : vector<50x256xf32>, vector<256x32xf32>, vector<50x32xf32> -> vector<50x32xf32>
    %c0_3 = arith.constant 0 : index
    %c0_4 = arith.constant 0 : index
    %3 = vector.load %arg3[%c0_3, %c0_4] : memref<1x32xf32, #tpu.memory_space<vmem>>, vector<1x32xf32>
    %4 = vector.broadcast %3 : vector<1x32xf32> to vector<50x32xf32>
    %5 = arith.addf %2, %4 : vector<50x32xf32>
    %c0_5 = arith.constant 0 : index
    %c0_6 = arith.constant 0 : index
    %6 = vector.load %arg4[%c0_5, %c0_6] : memref<50x32xf32, #tpu.memory_space<vmem>>, vector<50x32xf32>
    tpu.vector_store %arg4[%c0_5, %c0_6], %5 {strides = array<i32>} : memref<50x32xf32, #tpu.memory_space<vmem>>, vector<50x32xf32>,
    return
  }
  func.func @transform_0(%arg0: i32) -> (i32, i32) {
    %c0_i32 = arith.constant 0 : i32
    %c0_i32_0 = arith.constant 0 : i32
    %c0_i32_1 = arith.constant 0 : i32
    return %c0_i32, %c0_i32_0 : i32, i32
  }
  func.func @transform_1(%arg0: i32) -> (i32, i32) {
    %c0_i32 = arith.constant 0 : i32
    %c0_i32_0 = arith.constant 0 : i32
    return %c0_i32, %arg0 : i32, i32
  }
  func.func @transform_2(%arg0: i32) -> (i32, i32) {
    %c0_i32 = arith.constant 0 : i32
    %c0_i32_0 = arith.constant 0 : i32
    return %c0_i32, %arg0 : i32, i32
  }
  func.func @transform_3(%arg0: i32) -> (i32, i32) {
    %c0_i32 = arith.constant 0 : i32
    %c0_i32_0 = arith.constant 0 : i32
    return %c0_i32, %arg0 : i32, i32
  }
}

module attributes {stable_mosaic.version = 11 : i64} {
  func.func @_gemm_bias_kernel(%arg0: i32, %arg1: memref<18x512xf32, #tpu.memory_space<vmem>>, %arg2: memref<512x64xf32, #tpu.memory_space<vmem>>, %arg3: memref<1x64xf32, #tpu.memory_space<vmem>>, %arg4: memref<18x64xf32, #tpu.memory_space<vmem>>) attributes {dimension_semantics = [#tpu.dimension_semantics<parallel>], iteration_bounds = array<i64: 1>, scalar_prefetch = 0 : i64, scratch_operands = 0 : i64, tpu.core_type = #tpu.core_type<tc>, window_params = [{pipeline_mode = #tpu.pipeline_mode<synchronous>, transform_indices = @transform_0, window_bounds = array<i64: 18, 512>}, {transform_indices = @transform_1, window_bounds = array<i64: 512, 64>}, {transform_indices = @transform_2, window_bounds = array<i64: 1, 64>}, {transform_indices = @transform_3, window_bounds = array<i64: 18, 64>}]} {
    %c0 = arith.constant 0 : index
    %c0_0 = arith.constant 0 : index
    %0 = vector.load %arg1[%c0, %c0_0] : memref<18x512xf32, #tpu.memory_space<vmem>>, vector<18x512xf32>
    %c0_1 = arith.constant 0 : index
    %c0_2 = arith.constant 0 : index
    %1 = vector.load %arg2[%c0_1, %c0_2] : memref<512x64xf32, #tpu.memory_space<vmem>>, vector<512x64xf32>
    %cst = arith.constant dense<0.000000e+00> : vector<18x64xf32>
    %2 = tpu.matmul %0, %1, %cst {dimension_numbers = #tpu.dot_dimension_numbers<[1], [0], [0], [1], [0, 0, 1, 1], [], []>} : vector<18x512xf32>, vector<512x64xf32>, vector<18x64xf32> -> vector<18x64xf32>
    %c0_3 = arith.constant 0 : index
    %c0_4 = arith.constant 0 : index
    %3 = vector.load %arg3[%c0_3, %c0_4] : memref<1x64xf32, #tpu.memory_space<vmem>>, vector<1x64xf32>
    %4 = vector.broadcast %3 : vector<1x64xf32> to vector<18x64xf32>
    %5 = arith.addf %2, %4 : vector<18x64xf32>
    %c0_5 = arith.constant 0 : index
    %c0_6 = arith.constant 0 : index
    %6 = vector.load %arg4[%c0_5, %c0_6] : memref<18x64xf32, #tpu.memory_space<vmem>>, vector<18x64xf32>
    tpu.vector_store %arg4[%c0_5, %c0_6], %5 {strides = array<i32>} : memref<18x64xf32, #tpu.memory_space<vmem>>, vector<18x64xf32>,
    return
  }
  func.func @transform_0(%arg0: i32) -> (i32, i32) {
    %c0_i32 = arith.constant 0 : i32
    %c0_i32_0 = arith.constant 0 : i32
    %c0_i32_1 = arith.constant 0 : i32
    return %c0_i32, %c0_i32_0 : i32, i32
  }
  func.func @transform_1(%arg0: i32) -> (i32, i32) {
    %c0_i32 = arith.constant 0 : i32
    %c0_i32_0 = arith.constant 0 : i32
    return %c0_i32, %arg0 : i32, i32
  }
  func.func @transform_2(%arg0: i32) -> (i32, i32) {
    %c0_i32 = arith.constant 0 : i32
    %c0_i32_0 = arith.constant 0 : i32
    return %c0_i32, %arg0 : i32, i32
  }
  func.func @transform_3(%arg0: i32) -> (i32, i32) {
    %c0_i32 = arith.constant 0 : i32
    %c0_i32_0 = arith.constant 0 : i32
    return %c0_i32, %arg0 : i32, i32
  }
}

module attributes {stable_mosaic.version = 11 : i64} {
  func.func @_gemm_bias_kernel(%arg0: i32, %arg1: memref<2x2048xf32, #tpu.memory_space<vmem>>, %arg2: memref<2048x8xf32, #tpu.memory_space<vmem>>, %arg3: memref<1x8xf32, #tpu.memory_space<vmem>>, %arg4: memref<2x8xf32, #tpu.memory_space<vmem>>) attributes {dimension_semantics = [#tpu.dimension_semantics<parallel>], iteration_bounds = array<i64: 1>, scalar_prefetch = 0 : i64, scratch_operands = 0 : i64, tpu.core_type = #tpu.core_type<tc>, window_params = [{pipeline_mode = #tpu.pipeline_mode<synchronous>, transform_indices = @transform_0, window_bounds = array<i64: 2, 2048>}, {transform_indices = @transform_1, window_bounds = array<i64: 2048, 8>}, {transform_indices = @transform_2, window_bounds = array<i64: 1, 8>}, {transform_indices = @transform_3, window_bounds = array<i64: 2, 8>}]} {
    %c0 = arith.constant 0 : index
    %c0_0 = arith.constant 0 : index
    %0 = vector.load %arg1[%c0, %c0_0] : memref<2x2048xf32, #tpu.memory_space<vmem>>, vector<2x2048xf32>
    %c0_1 = arith.constant 0 : index
    %c0_2 = arith.constant 0 : index
    %1 = vector.load %arg2[%c0_1, %c0_2] : memref<2048x8xf32, #tpu.memory_space<vmem>>, vector<2048x8xf32>
    %cst = arith.constant dense<0.000000e+00> : vector<2x8xf32>
    %2 = tpu.matmul %0, %1, %cst {dimension_numbers = #tpu.dot_dimension_numbers<[1], [0], [0], [1], [0, 0, 1, 1], [], []>} : vector<2x2048xf32>, vector<2048x8xf32>, vector<2x8xf32> -> vector<2x8xf32>
    %c0_3 = arith.constant 0 : index
    %c0_4 = arith.constant 0 : index
    %3 = vector.load %arg3[%c0_3, %c0_4] : memref<1x8xf32, #tpu.memory_space<vmem>>, vector<1x8xf32>
    %4 = vector.broadcast %3 : vector<1x8xf32> to vector<2x8xf32>
    %5 = arith.addf %2, %4 : vector<2x8xf32>
    %c0_5 = arith.constant 0 : index
    %c0_6 = arith.constant 0 : index
    %6 = vector.load %arg4[%c0_5, %c0_6] : memref<2x8xf32, #tpu.memory_space<vmem>>, vector<2x8xf32>
    tpu.vector_store %arg4[%c0_5, %c0_6], %5 {strides = array<i32>} : memref<2x8xf32, #tpu.memory_space<vmem>>, vector<2x8xf32>,
    return
  }
  func.func @transform_0(%arg0: i32) -> (i32, i32) {
    %c0_i32 = arith.constant 0 : i32
    %c0_i32_0 = arith.constant 0 : i32
    %c0_i32_1 = arith.constant 0 : i32
    return %c0_i32, %c0_i32_0 : i32, i32
  }
  func.func @transform_1(%arg0: i32) -> (i32, i32) {
    %c0_i32 = arith.constant 0 : i32
    %c0_i32_0 = arith.constant 0 : i32
    return %c0_i32, %arg0 : i32, i32
  }
  func.func @transform_2(%arg0: i32) -> (i32, i32) {
    %c0_i32 = arith.constant 0 : i32
    %c0_i32_0 = arith.constant 0 : i32
    return %c0_i32, %arg0 : i32, i32
  }
  func.func @transform_3(%arg0: i32) -> (i32, i32) {
    %c0_i32 = arith.constant 0 : i32
    %c0_i32_0 = arith.constant 0 : i32
    return %c0_i32, %arg0 : i32, i32
  }
}

module attributes {stable_mosaic.version = 11 : i64} {
  func.func @_gemm_bias_kernel(%arg0: i32, %arg1: memref<8x1024xf32, #tpu.memory_space<vmem>>, %arg2: memref<1024x128xf32, #tpu.memory_space<vmem>>, %arg3: memref<1x128xf32, #tpu.memory_space<vmem>>, %arg4: memref<8x128xf32, #tpu.memory_space<vmem>>) attributes {dimension_semantics = [#tpu.dimension_semantics<parallel>], iteration_bounds = array<i64: 1>, scalar_prefetch = 0 : i64, scratch_operands = 0 : i64, tpu.core_type = #tpu.core_type<tc>, window_params = [{pipeline_mode = #tpu.pipeline_mode<synchronous>, transform_indices = @transform_0, window_bounds = array<i64: 8, 1024>}, {transform_indices = @transform_1, window_bounds = array<i64: 1024, 128>}, {transform_indices = @transform_2, window_bounds = array<i64: 1, 128>}, {transform_indices = @transform_3, window_bounds = array<i64: 8, 128>}]} {
    %c0 = arith.constant 0 : index
    %c0_0 = arith.constant 0 : index
    %0 = vector.load %arg1[%c0, %c0_0] : memref<8x1024xf32, #tpu.memory_space<vmem>>, vector<8x1024xf32>
    %c0_1 = arith.constant 0 : index
    %c0_2 = arith.constant 0 : index
    %1 = vector.load %arg2[%c0_1, %c0_2] : memref<1024x128xf32, #tpu.memory_space<vmem>>, vector<1024x128xf32>
    %cst = arith.constant dense<0.000000e+00> : vector<8x128xf32>
    %2 = tpu.matmul %0, %1, %cst {dimension_numbers = #tpu.dot_dimension_numbers<[1], [0], [0], [1], [0, 0, 1, 1], [], []>} : vector<8x1024xf32>, vector<1024x128xf32>, vector<8x128xf32> -> vector<8x128xf32>
    %c0_3 = arith.constant 0 : index
    %c0_4 = arith.constant 0 : index
    %3 = vector.load %arg3[%c0_3, %c0_4] : memref<1x128xf32, #tpu.memory_space<vmem>>, vector<1x128xf32>
    %4 = vector.broadcast %3 : vector<1x128xf32> to vector<8x128xf32>
    %5 = arith.addf %2, %4 : vector<8x128xf32>
    %c0_5 = arith.constant 0 : index
    %c0_6 = arith.constant 0 : index
    %6 = vector.load %arg4[%c0_5, %c0_6] : memref<8x128xf32, #tpu.memory_space<vmem>>, vector<8x128xf32>
    tpu.vector_store %arg4[%c0_5, %c0_6], %5 {strides = array<i32>} : memref<8x128xf32, #tpu.memory_space<vmem>>, vector<8x128xf32>,
    return
  }
  func.func @transform_0(%arg0: i32) -> (i32, i32) {
    %c0_i32 = arith.constant 0 : i32
    %c0_i32_0 = arith.constant 0 : i32
    %c0_i32_1 = arith.constant 0 : i32
    return %c0_i32, %c0_i32_0 : i32, i32
  }
  func.func @transform_1(%arg0: i32) -> (i32, i32) {
    %c0_i32 = arith.constant 0 : i32
    %c0_i32_0 = arith.constant 0 : i32
    return %c0_i32, %arg0 : i32, i32
  }
  func.func @transform_2(%arg0: i32) -> (i32, i32) {
    %c0_i32 = arith.constant 0 : i32
    %c0_i32_0 = arith.constant 0 : i32
    return %c0_i32, %arg0 : i32, i32
  }
  func.func @transform_3(%arg0: i32) -> (i32, i32) {
    %c0_i32 = arith.constant 0 : i32
    %c0_i32_0 = arith.constant 0 : i32
    return %c0_i32, %arg0 : i32, i32
  }
}

module attributes {stable_mosaic.version = 11 : i64} {
  func.func @_gemm_bias_kernel(%arg0: i32, %arg1: memref<2x512xf32, #tpu.memory_space<vmem>>, %arg2: memref<512x1024xf32, #tpu.memory_space<vmem>>, %arg3: memref<1x1024xf32, #tpu.memory_space<vmem>>, %arg4: memref<2x1024xf32, #tpu.memory_space<vmem>>) attributes {dimension_semantics = [#tpu.dimension_semantics<parallel>], iteration_bounds = array<i64: 2>, scalar_prefetch = 0 : i64, scratch_operands = 0 : i64, tpu.core_type = #tpu.core_type<tc>, window_params = [{pipeline_mode = #tpu.pipeline_mode<synchronous>, transform_indices = @transform_0, window_bounds = array<i64: 2, 512>}, {transform_indices = @transform_1, window_bounds = array<i64: 512, 1024>}, {transform_indices = @transform_2, window_bounds = array<i64: 1, 1024>}, {transform_indices = @transform_3, window_bounds = array<i64: 2, 1024>}]} {
    %c0 = arith.constant 0 : index
    %c0_0 = arith.constant 0 : index
    %0 = vector.load %arg1[%c0, %c0_0] : memref<2x512xf32, #tpu.memory_space<vmem>>, vector<2x512xf32>
    %c0_1 = arith.constant 0 : index
    %c0_2 = arith.constant 0 : index
    %1 = vector.load %arg2[%c0_1, %c0_2] : memref<512x1024xf32, #tpu.memory_space<vmem>>, vector<512x1024xf32>
    %cst = arith.constant dense<0.000000e+00> : vector<2x1024xf32>
    %2 = tpu.matmul %0, %1, %cst {dimension_numbers = #tpu.dot_dimension_numbers<[1], [0], [0], [1], [0, 0, 1, 1], [], []>} : vector<2x512xf32>, vector<512x1024xf32>, vector<2x1024xf32> -> vector<2x1024xf32>
    %c0_3 = arith.constant 0 : index
    %c0_4 = arith.constant 0 : index
    %3 = vector.load %arg3[%c0_3, %c0_4] : memref<1x1024xf32, #tpu.memory_space<vmem>>, vector<1x1024xf32>
    %4 = vector.broadcast %3 : vector<1x1024xf32> to vector<2x1024xf32>
    %5 = arith.addf %2, %4 : vector<2x1024xf32>
    %cst_5 = arith.constant 0.000000e+00 : f32
    %6 = vector.broadcast %cst_5 : f32 to vector<2x1024xf32>
    %7 = arith.maximumf %5, %6 : vector<2x1024xf32>
    %c0_6 = arith.constant 0 : index
    %c0_7 = arith.constant 0 : index
    %8 = vector.load %arg4[%c0_6, %c0_7] : memref<2x1024xf32, #tpu.memory_space<vmem>>, vector<2x1024xf32>
    tpu.vector_store %arg4[%c0_6, %c0_7], %7 {strides = array<i32>} : memref<2x1024xf32, #tpu.memory_space<vmem>>, vector<2x1024xf32>,
    return
  }
  func.func @transform_0(%arg0: i32) -> (i32, i32) {
    %c0_i32 = arith.constant 0 : i32
    %c0_i32_0 = arith.constant 0 : i32
    %c0_i32_1 = arith.constant 0 : i32
    return %c0_i32, %c0_i32_0 : i32, i32
  }
  func.func @transform_1(%arg0: i32) -> (i32, i32) {
    %c0_i32 = arith.constant 0 : i32
    %c0_i32_0 = arith.constant 0 : i32
    return %c0_i32, %arg0 : i32, i32
  }
  func.func @transform_2(%arg0: i32) -> (i32, i32) {
    %c0_i32 = arith.constant 0 : i32
    %c0_i32_0 = arith.constant 0 : i32
    return %c0_i32, %arg0 : i32, i32
  }
  func.func @transform_3(%arg0: i32) -> (i32, i32) {
    %c0_i32 = arith.constant 0 : i32
    %c0_i32_0 = arith.constant 0 : i32
    return %c0_i32, %arg0 : i32, i32
  }
}

</mosaic_0001>

<bundles_post_ra>
// kernel: deep_svdd_2d_forward.6
= control target key start
LH: loop header
LB: loop body
LE: loop exit
PB: predicated region body
PF: predicated region fallthrough
CT: control target
= control target key end

     0   :  { %v459_v0 = vmov 0.0   ;;  %vm50_vm0 = vcmask 523264   ;;  %vm460_vm1 = vmmov 0   ;;  %vm284_vm2 = vcmask 130048   ;;  %s756_s1 = inlined_call_operand.vmem [shape: f32[64,16], index: 1, kind: input, shape index: {}]   ;;  %s757_s0 = inlined_call_operand.vmem [shape: f32[162,64], index: 0, kind: input, shape index: {}]   ;;  %s758_s2 = inlined_call_operand.vmem [shape: f32[1,16], index: 2, kind: input, shape index: {}]   ;;  %s759_s3 = inlined_call_operand.vmem [shape: f32[162,16], index: 3, kind: output, shape index: {}]  }
   0x1   :  { %362 = vmatprep.subr.mxu0 %v459_v0  ;;  %v42_v1 = vld [vmem:[%s756_s1 + $0x38] sm:$0xff]  ;;  %441 = vmatprep.subr.mxu1 %v459_v0  ;;  %v41_v2 = vld [vmem:[%s756_s1 + $0x30] sm:$0xff]  ;;  %v40_v3 = vld [vmem:[%s756_s1 + $0x28] sm:$0xff]  ;;  %vm305_vm3 = vcmask 123904  }
   0x2   :  { %363 = vmatpush3.msra.mxu0 %v42_v1  ;;  %449 = vmatpush3.msra.mxu1 %v42_v1  ;;  %v39_v4 = vld [vmem:[%s756_s1 + $0x20] sm:$0xff]  ;;  %v38_v5 = vld [vmem:[%s756_s1 + $0x18] sm:$0xff]  ;;  %v37_v6 = vld [vmem:[%s756_s1 + $0x10] sm:$0xff] }
   0x3   :  { %364 = vmatprep.subr.mxu0 %v459_v0  ;;  %442 = vmatprep.subr.mxu1 %v459_v0  ;;  %v36_v7 = vld [vmem:[%s756_s1 + $0x8] sm:$0xff]  ;;  %v35_v8 = vld [vmem:[%s756_s1] sm:$0xff]  ;;  %v25_v10 = vld [vmem:[%s757_s0 + $0x58] sm:$0xff] }
   0x4   :  { %365 = vmatpush3.msra.mxu0 %v41_v2  ;;  %450 = vmatpush3.msra.mxu1 %v41_v2  ;;  %v14_v9 = vld [vmem:[%s757_s0] sm:$0xff]  ;;  %v15_v11 = vld [vmem:[%s757_s0 + $0x8] sm:$0xff]  ;;  %v16_v13 = vld [vmem:[%s757_s0 + $0x10] sm:$0xff] }
   0x5   :  { %366 = vmatprep.subr.mxu0 %v459_v0  ;;  %443 = vmatprep.subr.mxu1 %v459_v0  ;;  %v26_v12 = vld [vmem:[%s757_s0 + $0x60] sm:$0xff]  ;;  %v27_v14 = vld [vmem:[%s757_s0 + $0x68] sm:$0xff]  ;;  %v17_v15 = vld [vmem:[%s757_s0 + $0x18] sm:$0xff] }
   0x6   :  { %367 = vmatpush3.msra.mxu0 %v40_v3  ;;  %451 = vmatpush3.msra.mxu1 %v40_v3  ;;  %v28_v16 = vld [vmem:[%s757_s0 + $0x70] sm:$0xff]  ;;  %v18_v17 = vld [vmem:[%s757_s0 + $0x20] sm:$0xff]  ;;  %v29_v18 = vld [vmem:[%s757_s0 + $0x78] sm:$0xff] }
   0x7   :  { %368 = vmatprep.subr.mxu0 %v459_v0  ;;  %444 = vmatprep.subr.mxu1 %v459_v0  ;;  %v19_v19 = vld [vmem:[%s757_s0 + $0x28] sm:$0xff]  ;;  %v30_v20 = vld [vmem:[%s757_s0 + $0x80] sm:$0xff]  ;;  %v20_v21 = vld [vmem:[%s757_s0 + $0x30] sm:$0xff] }
   0x8   :  { %369 = vmatpush3.msra.mxu0 %v39_v4  ;;  %452 = vmatpush3.msra.mxu1 %v39_v4  ;;  %v31_v22 = vld [vmem:[%s757_s0 + $0x88] sm:$0xff]  ;;  %v21_v23 = vld [vmem:[%s757_s0 + $0x38] sm:$0xff]  ;;  %v32_v24 = vld [vmem:[%s757_s0 + $0x90] sm:$0xff] }
   0x9   :  { %370 = vmatprep.subr.mxu0 %v459_v0  ;;  %445 = vmatprep.subr.mxu1 %v459_v0  ;;  %v22_v25 = vld [vmem:[%s757_s0 + $0x40] sm:$0xff]  ;;  %v33_v26 = vld [vmem:[%s757_s0 + $0x98] sm:$0xff]  ;;  %v23_v27 = vld [vmem:[%s757_s0 + $0x48] sm:$0xff] }
   0xa   :  { %371 = vmatpush3.msra.mxu0 %v38_v5  ;;  %453 = vmatpush3.msra.mxu1 %v38_v5  ;;  %v34_v28 = vld [vmem:[%s757_s0 + $0xa0] sm:$0x3]  ;;  %v24_v29 = vld [vmem:[%s757_s0 + $0x50] sm:$0xff] }
   0xb   :  { %372 = vmatprep.subr.mxu0 %v459_v0  ;;  %446 = vmatprep.subr.mxu1 %v459_v0  ;;  %v650_v30 = vld [vmem:[%s758_s2] ss:$0 sm:$0xff] }
   0xc   :  { %373 = vmatpush3.msra.mxu0 %v37_v6  ;;  %454 = vmatpush3.msra.mxu1 %v37_v6 }
   0xd   :  { %374 = vmatprep.subr.mxu0 %v459_v0  ;;  %447 = vmatprep.subr.mxu1 %v459_v0 }
   0xe   :  { %375 = vmatpush3.msra.mxu0 %v36_v7  ;;  %455 = vmatpush3.msra.mxu1 %v36_v7 }
   0xf   :  { %376 = vmatprep.subr.mxu0 %v459_v0  ;;  %378 = vmatprep.mubr.msk.f32.mxu0 %vm460_vm1, %v459_v0 }
  0x10   :  { %377 = vmatpush3.msra.mxu0 %v35_v8  ;;  %448 = vmatprep.subr.mxu1 %v459_v0 }
  0x11   :  { %379 = vmatmul.mubr.msk.f32.vlgmr.msra.gmra.mxu0 %vm50_vm0, %v14_v9  ;;  %456 = vmatpush3.msra.mxu1 %v35_v8 }
  0x12   :  { %411 = vmatprep.mubr.msk.f32.mxu1 %vm460_vm1, %v459_v0  ;;  %381 = vmatprep.mubr.msk.f32.mxu0 %vm460_vm1, %v459_v0 }
  0x13   :  { %412 = vmatmul.mubr.msk.f32.vlgmr.msra.gmra.mxu1 %vm50_vm0, %v25_v10 }
  0x14   :  { %414 = vmatprep.mubr.msk.f32.mxu1 %vm460_vm1, %v459_v0 }
  0x15   :  { %382 = vmatmul.mubr.msk.f32.gmra.mxu0 %vm50_vm0, %v15_v11 }
  0x16   :  { %384 = vmatprep.mubr.msk.f32.mxu0 %vm460_vm1, %v459_v0 }
  0x17   :  { %415 = vmatmul.mubr.msk.f32.gmra.mxu1 %vm50_vm0, %v26_v12 }
  0x18   :  { %417 = vmatprep.mubr.msk.f32.mxu1 %vm460_vm1, %v459_v0 }
  0x19   :  { %385 = vmatmul.mubr.msk.f32.gmra.mxu0 %vm50_vm0, %v16_v13 }
  0x1a   :  { %387 = vmatprep.mubr.msk.f32.mxu0 %vm460_vm1, %v459_v0 }
  0x1b   :  { %418 = vmatmul.mubr.msk.f32.gmra.mxu1 %vm50_vm0, %v27_v14 }
  0x1c   :  { %420 = vmatprep.mubr.msk.f32.mxu1 %vm460_vm1, %v459_v0 }
  0x1d   :  { %388 = vmatmul.mubr.msk.f32.gmra.mxu0 %vm50_vm0, %v17_v15 }
  0x1e   :  { %390 = vmatprep.mubr.msk.f32.mxu0 %vm460_vm1, %v459_v0 }
  0x1f   :  { %421 = vmatmul.mubr.msk.f32.gmra.mxu1 %vm50_vm0, %v28_v16 }
  0x20   :  { %423 = vmatprep.mubr.msk.f32.mxu1 %vm460_vm1, %v459_v0 }
  0x21   :  { %391 = vmatmul.mubr.msk.f32.gmra.mxu0 %vm50_vm0, %v18_v17 }
  0x22   :  { %393 = vmatprep.mubr.msk.f32.mxu0 %vm460_vm1, %v459_v0 }
  0x23   :  { %424 = vmatmul.mubr.msk.f32.gmra.mxu1 %vm50_vm0, %v29_v18 }
  0x24   :  { %426 = vmatprep.mubr.msk.f32.mxu1 %vm460_vm1, %v459_v0 }
  0x25   :  { %394 = vmatmul.mubr.msk.f32.gmra.mxu0 %vm50_vm0, %v19_v19 }
  0x26   :  { %396 = vmatprep.mubr.msk.f32.mxu0 %vm460_vm1, %v459_v0 }
  0x27   :  { %427 = vmatmul.mubr.msk.f32.gmra.mxu1 %vm50_vm0, %v30_v20 }
  0x28   :  { %429 = vmatprep.mubr.msk.f32.mxu1 %vm460_vm1, %v459_v0 }
  0x29   :  { %397 = vmatmul.mubr.msk.f32.gmra.mxu0 %vm50_vm0, %v20_v21 }
  0x2a   :  { %399 = vmatprep.mubr.msk.f32.mxu0 %vm460_vm1, %v459_v0 }
  0x2b   :  { %430 = vmatmul.mubr.msk.f32.gmra.mxu1 %vm50_vm0, %v31_v22 }
  0x2c   :  { %432 = vmatprep.mubr.msk.f32.mxu1 %vm460_vm1, %v459_v0 }
  0x2d   :  { %400 = vmatmul.mubr.msk.f32.gmra.mxu0 %vm50_vm0, %v21_v23 }
  0x2e   :  { %402 = vmatprep.mubr.msk.f32.mxu0 %vm460_vm1, %v459_v0 }
  0x2f   :  { %433 = vmatmul.mubr.msk.f32.gmra.mxu1 %vm50_vm0, %v32_v24 }
  0x30   :  { %435 = vmatprep.mubr.msk.f32.mxu1 %vm460_vm1, %v459_v0 }
  0x31   :  { %403 = vmatmul.mubr.msk.f32.gmra.mxu0 %vm50_vm0, %v22_v25 }
  0x32   :  { %405 = vmatprep.mubr.msk.f32.mxu0 %vm460_vm1, %v459_v0 }
  0x33   :  { %436 = vmatmul.mubr.msk.f32.gmra.mxu1 %vm50_vm0, %v33_v26 }
  0x34   :  { %438 = vmatprep.mubr.msk.f32.mxu1 %vm460_vm1, %v459_v0 }
  0x35   :  { %406 = vmatmul.mubr.msk.f32.gmra.mxu0 %vm50_vm0, %v23_v27 }
  0x36   :  { %408 = vmatprep.mubr.msk.f32.mxu0 %vm460_vm1, %v459_v0 }
  0x37   :  { %439 = vmatmul.mubr.msk.f32.gmra.mxu1 %vm50_vm0, %v34_v28 }
  0x39   :  { %409 = vmatmul.mubr.msk.f32.gmra.mxu0 %vm50_vm0, %v24_v29 }
  0xd1   :  { %v180_v31 = vpop.f32.mrf.mxu0 }
  0xd2   :  { %v181_v32 = vadd.f32 %v650_v30, %v180_v31 }
  0xd3   :  { %v380_v33 = vpop.f32.mrf.mxu0  ;;  %v235_v34 = vpop.f32.mrf.mxu1 }
  0xd4   :  { %285 = vst.msk [vmem:[%s759_s3] sm:$0xff] %vm284_vm2, %v181_v32  ;;  %v236_v35 = vadd.f32 %v650_v30, %v235_v34 }
  0xd5   :  { %v185_v36 = vpop.f32.mrf.mxu0  ;;  %v413_v37 = vpop.f32.mrf.mxu1 }
  0xd6   :  { %296 = vst.msk [vmem:[%s759_s3 + $0x58] sm:$0xff] %vm284_vm2, %v236_v35  ;;  %v186_v38 = vadd.f32 %v650_v30, %v185_v36 }
  0xd7   :  { %v383_v39 = vpop.f32.mrf.mxu0  ;;  %v240_v40 = vpop.f32.mrf.mxu1 }
  0xd8   :  { %286 = vst.msk [vmem:[%s759_s3 + $0x8] sm:$0xff] %vm284_vm2, %v186_v38  ;;  %v241_v41 = vadd.f32 %v650_v30, %v240_v40 }
  0xd9   :  { %v190_v42 = vpop.f32.mrf.mxu0  ;;  %v416_v43 = vpop.f32.mrf.mxu1 }
  0xda   :  { %297 = vst.msk [vmem:[%s759_s3 + $0x60] sm:$0xff] %vm284_vm2, %v241_v41  ;;  %v191_v44 = vadd.f32 %v650_v30, %v190_v42 }
  0xdb   :  { %v386_v45 = vpop.f32.mrf.mxu0  ;;  %v245_v46 = vpop.f32.mrf.mxu1 }
  0xdc   :  { %287 = vst.msk [vmem:[%s759_s3 + $0x10] sm:$0xff] %vm284_vm2, %v191_v44  ;;  %v246_v47 = vadd.f32 %v650_v30, %v245_v46 }
  0xdd   :  { %v195_v48 = vpop.f32.mrf.mxu0  ;;  %v419_v49 = vpop.f32.mrf.mxu1 }
  0xde   :  { %298 = vst.msk [vmem:[%s759_s3 + $0x68] sm:$0xff] %vm284_vm2, %v246_v47  ;;  %v196_v50 = vadd.f32 %v650_v30, %v195_v48 }
  0xdf   :  { %v389_v51 = vpop.f32.mrf.mxu0  ;;  %v250_v52 = vpop.f32.mrf.mxu1 }
  0xe0   :  { %288 = vst.msk [vmem:[%s759_s3 + $0x18] sm:$0xff] %vm284_vm2, %v196_v50  ;;  %v251_v53 = vadd.f32 %v650_v30, %v250_v52 }
  0xe1   :  { %v200_v54 = vpop.f32.mrf.mxu0  ;;  %v422_v55 = vpop.f32.mrf.mxu1 }
  0xe2   :  { %299 = vst.msk [vmem:[%s759_s3 + $0x70] sm:$0xff] %vm284_vm2, %v251_v53  ;;  %v201_v56 = vadd.f32 %v650_v30, %v200_v54 }
  0xe3   :  { %v392_v57 = vpop.f32.mrf.mxu0  ;;  %v255_v58 = vpop.f32.mrf.mxu1 }
  0xe4   :  { %289 = vst.msk [vmem:[%s759_s3 + $0x20] sm:$0xff] %vm284_vm2, %v201_v56  ;;  %v256_v59 = vadd.f32 %v650_v30, %v255_v58 }
  0xe5   :  { %v205_v60 = vpop.f32.mrf.mxu0  ;;  %v425_v61 = vpop.f32.mrf.mxu1 }
  0xe6   :  { %300 = vst.msk [vmem:[%s759_s3 + $0x78] sm:$0xff] %vm284_vm2, %v256_v59  ;;  %v206_v62 = vadd.f32 %v650_v30, %v205_v60 }
  0xe7   :  { %v395_v63 = vpop.f32.mrf.mxu0  ;;  %v260_v0 = vpop.f32.mrf.mxu1 }
  0xe8   :  { %290 = vst.msk [vmem:[%s759_s3 + $0x28] sm:$0xff] %vm284_vm2, %v206_v62  ;;  %v261_v1 = vadd.f32 %v650_v30, %v260_v0 }
  0xe9   :  { %v210_v2 = vpop.f32.mrf.mxu0  ;;  %v428_v3 = vpop.f32.mrf.mxu1 }
  0xea   :  { %301 = vst.msk [vmem:[%s759_s3 + $0x80] sm:$0xff] %vm284_vm2, %v261_v1  ;;  %v211_v4 = vadd.f32 %v650_v30, %v210_v2 }
  0xeb   :  { %v398_v5 = vpop.f32.mrf.mxu0  ;;  %v265_v6 = vpop.f32.mrf.mxu1 }
  0xec   :  { %291 = vst.msk [vmem:[%s759_s3 + $0x30] sm:$0xff] %vm284_vm2, %v211_v4  ;;  %v266_v7 = vadd.f32 %v650_v30, %v265_v6 }
  0xed   :  { %v215_v8 = vpop.f32.mrf.mxu0  ;;  %v431_v9 = vpop.f32.mrf.mxu1 }
  0xee   :  { %302 = vst.msk [vmem:[%s759_s3 + $0x88] sm:$0xff] %vm284_vm2, %v266_v7  ;;  %v216_v10 = vadd.f32 %v650_v30, %v215_v8 }
  0xef   :  { %v401_v11 = vpop.f32.mrf.mxu0  ;;  %v270_v12 = vpop.f32.mrf.mxu1 }
  0xf0   :  { %292 = vst.msk [vmem:[%s759_s3 + $0x38] sm:$0xff] %vm284_vm2, %v216_v10  ;;  %v271_v13 = vadd.f32 %v650_v30, %v270_v12 }
  0xf1   :  { %v220_v14 = vpop.f32.mrf.mxu0  ;;  %v434_v15 = vpop.f32.mrf.mxu1 }
  0xf2   :  { %303 = vst.msk [vmem:[%s759_s3 + $0x90] sm:$0xff] %vm284_vm2, %v271_v13  ;;  %v221_v16 = vadd.f32 %v650_v30, %v220_v14 }
  0xf3   :  { %v404_v17 = vpop.f32.mrf.mxu0  ;;  %v275_v18 = vpop.f32.mrf.mxu1 }
  0xf4   :  { %293 = vst.msk [vmem:[%s759_s3 + $0x40] sm:$0xff] %vm284_vm2, %v221_v16  ;;  %v276_v19 = vadd.f32 %v650_v30, %v275_v18 }
  0xf5   :  { %v225_v20 = vpop.f32.mrf.mxu0  ;;  %v437_v21 = vpop.f32.mrf.mxu1 }
  0xf6   :  { %304 = vst.msk [vmem:[%s759_s3 + $0x98] sm:$0xff] %vm284_vm2, %v276_v19  ;;  %v226_v22 = vadd.f32 %v650_v30, %v225_v20 }
  0xf7   :  { %v407_v23 = vpop.f32.mrf.mxu0  ;;  %v280_v24 = vpop.f32.mrf.mxu1 }
  0xf8   :  { %294 = vst.msk [vmem:[%s759_s3 + $0x48] sm:$0xff] %vm284_vm2, %v226_v22  ;;  %v281_v25 = vadd.f32 %v650_v30, %v280_v24 }
  0xf9   :  { %v230_v26 = vpop.f32.mrf.mxu0  ;;  %v440_v27 = vpop.f32.mrf.mxu1 }
  0xfa   :  { %306 = vst.msk [vmem:[%s759_s3 + $0xa0] sm:$0x3] %vm305_vm3, %v281_v25  ;;  %v231_v28 = vadd.f32 %v650_v30, %v230_v26 }
  0xfb   :  { %v410_v29 = vpop.f32.mrf.mxu0 }
  0xfc   :  { %295 = vst.msk [vmem:[%s759_s3 + $0x50] sm:$0xff] %vm284_vm2, %v231_v28 }

// kernel: deep_svdd_2d_forward.7
= control target key start
LH: loop header
LB: loop body
LE: loop exit
PB: predicated region body
PF: predicated region fallthrough
CT: control target
= control target key end

     0   :  { %vm167_vm0 = vcmask 261120   ;;  %vm174_vm1 = vcmask 254976   ;;  %s454_s1 = inlined_call_operand.vmem [shape: f32[256,32], index: 1, kind: input, shape index: {}]   ;;  %s455_s0 = inlined_call_operand.vmem [shape: f32[50,256], index: 0, kind: input, shape index: {}]   ;;  %s456_s2 = inlined_call_operand.vmem [shape: f32[1,32], index: 2, kind: input, shape index: {}]   ;;  %s457_s3 = inlined_call_operand.vmem [shape: f32[50,32], index: 3, kind: output, shape index: {}]  }
   0x1   :  { %v59_v0 = vld [vmem:[%s454_s1 + $0xf8] sm:$0xff]  ;;  %v58_v2 = vld [vmem:[%s454_s1 + $0xf0] sm:$0xff]  ;;  %v57_v4 = vld [vmem:[%s454_s1 + $0xe8] sm:$0xff] }
   0x2   :  { %v43_v1 = vld [vmem:[%s454_s1 + $0x78] sm:$0xff]  ;;  %181 = vmatprep.subr.mxu0 %v59_v0  ;;  %234 = vmatprep.subr.mxu1 %v59_v0  ;;  %v42_v3 = vld [vmem:[%s454_s1 + $0x70] sm:$0xff]  ;;  %v41_v5 = vld [vmem:[%s454_s1 + $0x68] sm:$0xff] }
   0x3   :  { %182 = vmatpush3.msra.mxu0 %v43_v1  ;;  %250 = vmatpush3.msra.mxu1 %v43_v1  ;;  %v56_v6 = vld [vmem:[%s454_s1 + $0xe0] sm:$0xff]  ;;  %v55_v8 = vld [vmem:[%s454_s1 + $0xd8] sm:$0xff]  ;;  %v54_v10 = vld [vmem:[%s454_s1 + $0xd0] sm:$0xff] }
   0x4   :  { %183 = vmatprep.subr.mxu0 %v58_v2  ;;  %235 = vmatprep.subr.mxu1 %v58_v2  ;;  %v40_v7 = vld [vmem:[%s454_s1 + $0x60] sm:$0xff]  ;;  %v39_v9 = vld [vmem:[%s454_s1 + $0x58] sm:$0xff]  ;;  %v38_v11 = vld [vmem:[%s454_s1 + $0x50] sm:$0xff] }
   0x5   :  { %184 = vmatpush3.msra.mxu0 %v42_v3  ;;  %251 = vmatpush3.msra.mxu1 %v42_v3  ;;  %v53_v12 = vld [vmem:[%s454_s1 + $0xc8] sm:$0xff]  ;;  %v52_v14 = vld [vmem:[%s454_s1 + $0xc0] sm:$0xff]  ;;  %v51_v16 = vld [vmem:[%s454_s1 + $0xb8] sm:$0xff] }
   0x6   :  { %185 = vmatprep.subr.mxu0 %v57_v4  ;;  %236 = vmatprep.subr.mxu1 %v57_v4  ;;  %v37_v13 = vld [vmem:[%s454_s1 + $0x48] sm:$0xff]  ;;  %v36_v15 = vld [vmem:[%s454_s1 + $0x40] sm:$0xff]  ;;  %v35_v17 = vld [vmem:[%s454_s1 + $0x38] sm:$0xff] }
   0x7   :  { %186 = vmatpush3.msra.mxu0 %v41_v5  ;;  %252 = vmatpush3.msra.mxu1 %v41_v5  ;;  %v50_v18 = vld [vmem:[%s454_s1 + $0xb0] sm:$0xff]  ;;  %v49_v20 = vld [vmem:[%s454_s1 + $0xa8] sm:$0xff]  ;;  %v48_v22 = vld [vmem:[%s454_s1 + $0xa0] sm:$0xff] }
   0x8   :  { %187 = vmatprep.subr.mxu0 %v56_v6  ;;  %237 = vmatprep.subr.mxu1 %v56_v6  ;;  %v34_v19 = vld [vmem:[%s454_s1 + $0x30] sm:$0xff]  ;;  %v33_v21 = vld [vmem:[%s454_s1 + $0x28] sm:$0xff]  ;;  %v32_v23 = vld [vmem:[%s454_s1 + $0x20] sm:$0xff] }
   0x9   :  { %188 = vmatpush3.msra.mxu0 %v40_v7  ;;  %253 = vmatpush3.msra.mxu1 %v40_v7  ;;  %v47_v24 = vld [vmem:[%s454_s1 + $0x98] sm:$0xff]  ;;  %v46_v26 = vld [vmem:[%s454_s1 + $0x90] sm:$0xff]  ;;  %v45_v28 = vld [vmem:[%s454_s1 + $0x88] sm:$0xff] }
   0xa   :  { %189 = vmatprep.subr.mxu0 %v55_v8  ;;  %238 = vmatprep.subr.mxu1 %v55_v8  ;;  %v31_v25 = vld [vmem:[%s454_s1 + $0x18] sm:$0xff]  ;;  %v30_v27 = vld [vmem:[%s454_s1 + $0x10] sm:$0xff]  ;;  %v29_v29 = vld [vmem:[%s454_s1 + $0x8] sm:$0xff] }
   0xb   :  { %190 = vmatpush3.msra.mxu0 %v39_v9  ;;  %254 = vmatpush3.msra.mxu1 %v39_v9  ;;  %v44_v30 = vld [vmem:[%s454_s1 + $0x80] sm:$0xff]  ;;  %v15_v31 = vld [vmem:[%s455_s0 + $0x8] sm:$0xff]  ;;  %v17_v35 = vld [vmem:[%s455_s0 + $0x18] sm:$0xff] }
   0xc   :  { %191 = vmatprep.subr.mxu0 %v54_v10  ;;  %239 = vmatprep.subr.mxu1 %v54_v10  ;;  %v28_v32 = vld [vmem:[%s454_s1] sm:$0xff]  ;;  %v23_v34 = vld [vmem:[%s455_s0 + $0x48] sm:$0xff]  ;;  %v25_v37 = vld [vmem:[%s455_s0 + $0x58] sm:$0xff] }
   0xd   :  { %192 = vmatpush3.msra.mxu0 %v38_v11  ;;  %255 = vmatpush3.msra.mxu1 %v38_v11  ;;  %v14_v33 = vld [vmem:[%s455_s0] sm:$0xff]  ;;  %v16_v38 = vld [vmem:[%s455_s0 + $0x10] sm:$0xff]  ;;  %v19_v39 = vld [vmem:[%s455_s0 + $0x28] sm:$0xff] }
   0xe   :  { %193 = vmatprep.subr.mxu0 %v53_v12  ;;  %240 = vmatprep.subr.mxu1 %v53_v12  ;;  %v22_v36 = vld [vmem:[%s455_s0 + $0x40] sm:$0xff]  ;;  %v24_v40 = vld [vmem:[%s455_s0 + $0x50] sm:$0xff]  ;;  %v27_v41 = vld [vmem:[%s455_s0 + $0x68] sm:$0x3] }
   0xf   :  { %194 = vmatpush3.msra.mxu0 %v37_v13  ;;  %256 = vmatpush3.msra.mxu1 %v37_v13  ;;  %v18_v42 = vld [vmem:[%s455_s0 + $0x20] sm:$0xff]  ;;  %v21_v43 = vld [vmem:[%s455_s0 + $0x38] sm:$0xff]  ;;  %v20_v45 = vld [vmem:[%s455_s0 + $0x30] sm:$0xff] }
  0x10   :  { %195 = vmatprep.subr.mxu0 %v52_v14  ;;  %241 = vmatprep.subr.mxu1 %v52_v14  ;;  %v26_v44 = vld [vmem:[%s455_s0 + $0x60] sm:$0x3] }
  0x11   :  { %196 = vmatpush3.msra.mxu0 %v36_v15  ;;  %257 = vmatpush3.msra.mxu1 %v36_v15  ;;  %v180_v47 = vld [vmem:[%s456_s2] ss:$0 sm:$0xff] }
  0x12   :  { %197 = vmatprep.subr.mxu0 %v51_v16  ;;  %242 = vmatprep.subr.mxu1 %v51_v16 }
  0x13   :  { %198 = vmatpush3.msra.mxu0 %v35_v17  ;;  %258 = vmatpush3.msra.mxu1 %v35_v17 }
  0x14   :  { %199 = vmatprep.subr.mxu0 %v50_v18  ;;  %243 = vmatprep.subr.mxu1 %v50_v18 }
  0x15   :  { %200 = vmatpush3.msra.mxu0 %v34_v19  ;;  %259 = vmatpush3.msra.mxu1 %v34_v19 }
  0x16   :  { %201 = vmatprep.subr.mxu0 %v49_v20  ;;  %244 = vmatprep.subr.mxu1 %v49_v20 }
  0x17   :  { %202 = vmatpush3.msra.mxu0 %v33_v21  ;;  %260 = vmatpush3.msra.mxu1 %v33_v21 }
  0x18   :  { %203 = vmatprep.subr.mxu0 %v48_v22  ;;  %245 = vmatprep.subr.mxu1 %v48_v22 }
  0x19   :  { %204 = vmatpush3.msra.mxu0 %v32_v23  ;;  %261 = vmatpush3.msra.mxu1 %v32_v23 }
  0x1a   :  { %205 = vmatprep.subr.mxu0 %v47_v24  ;;  %246 = vmatprep.subr.mxu1 %v47_v24 }
  0x1b   :  { %206 = vmatpush3.msra.mxu0 %v31_v25  ;;  %262 = vmatpush3.msra.mxu1 %v31_v25 }
  0x1c   :  { %207 = vmatprep.subr.mxu0 %v46_v26  ;;  %247 = vmatprep.subr.mxu1 %v46_v26 }
  0x1d   :  { %208 = vmatpush3.msra.mxu0 %v30_v27  ;;  %263 = vmatpush3.msra.mxu1 %v30_v27 }
  0x1e   :  { %209 = vmatprep.subr.mxu0 %v45_v28  ;;  %248 = vmatprep.subr.mxu1 %v45_v28 }
  0x1f   :  { %210 = vmatpush3.msra.mxu0 %v29_v29  ;;  %264 = vmatpush3.msra.mxu1 %v29_v29 }
  0x20   :  { %211 = vmatprep.subr.mxu0 %v44_v30  ;;  %131 = vmatprep.mubr.f32.mxu0 %v15_v31 }
  0x21   :  { %212 = vmatpush3.msra.mxu0 %v28_v32  ;;  %249 = vmatprep.subr.mxu1 %v44_v30 }
  0x22   :  { %132 = vmatmul.mubr.f32.vlgmr.msra.gmra.mxu0 %v14_v33  ;;  %265 = vmatpush3.msra.mxu1 %v28_v32 }
  0x23   :  { %151 = vmatprep.mubr.f32.mxu1 %v23_v34  ;;  %136 = vmatprep.mubr.f32.mxu0 %v17_v35 }
  0x24   :  { %152 = vmatmul.mubr.f32.vlgmr.msra.gmra.mxu1 %v22_v36 }
  0x25   :  { %156 = vmatprep.mubr.f32.mxu1 %v25_v37 }
  0x26   :  { %137 = vmatmul.mubr.f32.gmra.mxu0 %v16_v38 }
  0x27   :  { %141 = vmatprep.mubr.f32.mxu0 %v19_v39 }
  0x28   :  { %157 = vmatmul.mubr.f32.gmra.mxu1 %v24_v40 }
  0x29   :  { %161 = vmatprep.mubr.f32.mxu1 %v27_v41 }
  0x2a   :  { %142 = vmatmul.mubr.f32.gmra.mxu0 %v18_v42 }
  0x2b   :  { %146 = vmatprep.mubr.f32.mxu0 %v21_v43 }
  0x2c   :  { %162 = vmatmul.mubr.f32.gmra.mxu1 %v26_v44 }
  0x2e   :  { %147 = vmatmul.mubr.f32.gmra.mxu0 %v20_v45 }
  0xe2   :  { %v213_v46 = vpop.f32.mrf.mxu0 }
  0xe4   :  { %v214_v48 = vpop.f32.mrf.mxu0  ;;  %v225_v49 = vpop.f32.mrf.mxu1 }
  0xe5   :  { %v215_v50 = vadd.f32 %v214_v48, %v213_v46 }
  0xe6   :  { %v216_v51 = vpop.f32.mrf.mxu0  ;;  %v226_v52 = vpop.f32.mrf.mxu1 }
  0xe7   :  { %v134_v53 = vadd.f32 %v215_v50, %v180_v47  ;;  %v227_v54 = vadd.f32 %v226_v52, %v225_v49 }
  0xe8   :  { %v217_v55 = vpop.f32.mrf.mxu0  ;;  %v228_v56 = vpop.f32.mrf.mxu1 }
  0xe9   :  { %168 = vst.msk [vmem:[%s457_s3] sm:$0xff] %vm167_vm0, %v134_v53  ;;  %v154_v57 = vadd.f32 %v227_v54, %v180_v47  ;;  %v218_v58 = vadd.f32 %v217_v55, %v216_v51 }
  0xea   :  { %v219_v59 = vpop.f32.mrf.mxu0  ;;  %v229_v60 = vpop.f32.mrf.mxu1 }
  0xeb   :  { %172 = vst.msk [vmem:[%s457_s3 + $0x20] sm:$0xff] %vm167_vm0, %v154_v57  ;;  %v139_v61 = vadd.f32 %v218_v58, %v180_v47  ;;  %v230_v62 = vadd.f32 %v229_v60, %v228_v56 }
  0xec   :  { %v220_v63 = vpop.f32.mrf.mxu0  ;;  %v231_v0 = vpop.f32.mrf.mxu1 }
  0xed   :  { %169 = vst.msk [vmem:[%s457_s3 + $0x8] sm:$0xff] %vm167_vm0, %v139_v61  ;;  %v159_v1 = vadd.f32 %v230_v62, %v180_v47  ;;  %v221_v2 = vadd.f32 %v220_v63, %v219_v59 }
  0xee   :  { %v222_v3 = vpop.f32.mrf.mxu0  ;;  %v232_v4 = vpop.f32.mrf.mxu1 }
  0xef   :  { %173 = vst.msk [vmem:[%s457_s3 + $0x28] sm:$0xff] %vm167_vm0, %v159_v1  ;;  %v144_v5 = vadd.f32 %v221_v2, %v180_v47  ;;  %v233_v6 = vadd.f32 %v232_v4, %v231_v0 }
  0xf0   :  { %v223_v7 = vpop.f32.mrf.mxu0 }
  0xf1   :  { %170 = vst.msk [vmem:[%s457_s3 + $0x10] sm:$0xff] %vm167_vm0, %v144_v5  ;;  %v164_v8 = vadd.f32 %v233_v6, %v180_v47  ;;  %v224_v9 = vadd.f32 %v223_v7, %v222_v3 }
  0xf3   :  { %175 = vst.msk [vmem:[%s457_s3 + $0x30] sm:$0x3] %vm174_vm1, %v164_v8  ;;  %v149_v10 = vadd.f32 %v224_v9, %v180_v47 }
  0xf5   :  { %171 = vst.msk [vmem:[%s457_s3 + $0x18] sm:$0xff] %vm167_vm0, %v149_v10 }

// kernel: deep_svdd_2d_forward.8
= control target key start
LH: loop header
LB: loop body
LE: loop exit
PB: predicated region body
PF: predicated region fallthrough
CT: control target
= control target key end

     0   :  { %vm257_vm0 = vcmask 523264   ;;  %vm260_vm1 = vcmask 517120   ;;  %s609_s1 = inlined_call_operand.vmem [shape: f32[512,64], index: 1, kind: input, shape index: {}]   ;;  %s610_s0 = inlined_call_operand.vmem [shape: f32[18,512], index: 0, kind: input, shape index: {}]   ;;  %s611_s2 = inlined_call_operand.vmem [shape: f32[1,64], index: 2, kind: input, shape index: {}]   ;;  %s612_s3 = inlined_call_operand.vmem [shape: f32[18,64], index: 3, kind: output, shape index: {}]  }
   0x1   :  { %v57_v0 = vld [vmem:[%s609_s1 + $0xf8] sm:$0xff]  ;;  %v56_v4 = vld [vmem:[%s609_s1 + $0xf0] sm:$0xff]  ;;  %v55_v8 = vld [vmem:[%s609_s1 + $0xe8] sm:$0xff] }
   0x2   :  { %v89_v1 = vld [vmem:[%s609_s1 + $0x1f8] sm:$0xff]  ;;  %267 = vmatprep.subr.mxu0 %v57_v0  ;;  %v88_v5 = vld [vmem:[%s609_s1 + $0x1f0] sm:$0xff]  ;;  %v87_v9 = vld [vmem:[%s609_s1 + $0x1e8] sm:$0xff] }
   0x3   :  { %v41_v2 = vld [vmem:[%s609_s1 + $0x78] sm:$0xff]  ;;  %308 = vmatprep.subr.mxu1 %v89_v1  ;;  %v40_v6 = vld [vmem:[%s609_s1 + $0x70] sm:$0xff]  ;;  %v39_v10 = vld [vmem:[%s609_s1 + $0x68] sm:$0xff] }
   0x4   :  { %v73_v3 = vld [vmem:[%s609_s1 + $0x178] sm:$0xff]  ;;  %268 = vmatpush3.msra.mxu0 %v41_v2  ;;  %v72_v7 = vld [vmem:[%s609_s1 + $0x170] sm:$0xff]  ;;  %v71_v11 = vld [vmem:[%s609_s1 + $0x168] sm:$0xff] }
   0x5   :  { %309 = vmatpush3.msra.mxu1 %v73_v3  ;;  %269 = vmatprep.subr.mxu0 %v56_v4  ;;  %v54_v12 = vld [vmem:[%s609_s1 + $0xe0] sm:$0xff]  ;;  %v53_v16 = vld [vmem:[%s609_s1 + $0xd8] sm:$0xff]  ;;  %v52_v20 = vld [vmem:[%s609_s1 + $0xd0] sm:$0xff] }
   0x6   :  { %310 = vmatprep.subr.mxu1 %v88_v5  ;;  %270 = vmatpush3.msra.mxu0 %v40_v6  ;;  %v86_v13 = vld [vmem:[%s609_s1 + $0x1e0] sm:$0xff]  ;;  %v85_v17 = vld [vmem:[%s609_s1 + $0x1d8] sm:$0xff]  ;;  %v84_v21 = vld [vmem:[%s609_s1 + $0x1d0] sm:$0xff] }
   0x7   :  { %311 = vmatpush3.msra.mxu1 %v72_v7  ;;  %271 = vmatprep.subr.mxu0 %v55_v8  ;;  %v38_v14 = vld [vmem:[%s609_s1 + $0x60] sm:$0xff]  ;;  %v37_v18 = vld [vmem:[%s609_s1 + $0x58] sm:$0xff]  ;;  %v36_v22 = vld [vmem:[%s609_s1 + $0x50] sm:$0xff] }
   0x8   :  { %312 = vmatprep.subr.mxu1 %v87_v9  ;;  %v70_v15 = vld [vmem:[%s609_s1 + $0x160] sm:$0xff]  ;;  %272 = vmatpush3.msra.mxu0 %v39_v10  ;;  %v69_v19 = vld [vmem:[%s609_s1 + $0x158] sm:$0xff]  ;;  %v68_v23 = vld [vmem:[%s609_s1 + $0x150] sm:$0xff] }
   0x9   :  { %313 = vmatpush3.msra.mxu1 %v71_v11  ;;  %273 = vmatprep.subr.mxu0 %v54_v12  ;;  %v51_v24 = vld [vmem:[%s609_s1 + $0xc8] sm:$0xff]  ;;  %v50_v28 = vld [vmem:[%s609_s1 + $0xc0] sm:$0xff]  ;;  %v49_v32 = vld [vmem:[%s609_s1 + $0xb8] sm:$0xff] }
   0xa   :  { %314 = vmatprep.subr.mxu1 %v86_v13  ;;  %274 = vmatpush3.msra.mxu0 %v38_v14  ;;  %v83_v25 = vld [vmem:[%s609_s1 + $0x1c8] sm:$0xff]  ;;  %v82_v29 = vld [vmem:[%s609_s1 + $0x1c0] sm:$0xff]  ;;  %v81_v33 = vld [vmem:[%s609_s1 + $0x1b8] sm:$0xff] }
   0xb   :  { %315 = vmatpush3.msra.mxu1 %v70_v15  ;;  %275 = vmatprep.subr.mxu0 %v53_v16  ;;  %v35_v26 = vld [vmem:[%s609_s1 + $0x48] sm:$0xff]  ;;  %v34_v30 = vld [vmem:[%s609_s1 + $0x40] sm:$0xff]  ;;  %v33_v34 = vld [vmem:[%s609_s1 + $0x38] sm:$0xff] }
   0xc   :  { %316 = vmatprep.subr.mxu1 %v85_v17  ;;  %276 = vmatpush3.msra.mxu0 %v37_v18  ;;  %v67_v27 = vld [vmem:[%s609_s1 + $0x148] sm:$0xff]  ;;  %v66_v31 = vld [vmem:[%s609_s1 + $0x140] sm:$0xff]  ;;  %v65_v35 = vld [vmem:[%s609_s1 + $0x138] sm:$0xff] }
   0xd   :  { %317 = vmatpush3.msra.mxu1 %v69_v19  ;;  %277 = vmatprep.subr.mxu0 %v52_v20  ;;  %v48_v36 = vld [vmem:[%s609_s1 + $0xb0] sm:$0xff]  ;;  %v47_v40 = vld [vmem:[%s609_s1 + $0xa8] sm:$0xff]  ;;  %v46_v44 = vld [vmem:[%s609_s1 + $0xa0] sm:$0xff] }
   0xe   :  { %318 = vmatprep.subr.mxu1 %v84_v21  ;;  %278 = vmatpush3.msra.mxu0 %v36_v22  ;;  %v80_v37 = vld [vmem:[%s609_s1 + $0x1b0] sm:$0xff]  ;;  %v79_v41 = vld [vmem:[%s609_s1 + $0x1a8] sm:$0xff]  ;;  %v78_v45 = vld [vmem:[%s609_s1 + $0x1a0] sm:$0xff] }
   0xf   :  { %319 = vmatpush3.msra.mxu1 %v68_v23  ;;  %279 = vmatprep.subr.mxu0 %v51_v24  ;;  %v32_v38 = vld [vmem:[%s609_s1 + $0x30] sm:$0xff]  ;;  %v31_v42 = vld [vmem:[%s609_s1 + $0x28] sm:$0xff]  ;;  %v30_v46 = vld [vmem:[%s609_s1 + $0x20] sm:$0xff] }
  0x10   :  { %320 = vmatprep.subr.mxu1 %v83_v25  ;;  %280 = vmatpush3.msra.mxu0 %v35_v26  ;;  %v64_v39 = vld [vmem:[%s609_s1 + $0x130] sm:$0xff]  ;;  %v63_v43 = vld [vmem:[%s609_s1 + $0x128] sm:$0xff]  ;;  %v62_v47 = vld [vmem:[%s609_s1 + $0x120] sm:$0xff] }
  0x11   :  { %321 = vmatpush3.msra.mxu1 %v67_v27  ;;  %281 = vmatprep.subr.mxu0 %v50_v28  ;;  %v45_v48 = vld [vmem:[%s609_s1 + $0x98] sm:$0xff]  ;;  %v44_v52 = vld [vmem:[%s609_s1 + $0x90] sm:$0xff]  ;;  %v43_v56 = vld [vmem:[%s609_s1 + $0x88] sm:$0xff] }
  0x12   :  { %322 = vmatprep.subr.mxu1 %v82_v29  ;;  %282 = vmatpush3.msra.mxu0 %v34_v30  ;;  %v77_v49 = vld [vmem:[%s609_s1 + $0x198] sm:$0xff]  ;;  %v76_v53 = vld [vmem:[%s609_s1 + $0x190] sm:$0xff]  ;;  %v75_v57 = vld [vmem:[%s609_s1 + $0x188] sm:$0xff] }
  0x13   :  { %323 = vmatpush3.msra.mxu1 %v66_v31  ;;  %283 = vmatprep.subr.mxu0 %v49_v32  ;;  %v29_v50 = vld [vmem:[%s609_s1 + $0x18] sm:$0xff]  ;;  %v28_v54 = vld [vmem:[%s609_s1 + $0x10] sm:$0xff]  ;;  %v27_v58 = vld [vmem:[%s609_s1 + $0x8] sm:$0xff] }
  0x14   :  { %324 = vmatprep.subr.mxu1 %v81_v33  ;;  %284 = vmatpush3.msra.mxu0 %v33_v34  ;;  %v61_v51 = vld [vmem:[%s609_s1 + $0x118] sm:$0xff]  ;;  %v60_v55 = vld [vmem:[%s609_s1 + $0x110] sm:$0xff]  ;;  %v59_v59 = vld [vmem:[%s609_s1 + $0x108] sm:$0xff] }
  0x15   :  { %325 = vmatpush3.msra.mxu1 %v65_v35  ;;  %285 = vmatprep.subr.mxu0 %v48_v36  ;;  %v42_v60 = vld [vmem:[%s609_s1 + $0x80] sm:$0xff]  ;;  %v15_v63 = vld [vmem:[%s610_s0 + $0x8] sm:$0xff]  ;;  %v17_v1 = vld [vmem:[%s610_s0 + $0x18] sm:$0xff] }
  0x16   :  { %326 = vmatprep.subr.mxu1 %v80_v37  ;;  %286 = vmatpush3.msra.mxu0 %v32_v38  ;;  %v74_v61 = vld [vmem:[%s609_s1 + $0x180] sm:$0xff]  ;;  %v16_v3 = vld [vmem:[%s610_s0 + $0x10] sm:$0xff]  ;;  %v19_v4 = vld [vmem:[%s610_s0 + $0x28] sm:$0xff] }
  0x17   :  { %327 = vmatpush3.msra.mxu1 %v64_v39  ;;  %287 = vmatprep.subr.mxu0 %v47_v40  ;;  %v26_v62 = vld [vmem:[%s609_s1] sm:$0xff]  ;;  %v21_v5 = vld [vmem:[%s610_s0 + $0x38] sm:$0xff]  ;;  %v20_v7 = vld [vmem:[%s610_s0 + $0x30] sm:$0xff] }
  0x18   :  { %328 = vmatprep.subr.mxu1 %v79_v41  ;;  %288 = vmatpush3.msra.mxu0 %v31_v42  ;;  %v58_v0 = vld [vmem:[%s609_s1 + $0x100] sm:$0xff]  ;;  %v23_v8 = vld [vmem:[%s610_s0 + $0x48] sm:$0x3]  ;;  %v25_v9 = vld [vmem:[%s610_s0 + $0x58] sm:$0x3] }
  0x19   :  { %329 = vmatpush3.msra.mxu1 %v63_v43  ;;  %289 = vmatprep.subr.mxu0 %v46_v44  ;;  %v14_v2 = vld [vmem:[%s610_s0] sm:$0xff]  ;;  %v24_v11 = vld [vmem:[%s610_s0 + $0x50] sm:$0x3] }
  0x1a   :  { %330 = vmatprep.subr.mxu1 %v78_v45  ;;  %290 = vmatpush3.msra.mxu0 %v30_v46  ;;  %v18_v6 = vld [vmem:[%s610_s0 + $0x20] sm:$0xff] }
  0x1b   :  { %331 = vmatpush3.msra.mxu1 %v62_v47  ;;  %291 = vmatprep.subr.mxu0 %v45_v48  ;;  %v22_v10 = vld [vmem:[%s610_s0 + $0x40] sm:$0x3] }
  0x1c   :  { %332 = vmatprep.subr.mxu1 %v77_v49  ;;  %292 = vmatpush3.msra.mxu0 %v29_v50  ;;  %v266_v14 = vld [vmem:[%s611_s2] ss:$0 sm:$0xff] }
  0x1d   :  { %333 = vmatpush3.msra.mxu1 %v61_v51  ;;  %293 = vmatprep.subr.mxu0 %v44_v52 }
  0x1e   :  { %334 = vmatprep.subr.mxu1 %v76_v53  ;;  %294 = vmatpush3.msra.mxu0 %v28_v54 }
  0x1f   :  { %335 = vmatpush3.msra.mxu1 %v60_v55  ;;  %295 = vmatprep.subr.mxu0 %v43_v56 }
  0x20   :  { %336 = vmatprep.subr.mxu1 %v75_v57  ;;  %296 = vmatpush3.msra.mxu0 %v27_v58 }
  0x21   :  { %337 = vmatpush3.msra.mxu1 %v59_v59  ;;  %297 = vmatprep.subr.mxu0 %v42_v60 }
  0x22   :  { %338 = vmatprep.subr.mxu1 %v74_v61  ;;  %298 = vmatpush3.msra.mxu0 %v26_v62 }
  0x23   :  { %161 = vmatprep.mubr.f32.mxu0 %v15_v63  ;;  %339 = vmatpush3.msra.mxu1 %v58_v0 }
  0x24   :  { %241 = vmatprep.mubr.f32.mxu1 %v17_v1  ;;  %162 = vmatmul.mubr.f32.vlgmr.msra.gmra.mxu0 %v14_v2 }
  0x25   :  { %242 = vmatmul.mubr.f32.vlgmr.msra.gmra.mxu1 %v16_v3  ;;  %166 = vmatprep.mubr.f32.mxu0 %v19_v4 }
  0x26   :  { %246 = vmatprep.mubr.f32.mxu1 %v21_v5 }
  0x28   :  { %167 = vmatmul.mubr.f32.gmra.mxu0 %v18_v6 }
  0x29   :  { %247 = vmatmul.mubr.f32.gmra.mxu1 %v20_v7  ;;  %171 = vmatprep.mubr.f32.mxu0 %v23_v8 }
  0x2a   :  { %251 = vmatprep.mubr.f32.mxu1 %v25_v9 }
  0x2c   :  { %172 = vmatmul.mubr.f32.gmra.mxu0 %v22_v10 }
  0x2d   :  { %252 = vmatmul.mubr.f32.gmra.mxu1 %v24_v11 }
  0xe4   :  { %v299_v12 = vpop.f32.mrf.mxu0 }
  0xe5   :  { %v340_v13 = vpop.f32.mrf.mxu1 }
  0xe6   :  { %v300_v15 = vpop.f32.mrf.mxu0 }
  0xe7   :  { %v341_v16 = vpop.f32.mrf.mxu1  ;;  %v301_v17 = vadd.f32 %v300_v15, %v299_v12 }
  0xe8   :  { %v302_v18 = vpop.f32.mrf.mxu0  ;;  %v342_v21 = vadd.f32 %v341_v16, %v340_v13 }
  0xe9   :  { %v343_v19 = vpop.f32.mrf.mxu1  ;;  %v164_v20 = vadd.f32 %v301_v17, %v266_v14 }
  0xea   :  { %v303_v22 = vpop.f32.mrf.mxu0 }
  0xeb   :  { %v344_v23 = vpop.f32.mrf.mxu1  ;;  %v244_v24 = vadd.f32 %v342_v21, %v164_v20  ;;  %v304_v25 = vadd.f32 %v303_v22, %v302_v18 }
  0xec   :  { %v305_v26 = vpop.f32.mrf.mxu0  ;;  %v345_v29 = vadd.f32 %v344_v23, %v343_v19 }
  0xed   :  { %v346_v27 = vpop.f32.mrf.mxu1  ;;  %258 = vst.msk [vmem:[%s612_s3] sm:$0xff] %vm257_vm0, %v244_v24  ;;  %v169_v28 = vadd.f32 %v304_v25, %v266_v14 }
  0xee   :  { %v306_v30 = vpop.f32.mrf.mxu0 }
  0xef   :  { %v347_v31 = vpop.f32.mrf.mxu1  ;;  %v249_v32 = vadd.f32 %v345_v29, %v169_v28  ;;  %v307_v33 = vadd.f32 %v306_v30, %v305_v26 }
  0xf0   :  { %v348_v35 = vadd.f32 %v347_v31, %v346_v27 }
  0xf1   :  { %259 = vst.msk [vmem:[%s612_s3 + $0x8] sm:$0xff] %vm257_vm0, %v249_v32  ;;  %v174_v34 = vadd.f32 %v307_v33, %v266_v14 }
  0xf3   :  { %v254_v36 = vadd.f32 %v348_v35, %v174_v34 }
  0xf5   :  { %261 = vst.msk [vmem:[%s612_s3 + $0x10] sm:$0x3] %vm260_vm1, %v254_v36 }

// kernel: deep_svdd_2d_forward.9
= control target key start
LH: loop header
LB: loop body
LE: loop exit
PB: predicated region body
PF: predicated region fallthrough
CT: control target
= control target key end

     0   :  { %s1017_s1 = inlined_call_operand.vmem [shape: f32[1024,128], index: 1, kind: input, shape index: {}]   ;;  %s1018_s0 = inlined_call_operand.vmem [shape: f32[8,1024], index: 0, kind: input, shape index: {}]   ;;  %s1019_s2 = inlined_call_operand.vmem [shape: f32[1,128], index: 2, kind: input, shape index: {}]   ;;  %s1020_s3 = inlined_call_operand.vmem [shape: f32[8,128], index: 3, kind: output, shape index: {}]  }
   0x1   :  { %v53_v0 = vld [vmem:[%s1017_s1 + $0xf8] sm:$0xff]  ;;  %v52_v4 = vld [vmem:[%s1017_s1 + $0xf0] sm:$0xff]  ;;  %v51_v8 = vld [vmem:[%s1017_s1 + $0xe8] sm:$0xff] }
   0x2   :  { %v85_v1 = vld [vmem:[%s1017_s1 + $0x1f8] sm:$0xff]  ;;  %443 = vmatprep.subr.mxu0 %v53_v0  ;;  %v84_v5 = vld [vmem:[%s1017_s1 + $0x1f0] sm:$0xff]  ;;  %v83_v9 = vld [vmem:[%s1017_s1 + $0x1e8] sm:$0xff] }
   0x3   :  { %v37_v2 = vld [vmem:[%s1017_s1 + $0x78] sm:$0xff]  ;;  %478 = vmatprep.subr.mxu1 %v85_v1  ;;  %v36_v6 = vld [vmem:[%s1017_s1 + $0x70] sm:$0xff]  ;;  %v35_v10 = vld [vmem:[%s1017_s1 + $0x68] sm:$0xff] }
   0x4   :  { %v69_v3 = vld [vmem:[%s1017_s1 + $0x178] sm:$0xff]  ;;  %444 = vmatpush3.msra.mxu0 %v37_v2  ;;  %v68_v7 = vld [vmem:[%s1017_s1 + $0x170] sm:$0xff]  ;;  %v67_v11 = vld [vmem:[%s1017_s1 + $0x168] sm:$0xff] }
   0x5   :  { %479 = vmatpush3.msra.mxu1 %v69_v3  ;;  %445 = vmatprep.subr.mxu0 %v52_v4  ;;  %v50_v12 = vld [vmem:[%s1017_s1 + $0xe0] sm:$0xff]  ;;  %v49_v16 = vld [vmem:[%s1017_s1 + $0xd8] sm:$0xff]  ;;  %v48_v20 = vld [vmem:[%s1017_s1 + $0xd0] sm:$0xff] }
   0x6   :  { %480 = vmatprep.subr.mxu1 %v84_v5  ;;  %446 = vmatpush3.msra.mxu0 %v36_v6  ;;  %v82_v13 = vld [vmem:[%s1017_s1 + $0x1e0] sm:$0xff]  ;;  %v81_v17 = vld [vmem:[%s1017_s1 + $0x1d8] sm:$0xff]  ;;  %v80_v21 = vld [vmem:[%s1017_s1 + $0x1d0] sm:$0xff] }
   0x7   :  { %481 = vmatpush3.msra.mxu1 %v68_v7  ;;  %447 = vmatprep.subr.mxu0 %v51_v8  ;;  %v34_v14 = vld [vmem:[%s1017_s1 + $0x60] sm:$0xff]  ;;  %v33_v18 = vld [vmem:[%s1017_s1 + $0x58] sm:$0xff]  ;;  %v32_v22 = vld [vmem:[%s1017_s1 + $0x50] sm:$0xff] }
   0x8   :  { %482 = vmatprep.subr.mxu1 %v83_v9  ;;  %v66_v15 = vld [vmem:[%s1017_s1 + $0x160] sm:$0xff]  ;;  %448 = vmatpush3.msra.mxu0 %v35_v10  ;;  %v65_v19 = vld [vmem:[%s1017_s1 + $0x158] sm:$0xff]  ;;  %v64_v23 = vld [vmem:[%s1017_s1 + $0x150] sm:$0xff] }
   0x9   :  { %483 = vmatpush3.msra.mxu1 %v67_v11  ;;  %449 = vmatprep.subr.mxu0 %v50_v12  ;;  %v47_v24 = vld [vmem:[%s1017_s1 + $0xc8] sm:$0xff]  ;;  %v46_v28 = vld [vmem:[%s1017_s1 + $0xc0] sm:$0xff]  ;;  %v45_v32 = vld [vmem:[%s1017_s1 + $0xb8] sm:$0xff] }
   0xa   :  { %484 = vmatprep.subr.mxu1 %v82_v13  ;;  %450 = vmatpush3.msra.mxu0 %v34_v14  ;;  %v79_v25 = vld [vmem:[%s1017_s1 + $0x1c8] sm:$0xff]  ;;  %v78_v29 = vld [vmem:[%s1017_s1 + $0x1c0] sm:$0xff]  ;;  %v77_v33 = vld [vmem:[%s1017_s1 + $0x1b8] sm:$0xff] }
   0xb   :  { %485 = vmatpush3.msra.mxu1 %v66_v15  ;;  %451 = vmatprep.subr.mxu0 %v49_v16  ;;  %v31_v26 = vld [vmem:[%s1017_s1 + $0x48] sm:$0xff]  ;;  %v30_v30 = vld [vmem:[%s1017_s1 + $0x40] sm:$0xff]  ;;  %v29_v34 = vld [vmem:[%s1017_s1 + $0x38] sm:$0xff] }
   0xc   :  { %486 = vmatprep.subr.mxu1 %v81_v17  ;;  %452 = vmatpush3.msra.mxu0 %v33_v18  ;;  %v63_v27 = vld [vmem:[%s1017_s1 + $0x148] sm:$0xff]  ;;  %v62_v31 = vld [vmem:[%s1017_s1 + $0x140] sm:$0xff]  ;;  %v61_v35 = vld [vmem:[%s1017_s1 + $0x138] sm:$0xff] }
   0xd   :  { %487 = vmatpush3.msra.mxu1 %v65_v19  ;;  %453 = vmatprep.subr.mxu0 %v48_v20  ;;  %v44_v36 = vld [vmem:[%s1017_s1 + $0xb0] sm:$0xff]  ;;  %v43_v40 = vld [vmem:[%s1017_s1 + $0xa8] sm:$0xff]  ;;  %v42_v44 = vld [vmem:[%s1017_s1 + $0xa0] sm:$0xff] }
   0xe   :  { %488 = vmatprep.subr.mxu1 %v80_v21  ;;  %454 = vmatpush3.msra.mxu0 %v32_v22  ;;  %v76_v37 = vld [vmem:[%s1017_s1 + $0x1b0] sm:$0xff]  ;;  %v75_v41 = vld [vmem:[%s1017_s1 + $0x1a8] sm:$0xff]  ;;  %v74_v45 = vld [vmem:[%s1017_s1 + $0x1a0] sm:$0xff] }
   0xf   :  { %489 = vmatpush3.msra.mxu1 %v64_v23  ;;  %455 = vmatprep.subr.mxu0 %v47_v24  ;;  %v28_v38 = vld [vmem:[%s1017_s1 + $0x30] sm:$0xff]  ;;  %v27_v42 = vld [vmem:[%s1017_s1 + $0x28] sm:$0xff]  ;;  %v26_v46 = vld [vmem:[%s1017_s1 + $0x20] sm:$0xff] }
  0x10   :  { %490 = vmatprep.subr.mxu1 %v79_v25  ;;  %456 = vmatpush3.msra.mxu0 %v31_v26  ;;  %v60_v39 = vld [vmem:[%s1017_s1 + $0x130] sm:$0xff]  ;;  %v59_v43 = vld [vmem:[%s1017_s1 + $0x128] sm:$0xff]  ;;  %v58_v47 = vld [vmem:[%s1017_s1 + $0x120] sm:$0xff] }
  0x11   :  { %491 = vmatpush3.msra.mxu1 %v63_v27  ;;  %457 = vmatprep.subr.mxu0 %v46_v28  ;;  %v41_v48 = vld [vmem:[%s1017_s1 + $0x98] sm:$0xff]  ;;  %v40_v52 = vld [vmem:[%s1017_s1 + $0x90] sm:$0xff]  ;;  %v39_v56 = vld [vmem:[%s1017_s1 + $0x88] sm:$0xff] }
  0x12   :  { %492 = vmatprep.subr.mxu1 %v78_v29  ;;  %458 = vmatpush3.msra.mxu0 %v30_v30  ;;  %v73_v49 = vld [vmem:[%s1017_s1 + $0x198] sm:$0xff]  ;;  %v72_v53 = vld [vmem:[%s1017_s1 + $0x190] sm:$0xff]  ;;  %v71_v57 = vld [vmem:[%s1017_s1 + $0x188] sm:$0xff] }
  0x13   :  { %493 = vmatpush3.msra.mxu1 %v62_v31  ;;  %459 = vmatprep.subr.mxu0 %v45_v32  ;;  %v25_v50 = vld [vmem:[%s1017_s1 + $0x18] sm:$0xff]  ;;  %v24_v54 = vld [vmem:[%s1017_s1 + $0x10] sm:$0xff]  ;;  %v23_v58 = vld [vmem:[%s1017_s1 + $0x8] sm:$0xff] }
  0x14   :  { %494 = vmatprep.subr.mxu1 %v77_v33  ;;  %460 = vmatpush3.msra.mxu0 %v29_v34  ;;  %v57_v51 = vld [vmem:[%s1017_s1 + $0x118] sm:$0xff]  ;;  %v56_v55 = vld [vmem:[%s1017_s1 + $0x110] sm:$0xff]  ;;  %v55_v59 = vld [vmem:[%s1017_s1 + $0x108] sm:$0xff] }
  0x15   :  { %495 = vmatpush3.msra.mxu1 %v61_v35  ;;  %461 = vmatprep.subr.mxu0 %v44_v36  ;;  %v38_v60 = vld [vmem:[%s1017_s1 + $0x80] sm:$0xff]  ;;  %v15_v63 = vld [vmem:[%s1018_s0 + $0x8] sm:$0xff]  ;;  %v17_v2 = vld [vmem:[%s1018_s0 + $0x18] sm:$0xff] }
  0x16   :  { %496 = vmatprep.subr.mxu1 %v76_v37  ;;  %462 = vmatpush3.msra.mxu0 %v28_v38  ;;  %v70_v61 = vld [vmem:[%s1017_s1 + $0x180] sm:$0xff]  ;;  %v117_v3 = vld [vmem:[%s1017_s1 + $0x2f8] sm:$0xff]  ;;  %v16_v5 = vld [vmem:[%s1018_s0 + $0x10] sm:$0xff] }
  0x17   :  { %497 = vmatpush3.msra.mxu1 %v60_v39  ;;  %463 = vmatprep.subr.mxu0 %v43_v40  ;;  %v22_v62 = vld [vmem:[%s1017_s1] sm:$0xff]  ;;  %v149_v4 = vld [vmem:[%s1017_s1 + $0x3f8] sm:$0xff]  ;;  %v116_v8 = vld [vmem:[%s1017_s1 + $0x2f0] sm:$0xff] }
  0x18   :  { %498 = vmatprep.subr.mxu1 %v75_v41  ;;  %464 = vmatpush3.msra.mxu0 %v27_v42  ;;  %v54_v0 = vld [vmem:[%s1017_s1 + $0x100] sm:$0xff]  ;;  %v101_v6 = vld [vmem:[%s1017_s1 + $0x278] sm:$0xff]  ;;  %v148_v9 = vld [vmem:[%s1017_s1 + $0x3f0] sm:$0xff] }
  0x19   :  { %499 = vmatpush3.msra.mxu1 %v59_v43  ;;  %465 = vmatprep.subr.mxu0 %v42_v44  ;;  %v14_v1 = vld [vmem:[%s1018_s0] sm:$0xff]  ;;  %v133_v7 = vld [vmem:[%s1017_s1 + $0x378] sm:$0xff]  ;;  %v100_v10 = vld [vmem:[%s1017_s1 + $0x270] sm:$0xff] }
  0x1a   :  { %500 = vmatprep.subr.mxu1 %v74_v45  ;;  %466 = vmatpush3.msra.mxu0 %v26_v46  ;;  %v132_v11 = vld [vmem:[%s1017_s1 + $0x370] sm:$0xff]  ;;  %v115_v12 = vld [vmem:[%s1017_s1 + $0x2e8] sm:$0xff]  ;;  %v114_v16 = vld [vmem:[%s1017_s1 + $0x2e0] sm:$0xff] }
  0x1b   :  { %501 = vmatpush3.msra.mxu1 %v58_v47  ;;  %467 = vmatprep.subr.mxu0 %v41_v48  ;;  %v147_v13 = vld [vmem:[%s1017_s1 + $0x3e8] sm:$0xff]  ;;  %v146_v17 = vld [vmem:[%s1017_s1 + $0x3e0] sm:$0xff]  ;;  %v113_v20 = vld [vmem:[%s1017_s1 + $0x2d8] sm:$0xff] }
  0x1c   :  { %502 = vmatprep.subr.mxu1 %v73_v49  ;;  %468 = vmatpush3.msra.mxu0 %v25_v50  ;;  %v99_v14 = vld [vmem:[%s1017_s1 + $0x268] sm:$0xff]  ;;  %v98_v18 = vld [vmem:[%s1017_s1 + $0x260] sm:$0xff]  ;;  %v145_v21 = vld [vmem:[%s1017_s1 + $0x3d8] sm:$0xff] }
  0x1d   :  { %503 = vmatpush3.msra.mxu1 %v57_v51  ;;  %469 = vmatprep.subr.mxu0 %v40_v52  ;;  %v131_v15 = vld [vmem:[%s1017_s1 + $0x368] sm:$0xff]  ;;  %v130_v19 = vld [vmem:[%s1017_s1 + $0x360] sm:$0xff]  ;;  %v97_v22 = vld [vmem:[%s1017_s1 + $0x258] sm:$0xff] }
  0x1e   :  { %504 = vmatprep.subr.mxu1 %v72_v53  ;;  %470 = vmatpush3.msra.mxu0 %v24_v54  ;;  %v129_v23 = vld [vmem:[%s1017_s1 + $0x358] sm:$0xff]  ;;  %v112_v24 = vld [vmem:[%s1017_s1 + $0x2d0] sm:$0xff]  ;;  %v111_v28 = vld [vmem:[%s1017_s1 + $0x2c8] sm:$0xff] }
  0x1f   :  { %505 = vmatpush3.msra.mxu1 %v56_v55  ;;  %471 = vmatprep.subr.mxu0 %v39_v56  ;;  %v144_v25 = vld [vmem:[%s1017_s1 + $0x3d0] sm:$0xff]  ;;  %v143_v29 = vld [vmem:[%s1017_s1 + $0x3c8] sm:$0xff]  ;;  %v110_v32 = vld [vmem:[%s1017_s1 + $0x2c0] sm:$0xff] }
  0x20   :  { %506 = vmatprep.subr.mxu1 %v71_v57  ;;  %472 = vmatpush3.msra.mxu0 %v23_v58  ;;  %v96_v26 = vld [vmem:[%s1017_s1 + $0x250] sm:$0xff]  ;;  %v95_v30 = vld [vmem:[%s1017_s1 + $0x248] sm:$0xff]  ;;  %v142_v33 = vld [vmem:[%s1017_s1 + $0x3c0] sm:$0xff] }
  0x21   :  { %507 = vmatpush3.msra.mxu1 %v55_v59  ;;  %473 = vmatprep.subr.mxu0 %v38_v60  ;;  %v128_v27 = vld [vmem:[%s1017_s1 + $0x350] sm:$0xff]  ;;  %v127_v31 = vld [vmem:[%s1017_s1 + $0x348] sm:$0xff]  ;;  %v94_v34 = vld [vmem:[%s1017_s1 + $0x240] sm:$0xff] }
  0x22   :  { %508 = vmatprep.subr.mxu1 %v70_v61  ;;  %474 = vmatpush3.msra.mxu0 %v22_v62  ;;  %v126_v35 = vld [vmem:[%s1017_s1 + $0x340] sm:$0xff]  ;;  %v109_v36 = vld [vmem:[%s1017_s1 + $0x2b8] sm:$0xff]  ;;  %v108_v40 = vld [vmem:[%s1017_s1 + $0x2b0] sm:$0xff] }
  0x23   :  { %221 = vmatprep.mubr.f32.mxu0 %v15_v63  ;;  %509 = vmatpush3.msra.mxu1 %v54_v0  ;;  %v141_v37 = vld [vmem:[%s1017_s1 + $0x3b8] sm:$0xff]  ;;  %v140_v41 = vld [vmem:[%s1017_s1 + $0x3b0] sm:$0xff]  ;;  %v107_v44 = vld [vmem:[%s1017_s1 + $0x2a8] sm:$0xff] }
  0x24   :  { %222 = vmatmul.mubr.f32.vlgmr.msra.gmra.mxu0 %v14_v1  ;;  %291 = vmatprep.mubr.f32.mxu1 %v17_v2  ;;  %v93_v38 = vld [vmem:[%s1017_s1 + $0x238] sm:$0xff]  ;;  %v92_v42 = vld [vmem:[%s1017_s1 + $0x230] sm:$0xff]  ;;  %v139_v45 = vld [vmem:[%s1017_s1 + $0x3a8] sm:$0xff] }
  0x25   :  { %513 = vmatprep.subr.mxu0 %v117_v3  ;;  %548 = vmatprep.subr.mxu1 %v149_v4  ;;  %v125_v39 = vld [vmem:[%s1017_s1 + $0x338] sm:$0xff]  ;;  %v124_v43 = vld [vmem:[%s1017_s1 + $0x330] sm:$0xff]  ;;  %v91_v46 = vld [vmem:[%s1017_s1 + $0x228] sm:$0xff] }
  0x26   :  { %292 = vmatmul.mubr.f32.vlgmr.msra.gmra.mxu1 %v16_v5  ;;  %514 = vmatpush3.msra.mxu0 %v101_v6  ;;  %v123_v47 = vld [vmem:[%s1017_s1 + $0x328] sm:$0xff]  ;;  %v106_v48 = vld [vmem:[%s1017_s1 + $0x2a0] sm:$0xff]  ;;  %v105_v52 = vld [vmem:[%s1017_s1 + $0x298] sm:$0xff] }
  0x27   :  { %549 = vmatpush3.msra.mxu1 %v133_v7  ;;  %515 = vmatprep.subr.mxu0 %v116_v8  ;;  %v138_v49 = vld [vmem:[%s1017_s1 + $0x3a0] sm:$0xff]  ;;  %v137_v53 = vld [vmem:[%s1017_s1 + $0x398] sm:$0xff]  ;;  %v104_v56 = vld [vmem:[%s1017_s1 + $0x290] sm:$0xff] }
  0x28   :  { %550 = vmatprep.subr.mxu1 %v148_v9  ;;  %516 = vmatpush3.msra.mxu0 %v100_v10  ;;  %v90_v50 = vld [vmem:[%s1017_s1 + $0x220] sm:$0xff]  ;;  %v89_v54 = vld [vmem:[%s1017_s1 + $0x218] sm:$0xff]  ;;  %v136_v57 = vld [vmem:[%s1017_s1 + $0x390] sm:$0xff] }
  0x29   :  { %551 = vmatpush3.msra.mxu1 %v132_v11  ;;  %517 = vmatprep.subr.mxu0 %v115_v12  ;;  %v122_v51 = vld [vmem:[%s1017_s1 + $0x320] sm:$0xff]  ;;  %v121_v55 = vld [vmem:[%s1017_s1 + $0x318] sm:$0xff]  ;;  %v88_v58 = vld [vmem:[%s1017_s1 + $0x210] sm:$0xff] }
  0x2a   :  { %552 = vmatprep.subr.mxu1 %v147_v13  ;;  %518 = vmatpush3.msra.mxu0 %v99_v14  ;;  %v120_v59 = vld [vmem:[%s1017_s1 + $0x310] sm:$0xff]  ;;  %v103_v60 = vld [vmem:[%s1017_s1 + $0x288] sm:$0xff]  ;;  %v102_v0 = vld [vmem:[%s1017_s1 + $0x280] sm:$0xff] }
  0x2b   :  { %553 = vmatpush3.msra.mxu1 %v131_v15  ;;  %519 = vmatprep.subr.mxu0 %v114_v16  ;;  %v135_v61 = vld [vmem:[%s1017_s1 + $0x388] sm:$0xff]  ;;  %v134_v1 = vld [vmem:[%s1017_s1 + $0x380] sm:$0xff]  ;;  %v21_v5 = vld [vmem:[%s1018_s0 + $0x38] sm:$0xff] }
  0x2c   :  { %554 = vmatprep.subr.mxu1 %v146_v17  ;;  %520 = vmatpush3.msra.mxu0 %v98_v18  ;;  %v87_v62 = vld [vmem:[%s1017_s1 + $0x208] sm:$0xff]  ;;  %v86_v2 = vld [vmem:[%s1017_s1 + $0x200] sm:$0xff]  ;;  %v20_v7 = vld [vmem:[%s1018_s0 + $0x30] sm:$0xff] }
  0x2d   :  { %555 = vmatpush3.msra.mxu1 %v130_v19  ;;  %521 = vmatprep.subr.mxu0 %v113_v20  ;;  %v119_v63 = vld [vmem:[%s1017_s1 + $0x308] sm:$0xff]  ;;  %v118_v4 = vld [vmem:[%s1017_s1 + $0x300] sm:$0xff] }
  0x2e   :  { %556 = vmatprep.subr.mxu1 %v145_v21  ;;  %522 = vmatpush3.msra.mxu0 %v97_v22  ;;  %v19_v3 = vld [vmem:[%s1018_s0 + $0x28] sm:$0xff]  ;;  %v18_v6 = vld [vmem:[%s1018_s0 + $0x20] sm:$0xff] }
  0x2f   :  { %557 = vmatpush3.msra.mxu1 %v129_v23  ;;  %523 = vmatprep.subr.mxu0 %v112_v24  ;;  %v442_v12 = vld [vmem:[%s1019_s2] ss:$0 sm:$0xff] }
  0x30   :  { %558 = vmatprep.subr.mxu1 %v144_v25  ;;  %524 = vmatpush3.msra.mxu0 %v96_v26 }
  0x31   :  { %559 = vmatpush3.msra.mxu1 %v128_v27  ;;  %525 = vmatprep.subr.mxu0 %v111_v28 }
  0x32   :  { %560 = vmatprep.subr.mxu1 %v143_v29  ;;  %526 = vmatpush3.msra.mxu0 %v95_v30 }
  0x33   :  { %561 = vmatpush3.msra.mxu1 %v127_v31  ;;  %527 = vmatprep.subr.mxu0 %v110_v32 }
  0x34   :  { %562 = vmatprep.subr.mxu1 %v142_v33  ;;  %528 = vmatpush3.msra.mxu0 %v94_v34 }
  0x35   :  { %563 = vmatpush3.msra.mxu1 %v126_v35  ;;  %529 = vmatprep.subr.mxu0 %v109_v36 }
  0x36   :  { %564 = vmatprep.subr.mxu1 %v141_v37  ;;  %530 = vmatpush3.msra.mxu0 %v93_v38 }
  0x37   :  { %565 = vmatpush3.msra.mxu1 %v125_v39  ;;  %531 = vmatprep.subr.mxu0 %v108_v40 }
  0x38   :  { %566 = vmatprep.subr.mxu1 %v140_v41  ;;  %532 = vmatpush3.msra.mxu0 %v92_v42 }
  0x39   :  { %567 = vmatpush3.msra.mxu1 %v124_v43  ;;  %533 = vmatprep.subr.mxu0 %v107_v44 }
  0x3a   :  { %568 = vmatprep.subr.mxu1 %v139_v45  ;;  %534 = vmatpush3.msra.mxu0 %v91_v46 }
  0x3b   :  { %569 = vmatpush3.msra.mxu1 %v123_v47  ;;  %535 = vmatprep.subr.mxu0 %v106_v48 }
  0x3c   :  { %570 = vmatprep.subr.mxu1 %v138_v49  ;;  %536 = vmatpush3.msra.mxu0 %v90_v50 }
  0x3d   :  { %571 = vmatpush3.msra.mxu1 %v122_v51  ;;  %537 = vmatprep.subr.mxu0 %v105_v52 }
  0x3e   :  { %572 = vmatprep.subr.mxu1 %v137_v53  ;;  %538 = vmatpush3.msra.mxu0 %v89_v54 }
  0x3f   :  { %573 = vmatpush3.msra.mxu1 %v121_v55  ;;  %539 = vmatprep.subr.mxu0 %v104_v56 }
  0x40   :  { %574 = vmatprep.subr.mxu1 %v136_v57  ;;  %540 = vmatpush3.msra.mxu0 %v88_v58 }
  0x41   :  { %575 = vmatpush3.msra.mxu1 %v120_v59  ;;  %541 = vmatprep.subr.mxu0 %v103_v60 }
  0x42   :  { %576 = vmatprep.subr.mxu1 %v135_v61  ;;  %542 = vmatpush3.msra.mxu0 %v87_v62 }
  0x43   :  { %577 = vmatpush3.msra.mxu1 %v119_v63  ;;  %543 = vmatprep.subr.mxu0 %v102_v0 }
  0x44   :  { %578 = vmatprep.subr.mxu1 %v134_v1  ;;  %544 = vmatpush3.msra.mxu0 %v86_v2 }
  0x45   :  { %361 = vmatprep.mubr.f32.mxu0 %v19_v3  ;;  %579 = vmatpush3.msra.mxu1 %v118_v4 }
  0x46   :  { %431 = vmatprep.mubr.f32.mxu1 %v21_v5  ;;  %362 = vmatmul.mubr.f32.vlgmr.msra.gmra.mxu0 %v18_v6 }
  0x47   :  { %432 = vmatmul.mubr.f32.vlgmr.msra.gmra.mxu1 %v20_v7 }
  0xe4   :  { %v475_v8 = vpop.f32.mrf.mxu0 }
  0xe6   :  { %v510_v9 = vpop.f32.mrf.mxu1  ;;  %v476_v10 = vpop.f32.mrf.mxu0 }
  0xe7   :  { %v477_v11 = vadd.f32 %v476_v10, %v475_v8 }
  0xe8   :  { %v511_v13 = vpop.f32.mrf.mxu1 }
  0xe9   :  { %v224_v14 = vadd.f32 %v477_v11, %v442_v12  ;;  %v512_v15 = vadd.f32 %v511_v13, %v510_v9 }
  0xeb   :  { %v294_v20 = vadd.f32 %v512_v15, %v224_v14 }
 0x106   :  { %v545_v16 = vpop.f32.mrf.mxu0 }
 0x107   :  { %v580_v17 = vpop.f32.mrf.mxu1 }
 0x108   :  { %v546_v18 = vpop.f32.mrf.mxu0 }
 0x109   :  { %v581_v19 = vpop.f32.mrf.mxu1  ;;  %v547_v21 = vadd.f32 %v546_v18, %v545_v16 }
 0x10a   :  { %v582_v23 = vadd.f32 %v581_v19, %v580_v17 }
 0x10b   :  { %v364_v22 = vadd.f32 %v547_v21, %v294_v20 }
 0x10d   :  { %v434_v24 = vadd.f32 %v582_v23, %v364_v22 }
 0x10f   :  { %437 = vst [vmem:[%s1020_s3] sm:$0xff] %v434_v24 }

// kernel: deep_svdd_2d_forward.11
= control target key start
LH: loop header
LB: loop body
LE: loop exit
PB: predicated region body
PF: predicated region fallthrough
CT: control target
= control target key end

     0   :  { %v1255_v30 = vmov 1983009808   ;;  %v290_v32 = vlaneseq  ;;  %s2073_s0 = inlined_call_operand.vmem [shape: f32[2,2048], index: 0, kind: input, shape index: {}]   ;;  %s2074_s1 = inlined_call_operand.vmem [shape: f32[2048,8], index: 1, kind: input, shape index: {}]   ;;  %s2075_s2 = inlined_call_operand.vmem [shape: f32[1,8], index: 2, kind: input, shape index: {}]   ;;  %s2076_s3 = inlined_call_operand.hbm [shape: f32[2,8], index: 3, kind: output, shape index: {}]  }
   0x1   :  { %v50_v0 = vld [vmem:[%s2074_s1 + $0xf8] sm:$0xff]  ;;  %v49_v4 = vld [vmem:[%s2074_s1 + $0xf0] sm:$0xff]  ;;  %v48_v8 = vld [vmem:[%s2074_s1 + $0xe8] sm:$0xff]  ;;  %v288_v31 = vunpack.c.l.s4 %v1255_v30 }
   0x2   :  { %v82_v1 = vld [vmem:[%s2074_s1 + $0x1f8] sm:$0xff]  ;;  %947 = vmatprep.subr.mxu0 %v50_v0  ;;  %v81_v5 = vld [vmem:[%s2074_s1 + $0x1f0] sm:$0xff]  ;;  %v80_v9 = vld [vmem:[%s2074_s1 + $0x1e8] sm:$0xff]  ;;  %v291_v42 = vshrl.u32 %v290_v32, 7 }
   0x3   :  { %v34_v2 = vld [vmem:[%s2074_s1 + $0x78] sm:$0xff]  ;;  %982 = vmatprep.subr.mxu1 %v82_v1  ;;  %v33_v6 = vld [vmem:[%s2074_s1 + $0x70] sm:$0xff]  ;;  %v32_v10 = vld [vmem:[%s2074_s1 + $0x68] sm:$0xff]  ;;  %v289_v41 = vunpack.c.0.s8 %v288_v31 }
   0x4   :  { %v66_v3 = vld [vmem:[%s2074_s1 + $0x178] sm:$0xff]  ;;  %948 = vmatpush3.msra.mxu0 %v34_v2  ;;  %v65_v7 = vld [vmem:[%s2074_s1 + $0x170] sm:$0xff]  ;;  %v64_v11 = vld [vmem:[%s2074_s1 + $0x168] sm:$0xff] }
   0x5   :  { %983 = vmatpush3.msra.mxu1 %v66_v3  ;;  %949 = vmatprep.subr.mxu0 %v49_v4  ;;  %v47_v12 = vld [vmem:[%s2074_s1 + $0xe0] sm:$0xff]  ;;  %v46_v16 = vld [vmem:[%s2074_s1 + $0xd8] sm:$0xff]  ;;  %v45_v20 = vld [vmem:[%s2074_s1 + $0xd0] sm:$0xff]  ;;  %v1415_v51 = vsub.s32 %v289_v41, %v291_v42 }
   0x6   :  { %984 = vmatprep.subr.mxu1 %v81_v5  ;;  %950 = vmatpush3.msra.mxu0 %v33_v6  ;;  %v79_v13 = vld [vmem:[%s2074_s1 + $0x1e0] sm:$0xff]  ;;  %v78_v17 = vld [vmem:[%s2074_s1 + $0x1d8] sm:$0xff]  ;;  %v77_v21 = vld [vmem:[%s2074_s1 + $0x1d0] sm:$0xff] }
   0x7   :  { %985 = vmatpush3.msra.mxu1 %v65_v7  ;;  %951 = vmatprep.subr.mxu0 %v48_v8  ;;  %v31_v14 = vld [vmem:[%s2074_s1 + $0x60] sm:$0xff]  ;;  %v30_v18 = vld [vmem:[%s2074_s1 + $0x58] sm:$0xff]  ;;  %v29_v22 = vld [vmem:[%s2074_s1 + $0x50] sm:$0xff] }
   0x8   :  { %986 = vmatprep.subr.mxu1 %v80_v9  ;;  %v63_v15 = vld [vmem:[%s2074_s1 + $0x160] sm:$0xff]  ;;  %952 = vmatpush3.msra.mxu0 %v32_v10  ;;  %v62_v19 = vld [vmem:[%s2074_s1 + $0x158] sm:$0xff]  ;;  %v61_v23 = vld [vmem:[%s2074_s1 + $0x150] sm:$0xff] }
   0x9   :  { %987 = vmatpush3.msra.mxu1 %v64_v11  ;;  %953 = vmatprep.subr.mxu0 %v47_v12  ;;  %v44_v24 = vld [vmem:[%s2074_s1 + $0xc8] sm:$0xff]  ;;  %v43_v28 = vld [vmem:[%s2074_s1 + $0xc0] sm:$0xff]  ;;  %v42_v35 = vld [vmem:[%s2074_s1 + $0xb8] sm:$0xff] }
   0xa   :  { %988 = vmatprep.subr.mxu1 %v79_v13  ;;  %954 = vmatpush3.msra.mxu0 %v31_v14  ;;  %v76_v25 = vld [vmem:[%s2074_s1 + $0x1c8] sm:$0xff]  ;;  %v75_v29 = vld [vmem:[%s2074_s1 + $0x1c0] sm:$0xff]  ;;  %v74_v36 = vld [vmem:[%s2074_s1 + $0x1b8] sm:$0xff] }
   0xb   :  { %989 = vmatpush3.msra.mxu1 %v63_v15  ;;  %955 = vmatprep.subr.mxu0 %v46_v16  ;;  %v28_v26 = vld [vmem:[%s2074_s1 + $0x48] sm:$0xff]  ;;  %v27_v33 = vld [vmem:[%s2074_s1 + $0x40] sm:$0xff]  ;;  %v26_v37 = vld [vmem:[%s2074_s1 + $0x38] sm:$0xff] }
   0xc   :  { %990 = vmatprep.subr.mxu1 %v78_v17  ;;  %956 = vmatpush3.msra.mxu0 %v30_v18  ;;  %v60_v27 = vld [vmem:[%s2074_s1 + $0x148] sm:$0xff]  ;;  %v59_v34 = vld [vmem:[%s2074_s1 + $0x140] sm:$0xff]  ;;  %v58_v38 = vld [vmem:[%s2074_s1 + $0x138] sm:$0xff] }
   0xd   :  { %991 = vmatpush3.msra.mxu1 %v62_v19  ;;  %957 = vmatprep.subr.mxu0 %v45_v20  ;;  %v41_v39 = vld [vmem:[%s2074_s1 + $0xb0] sm:$0xff]  ;;  %v40_v45 = vld [vmem:[%s2074_s1 + $0xa8] sm:$0xff]  ;;  %v39_v49 = vld [vmem:[%s2074_s1 + $0xa0] sm:$0xff] }
   0xe   :  { %992 = vmatprep.subr.mxu1 %v77_v21  ;;  %958 = vmatpush3.msra.mxu0 %v29_v22  ;;  %v73_v40 = vld [vmem:[%s2074_s1 + $0x1b0] sm:$0xff]  ;;  %v72_v46 = vld [vmem:[%s2074_s1 + $0x1a8] sm:$0xff]  ;;  %v71_v50 = vld [vmem:[%s2074_s1 + $0x1a0] sm:$0xff] }
   0xf   :  { %993 = vmatpush3.msra.mxu1 %v61_v23  ;;  %959 = vmatprep.subr.mxu0 %v44_v24  ;;  %v25_v43 = vld [vmem:[%s2074_s1 + $0x30] sm:$0xff]  ;;  %v24_v47 = vld [vmem:[%s2074_s1 + $0x28] sm:$0xff]  ;;  %v23_v52 = vld [vmem:[%s2074_s1 + $0x20] sm:$0xff] }
  0x10   :  { %994 = vmatprep.subr.mxu1 %v76_v25  ;;  %960 = vmatpush3.msra.mxu0 %v28_v26  ;;  %v57_v44 = vld [vmem:[%s2074_s1 + $0x130] sm:$0xff]  ;;  %v56_v48 = vld [vmem:[%s2074_s1 + $0x128] sm:$0xff]  ;;  %v55_v53 = vld [vmem:[%s2074_s1 + $0x120] sm:$0xff] }
  0x11   :  { %995 = vmatpush3.msra.mxu1 %v60_v27  ;;  %961 = vmatprep.subr.mxu0 %v43_v28  ;;  %v15_v54 = vld [vmem:[%s2073_s0] sm:$0xff]  ;;  %v38_v55 = vld [vmem:[%s2074_s1 + $0x98] sm:$0xff]  ;;  %v37_v60 = vld [vmem:[%s2074_s1 + $0x90] sm:$0xff] }
  0x12   :  { %996 = vmatprep.subr.mxu1 %v75_v29  ;;  %962 = vmatpush3.msra.mxu0 %v27_v33  ;;  %v70_v56 = vld [vmem:[%s2074_s1 + $0x198] sm:$0xff]  ;;  %v286_v57 = vcombine.high %v15_v54, %v15_v54  ;;  %v69_v61 = vld [vmem:[%s2074_s1 + $0x190] sm:$0xff]  ;;  %v293_v62 = vrot.slane %v15_v54, %v1415_v51  ;;  %v36_v1 = vld [vmem:[%s2074_s1 + $0x88] sm:$0xff] }
  0x13   :  { %997 = vmatpush3.msra.mxu1 %v59_v34  ;;  %963 = vmatprep.subr.mxu0 %v42_v35  ;;  %v22_v58 = vld [vmem:[%s2074_s1 + $0x18] sm:$0xff]  ;;  %v21_v63 = vld [vmem:[%s2074_s1 + $0x10] sm:$0xff]  ;;  %v68_v2 = vld [vmem:[%s2074_s1 + $0x188] sm:$0xff] }
  0x14   :  { %998 = vmatprep.subr.mxu1 %v74_v36  ;;  %964 = vmatpush3.msra.mxu0 %v26_v37  ;;  %v54_v59 = vld [vmem:[%s2074_s1 + $0x118] sm:$0xff]  ;;  %v53_v0 = vld [vmem:[%s2074_s1 + $0x110] sm:$0xff]  ;;  %v300_v3 = vrot.slane %v286_v57, %v1415_v51  ;;  %v20_v4 = vld [vmem:[%s2074_s1 + $0x8] sm:$0xff]  ;;  %v301_v8 = vcombine.high %v293_v62, %v293_v62 }
  0x15   :  { %999 = vmatpush3.msra.mxu1 %v58_v38  ;;  %965 = vmatprep.subr.mxu0 %v41_v39  ;;  %v52_v5 = vld [vmem:[%s2074_s1 + $0x108] sm:$0xff]  ;;  %v35_v6 = vld [vmem:[%s2074_s1 + $0x80] sm:$0xff]  ;;  %v114_v12 = vld [vmem:[%s2074_s1 + $0x2f8] sm:$0xff] }
  0x16   :  { %1000 = vmatprep.subr.mxu1 %v73_v40  ;;  %966 = vmatpush3.msra.mxu0 %v25_v43  ;;  %v67_v7 = vld [vmem:[%s2074_s1 + $0x180] sm:$0xff]  ;;  %v302_v11 = vcombine.high %v300_v3, %v300_v3  ;;  %v146_v13 = vld [vmem:[%s2074_s1 + $0x3f8] sm:$0xff]  ;;  %v113_v16 = vld [vmem:[%s2074_s1 + $0x2f0] sm:$0xff] }
  0x17   :  { %1001 = vmatpush3.msra.mxu1 %v57_v44  ;;  %967 = vmatprep.subr.mxu0 %v40_v45  ;;  %v19_v9 = vld [vmem:[%s2074_s1] sm:$0xff]  ;;  %v98_v14 = vld [vmem:[%s2074_s1 + $0x278] sm:$0xff]  ;;  %v145_v17 = vld [vmem:[%s2074_s1 + $0x3f0] sm:$0xff] }
  0x18   :  { %1002 = vmatprep.subr.mxu1 %v72_v46  ;;  %968 = vmatpush3.msra.mxu0 %v24_v47  ;;  %v51_v10 = vld [vmem:[%s2074_s1 + $0x100] sm:$0xff]  ;;  %v130_v15 = vld [vmem:[%s2074_s1 + $0x378] sm:$0xff]  ;;  %v97_v18 = vld [vmem:[%s2074_s1 + $0x270] sm:$0xff] }
  0x19   :  { %1003 = vmatpush3.msra.mxu1 %v56_v48  ;;  %969 = vmatprep.subr.mxu0 %v39_v49  ;;  %v129_v19 = vld [vmem:[%s2074_s1 + $0x370] sm:$0xff]  ;;  %v112_v20 = vld [vmem:[%s2074_s1 + $0x2e8] sm:$0xff]  ;;  %v111_v24 = vld [vmem:[%s2074_s1 + $0x2e0] sm:$0xff] }
  0x1a   :  { %1004 = vmatprep.subr.mxu1 %v71_v50  ;;  %970 = vmatpush3.msra.mxu0 %v23_v52  ;;  %v144_v21 = vld [vmem:[%s2074_s1 + $0x3e8] sm:$0xff]  ;;  %v143_v25 = vld [vmem:[%s2074_s1 + $0x3e0] sm:$0xff]  ;;  %v110_v28 = vld [vmem:[%s2074_s1 + $0x2d8] sm:$0xff] }
  0x1b   :  { %1005 = vmatpush3.msra.mxu1 %v55_v53  ;;  %971 = vmatprep.subr.mxu0 %v38_v55  ;;  %v96_v22 = vld [vmem:[%s2074_s1 + $0x268] sm:$0xff]  ;;  %v95_v26 = vld [vmem:[%s2074_s1 + $0x260] sm:$0xff]  ;;  %v142_v29 = vld [vmem:[%s2074_s1 + $0x3d8] sm:$0xff] }
  0x1c   :  { %1006 = vmatprep.subr.mxu1 %v70_v56  ;;  %972 = vmatpush3.msra.mxu0 %v22_v58  ;;  %v128_v23 = vld [vmem:[%s2074_s1 + $0x368] sm:$0xff]  ;;  %v127_v27 = vld [vmem:[%s2074_s1 + $0x360] sm:$0xff]  ;;  %v94_v30 = vld [vmem:[%s2074_s1 + $0x258] sm:$0xff] }
  0x1d   :  { %1007 = vmatpush3.msra.mxu1 %v54_v59  ;;  %973 = vmatprep.subr.mxu0 %v37_v60  ;;  %v126_v31 = vld [vmem:[%s2074_s1 + $0x358] sm:$0xff]  ;;  %v109_v32 = vld [vmem:[%s2074_s1 + $0x2d0] sm:$0xff]  ;;  %v108_v36 = vld [vmem:[%s2074_s1 + $0x2c8] sm:$0xff] }
  0x1e   :  { %1008 = vmatprep.subr.mxu1 %v69_v61  ;;  %974 = vmatpush3.msra.mxu0 %v21_v63  ;;  %v141_v33 = vld [vmem:[%s2074_s1 + $0x3d0] sm:$0xff]  ;;  %v140_v37 = vld [vmem:[%s2074_s1 + $0x3c8] sm:$0xff]  ;;  %v107_v40 = vld [vmem:[%s2074_s1 + $0x2c0] sm:$0xff] }
  0x1f   :  { %1009 = vmatpush3.msra.mxu1 %v53_v0  ;;  %975 = vmatprep.subr.mxu0 %v36_v1  ;;  %v93_v34 = vld [vmem:[%s2074_s1 + $0x250] sm:$0xff]  ;;  %v92_v38 = vld [vmem:[%s2074_s1 + $0x248] sm:$0xff]  ;;  %v139_v41 = vld [vmem:[%s2074_s1 + $0x3c0] sm:$0xff] }
  0x20   :  { %1010 = vmatprep.subr.mxu1 %v68_v2  ;;  %976 = vmatpush3.msra.mxu0 %v20_v4  ;;  %v125_v35 = vld [vmem:[%s2074_s1 + $0x350] sm:$0xff]  ;;  %v124_v39 = vld [vmem:[%s2074_s1 + $0x348] sm:$0xff]  ;;  %v91_v42 = vld [vmem:[%s2074_s1 + $0x240] sm:$0xff] }
  0x21   :  { %1011 = vmatpush3.msra.mxu1 %v52_v5  ;;  %977 = vmatprep.subr.mxu0 %v35_v6  ;;  %v123_v43 = vld [vmem:[%s2074_s1 + $0x340] sm:$0xff]  ;;  %v106_v44 = vld [vmem:[%s2074_s1 + $0x2b8] sm:$0xff]  ;;  %v105_v48 = vld [vmem:[%s2074_s1 + $0x2b0] sm:$0xff] }
  0x22   :  { %1012 = vmatprep.subr.mxu1 %v67_v7  ;;  %978 = vmatpush3.msra.mxu0 %v19_v9  ;;  %v138_v45 = vld [vmem:[%s2074_s1 + $0x3b8] sm:$0xff]  ;;  %v137_v49 = vld [vmem:[%s2074_s1 + $0x3b0] sm:$0xff]  ;;  %v104_v53 = vld [vmem:[%s2074_s1 + $0x2a8] sm:$0xff] }
  0x23   :  { %434 = vmatprep.mubr.f32.mxu0 %v301_v8  ;;  %1013 = vmatpush3.msra.mxu1 %v51_v10  ;;  %v90_v46 = vld [vmem:[%s2074_s1 + $0x238] sm:$0xff]  ;;  %v89_v50 = vld [vmem:[%s2074_s1 + $0x230] sm:$0xff]  ;;  %v136_v54 = vld [vmem:[%s2074_s1 + $0x3a8] sm:$0xff] }
  0x24   :  { %435 = vmatmul.mubr.f32.vlgmr.msra.gmra.mxu0 %v293_v62  ;;  %504 = vmatprep.mubr.f32.mxu1 %v302_v11  ;;  %v122_v47 = vld [vmem:[%s2074_s1 + $0x338] sm:$0xff]  ;;  %v121_v52 = vld [vmem:[%s2074_s1 + $0x330] sm:$0xff]  ;;  %v88_v55 = vld [vmem:[%s2074_s1 + $0x228] sm:$0xff] }
  0x25   :  { %1017 = vmatprep.subr.mxu0 %v114_v12  ;;  %1052 = vmatprep.subr.mxu1 %v146_v13  ;;  %v120_v56 = vld [vmem:[%s2074_s1 + $0x328] sm:$0xff]  ;;  %v103_v58 = vld [vmem:[%s2074_s1 + $0x2a0] sm:$0xff]  ;;  %v102_v62 = vld [vmem:[%s2074_s1 + $0x298] sm:$0xff] }
  0x26   :  { %505 = vmatmul.mubr.f32.vlgmr.msra.gmra.mxu1 %v300_v3  ;;  %1018 = vmatpush3.msra.mxu0 %v98_v14  ;;  %v16_v57 = vld [vmem:[%s2073_s0 + $0x8] sm:$0xff]  ;;  %v135_v59 = vld [vmem:[%s2074_s1 + $0x3a0] sm:$0xff]  ;;  %v134_v63 = vld [vmem:[%s2074_s1 + $0x398] sm:$0xff] }
  0x27   :  { %1053 = vmatpush3.msra.mxu1 %v130_v15  ;;  %1019 = vmatprep.subr.mxu0 %v113_v16  ;;  %v87_v60 = vld [vmem:[%s2074_s1 + $0x220] sm:$0xff]  ;;  %v303_v0 = vcombine.high %v16_v57, %v16_v57  ;;  %v86_v1 = vld [vmem:[%s2074_s1 + $0x218] sm:$0xff]  ;;  %v101_v3 = vld [vmem:[%s2074_s1 + $0x290] sm:$0xff]  ;;  %v310_v5 = vrot.slane %v16_v57, %v1415_v51 }
  0x28   :  { %1054 = vmatprep.subr.mxu1 %v145_v17  ;;  %1020 = vmatpush3.msra.mxu0 %v97_v18  ;;  %v119_v61 = vld [vmem:[%s2074_s1 + $0x320] sm:$0xff]  ;;  %v118_v2 = vld [vmem:[%s2074_s1 + $0x318] sm:$0xff]  ;;  %v133_v4 = vld [vmem:[%s2074_s1 + $0x390] sm:$0xff] }
  0x29   :  { %1055 = vmatpush3.msra.mxu1 %v129_v19  ;;  %1021 = vmatprep.subr.mxu0 %v112_v20  ;;  %v85_v6 = vld [vmem:[%s2074_s1 + $0x210] sm:$0xff]  ;;  %v100_v8 = vld [vmem:[%s2074_s1 + $0x288] sm:$0xff]  ;;  %v317_v10 = vrot.slane %v303_v0, %v1415_v51  ;;  %v99_v13 = vld [vmem:[%s2074_s1 + $0x280] sm:$0xff]  ;;  %v318_v15 = vcombine.high %v310_v5, %v310_v5 }
  0x2a   :  { %1056 = vmatprep.subr.mxu1 %v144_v21  ;;  %1022 = vmatpush3.msra.mxu0 %v96_v22  ;;  %v117_v7 = vld [vmem:[%s2074_s1 + $0x310] sm:$0xff]  ;;  %v132_v9 = vld [vmem:[%s2074_s1 + $0x388] sm:$0xff]  ;;  %v131_v14 = vld [vmem:[%s2074_s1 + $0x380] sm:$0xff] }
  0x2b   :  { %1057 = vmatpush3.msra.mxu1 %v128_v23  ;;  %1023 = vmatprep.subr.mxu0 %v111_v24  ;;  %v84_v11 = vld [vmem:[%s2074_s1 + $0x208] sm:$0xff]  ;;  %v83_v16 = vld [vmem:[%s2074_s1 + $0x200] sm:$0xff]  ;;  %v319_v18 = vcombine.high %v317_v10, %v317_v10  ;;  %v178_v19 = vld [vmem:[%s2074_s1 + $0x4f8] sm:$0xff] }
  0x2c   :  { %1058 = vmatprep.subr.mxu1 %v143_v25  ;;  %1024 = vmatpush3.msra.mxu0 %v95_v26  ;;  %v116_v12 = vld [vmem:[%s2074_s1 + $0x308] sm:$0xff]  ;;  %v115_v17 = vld [vmem:[%s2074_s1 + $0x300] sm:$0xff]  ;;  %v210_v20 = vld [vmem:[%s2074_s1 + $0x5f8] sm:$0xff] }
  0x2d   :  { %1059 = vmatpush3.msra.mxu1 %v127_v27  ;;  %1025 = vmatprep.subr.mxu0 %v110_v28  ;;  %v162_v21 = vld [vmem:[%s2074_s1 + $0x478] sm:$0xff]  ;;  %v177_v23 = vld [vmem:[%s2074_s1 + $0x4f0] sm:$0xff]  ;;  %v176_v27 = vld [vmem:[%s2074_s1 + $0x4e8] sm:$0xff] }
  0x2e   :  { %1060 = vmatprep.subr.mxu1 %v142_v29  ;;  %1026 = vmatpush3.msra.mxu0 %v94_v30  ;;  %v194_v22 = vld [vmem:[%s2074_s1 + $0x578] sm:$0xff]  ;;  %v209_v24 = vld [vmem:[%s2074_s1 + $0x5f0] sm:$0xff]  ;;  %v208_v28 = vld [vmem:[%s2074_s1 + $0x5e8] sm:$0xff] }
  0x2f   :  { %1061 = vmatpush3.msra.mxu1 %v126_v31  ;;  %1027 = vmatprep.subr.mxu0 %v109_v32  ;;  %v161_v25 = vld [vmem:[%s2074_s1 + $0x470] sm:$0xff]  ;;  %v160_v29 = vld [vmem:[%s2074_s1 + $0x468] sm:$0xff]  ;;  %v175_v31 = vld [vmem:[%s2074_s1 + $0x4e0] sm:$0xff] }
  0x30   :  { %1062 = vmatprep.subr.mxu1 %v141_v33  ;;  %1028 = vmatpush3.msra.mxu0 %v93_v34  ;;  %v193_v26 = vld [vmem:[%s2074_s1 + $0x570] sm:$0xff]  ;;  %v192_v30 = vld [vmem:[%s2074_s1 + $0x568] sm:$0xff]  ;;  %v207_v32 = vld [vmem:[%s2074_s1 + $0x5e0] sm:$0xff] }
  0x31   :  { %1063 = vmatpush3.msra.mxu1 %v125_v35  ;;  %1029 = vmatprep.subr.mxu0 %v108_v36  ;;  %v159_v33 = vld [vmem:[%s2074_s1 + $0x460] sm:$0xff]  ;;  %v174_v35 = vld [vmem:[%s2074_s1 + $0x4d8] sm:$0xff]  ;;  %v201_v57 = vld [vmem:[%s2074_s1 + $0x5b0] sm:$0xff] }
  0x32   :  { %1064 = vmatprep.subr.mxu1 %v140_v37  ;;  %1030 = vmatpush3.msra.mxu0 %v92_v38  ;;  %v191_v34 = vld [vmem:[%s2074_s1 + $0x560] sm:$0xff]  ;;  %v206_v36 = vld [vmem:[%s2074_s1 + $0x5d8] sm:$0xff] }
  0x33   :  { %1065 = vmatpush3.msra.mxu1 %v124_v39  ;;  %1031 = vmatprep.subr.mxu0 %v107_v40  ;;  %v158_v37 = vld [vmem:[%s2074_s1 + $0x458] sm:$0xff]  ;;  %v173_v39 = vld [vmem:[%s2074_s1 + $0x4d0] sm:$0xff] }
  0x34   :  { %1066 = vmatprep.subr.mxu1 %v139_v41  ;;  %1032 = vmatpush3.msra.mxu0 %v91_v42  ;;  %v190_v38 = vld [vmem:[%s2074_s1 + $0x558] sm:$0xff]  ;;  %v205_v40 = vld [vmem:[%s2074_s1 + $0x5d0] sm:$0xff] }
  0x35   :  { %1067 = vmatpush3.msra.mxu1 %v123_v43  ;;  %1033 = vmatprep.subr.mxu0 %v106_v44  ;;  %v157_v41 = vld [vmem:[%s2074_s1 + $0x450] sm:$0xff]  ;;  %v172_v43 = vld [vmem:[%s2074_s1 + $0x4c8] sm:$0xff] }
  0x36   :  { %1068 = vmatprep.subr.mxu1 %v138_v45  ;;  %1034 = vmatpush3.msra.mxu0 %v90_v46  ;;  %v189_v42 = vld [vmem:[%s2074_s1 + $0x550] sm:$0xff]  ;;  %v204_v44 = vld [vmem:[%s2074_s1 + $0x5c8] sm:$0xff] }
  0x37   :  { %1069 = vmatpush3.msra.mxu1 %v122_v47  ;;  %1035 = vmatprep.subr.mxu0 %v105_v48  ;;  %v156_v45 = vld [vmem:[%s2074_s1 + $0x448] sm:$0xff]  ;;  %v171_v47 = vld [vmem:[%s2074_s1 + $0x4c0] sm:$0xff] }
  0x38   :  { %1070 = vmatprep.subr.mxu1 %v137_v49  ;;  %1036 = vmatpush3.msra.mxu0 %v89_v50  ;;  %v188_v46 = vld [vmem:[%s2074_s1 + $0x548] sm:$0xff]  ;;  %v203_v48 = vld [vmem:[%s2074_s1 + $0x5c0] sm:$0xff] }
  0x39   :  { %1071 = vmatpush3.msra.mxu1 %v121_v52  ;;  %1037 = vmatprep.subr.mxu0 %v104_v53  ;;  %v155_v49 = vld [vmem:[%s2074_s1 + $0x440] sm:$0xff]  ;;  %v170_v52 = vld [vmem:[%s2074_s1 + $0x4b8] sm:$0xff] }
  0x3a   :  { %1072 = vmatprep.subr.mxu1 %v136_v54  ;;  %1038 = vmatpush3.msra.mxu0 %v88_v55  ;;  %v187_v50 = vld [vmem:[%s2074_s1 + $0x540] sm:$0xff]  ;;  %v202_v53 = vld [vmem:[%s2074_s1 + $0x5b8] sm:$0xff] }
  0x3b   :  { %1073 = vmatpush3.msra.mxu1 %v120_v56  ;;  %1039 = vmatprep.subr.mxu0 %v103_v58  ;;  %v154_v54 = vld [vmem:[%s2074_s1 + $0x438] sm:$0xff]  ;;  %v169_v56 = vld [vmem:[%s2074_s1 + $0x4b0] sm:$0xff] }
  0x3c   :  { %1074 = vmatprep.subr.mxu1 %v135_v59  ;;  %1040 = vmatpush3.msra.mxu0 %v87_v60  ;;  %v186_v55 = vld [vmem:[%s2074_s1 + $0x538] sm:$0xff]  ;;  %v153_v58 = vld [vmem:[%s2074_s1 + $0x430] sm:$0xff]  ;;  %v168_v60 = vld [vmem:[%s2074_s1 + $0x4a8] sm:$0xff] }
  0x3d   :  { %1075 = vmatpush3.msra.mxu1 %v119_v61  ;;  %1041 = vmatprep.subr.mxu0 %v102_v62  ;;  %v185_v59 = vld [vmem:[%s2074_s1 + $0x530] sm:$0xff]  ;;  %v200_v61 = vld [vmem:[%s2074_s1 + $0x5a8] sm:$0xff] }
  0x3e   :  { %1076 = vmatprep.subr.mxu1 %v134_v63  ;;  %1042 = vmatpush3.msra.mxu0 %v86_v1 }
  0x3f   :  { %1077 = vmatpush3.msra.mxu1 %v118_v2  ;;  %1043 = vmatprep.subr.mxu0 %v101_v3 }
  0x40   :  { %1078 = vmatprep.subr.mxu1 %v133_v4  ;;  %1044 = vmatpush3.msra.mxu0 %v85_v6 }
  0x41   :  { %1079 = vmatpush3.msra.mxu1 %v117_v7  ;;  %1045 = vmatprep.subr.mxu0 %v100_v8 }
  0x42   :  { %1080 = vmatprep.subr.mxu1 %v132_v9  ;;  %1046 = vmatpush3.msra.mxu0 %v84_v11 }
  0x43   :  { %1081 = vmatpush3.msra.mxu1 %v116_v12  ;;  %1047 = vmatprep.subr.mxu0 %v99_v13 }
  0x44   :  { %1082 = vmatprep.subr.mxu1 %v131_v14  ;;  %1048 = vmatpush3.msra.mxu0 %v83_v16 }
  0x45   :  { %574 = vmatprep.mubr.f32.mxu0 %v318_v15  ;;  %1083 = vmatpush3.msra.mxu1 %v115_v17 }
  0x46   :  { %575 = vmatmul.mubr.f32.vlgmr.msra.gmra.mxu0 %v310_v5  ;;  %644 = vmatprep.mubr.f32.mxu1 %v319_v18 }
  0x47   :  { %1087 = vmatprep.subr.mxu0 %v178_v19  ;;  %1122 = vmatprep.subr.mxu1 %v210_v20 }
  0x48   :  { %645 = vmatmul.mubr.f32.vlgmr.msra.gmra.mxu1 %v317_v10  ;;  %1088 = vmatpush3.msra.mxu0 %v162_v21 }
  0x49   :  { %1123 = vmatpush3.msra.mxu1 %v194_v22  ;;  %1089 = vmatprep.subr.mxu0 %v177_v23 }
  0x4a   :  { %1124 = vmatprep.subr.mxu1 %v209_v24  ;;  %1090 = vmatpush3.msra.mxu0 %v161_v25 }
  0x4b   :  { %1125 = vmatpush3.msra.mxu1 %v193_v26  ;;  %1091 = vmatprep.subr.mxu0 %v176_v27 }
  0x4c   :  { %1126 = vmatprep.subr.mxu1 %v208_v28  ;;  %1092 = vmatpush3.msra.mxu0 %v160_v29 }
  0x4d   :  { %1127 = vmatpush3.msra.mxu1 %v192_v30  ;;  %1093 = vmatprep.subr.mxu0 %v175_v31 }
  0x4e   :  { %1128 = vmatprep.subr.mxu1 %v207_v32  ;;  %1094 = vmatpush3.msra.mxu0 %v159_v33 }
  0x4f   :  { %1129 = vmatpush3.msra.mxu1 %v191_v34  ;;  %1095 = vmatprep.subr.mxu0 %v174_v35 }
  0x50   :  { %1130 = vmatprep.subr.mxu1 %v206_v36  ;;  %1096 = vmatpush3.msra.mxu0 %v158_v37 }
  0x51   :  { %1131 = vmatpush3.msra.mxu1 %v190_v38  ;;  %1097 = vmatprep.subr.mxu0 %v173_v39 }
  0x52   :  { %1132 = vmatprep.subr.mxu1 %v205_v40  ;;  %1098 = vmatpush3.msra.mxu0 %v157_v41 }
  0x53   :  { %1133 = vmatpush3.msra.mxu1 %v189_v42  ;;  %1099 = vmatprep.subr.mxu0 %v172_v43 }
  0x54   :  { %1134 = vmatprep.subr.mxu1 %v204_v44  ;;  %1100 = vmatpush3.msra.mxu0 %v156_v45 }
  0x55   :  { %1135 = vmatpush3.msra.mxu1 %v188_v46  ;;  %1101 = vmatprep.subr.mxu0 %v171_v47 }
  0x56   :  { %1136 = vmatprep.subr.mxu1 %v203_v48  ;;  %1102 = vmatpush3.msra.mxu0 %v155_v49 }
  0x57   :  { %1137 = vmatpush3.msra.mxu1 %v187_v50  ;;  %1103 = vmatprep.subr.mxu0 %v170_v52 }
  0x58   :  { %1138 = vmatprep.subr.mxu1 %v202_v53  ;;  %1104 = vmatpush3.msra.mxu0 %v154_v54 }
  0x59   :  { %1139 = vmatpush3.msra.mxu1 %v186_v55 }
  0x5a   :  { %8 = vsyncpa [#allocation3], 0  ;;  %1105 = vmatprep.subr.mxu0 %v169_v56  ;;  %1140 = vmatprep.subr.mxu1 %v201_v57  ;;  %v152_v62 = vld [vmem:[%s2074_s1 + $0x428] sm:$0xff]  ;;  %v17_v0 = vld [vmem:[%s2073_s0 + $0x10] sm:$0xff]  ;;  %vm930_vm0 = vcmask 58368  }
  0x5b   :  { %v184_v63 = vld [vmem:[%s2074_s1 + $0x528] sm:$0xff]  ;;  %1106 = vmatpush3.msra.mxu0 %v153_v58  ;;  %1141 = vmatpush3.msra.mxu1 %v185_v59  ;;  %v167_v1 = vld [vmem:[%s2074_s1 + $0x4a0] sm:$0xff]  ;;  %v166_v5 = vld [vmem:[%s2074_s1 + $0x498] sm:$0xff]  ;;  %v320_v7 = vcombine.high %v17_v0, %v17_v0  ;;  %v327_v12 = vrot.slane %v17_v0, %v1415_v51 }
  0x5c   :  { %v199_v2 = vld [vmem:[%s2074_s1 + $0x5a0] sm:$0xff]  ;;  %1107 = vmatprep.subr.mxu0 %v168_v60  ;;  %1142 = vmatprep.subr.mxu1 %v200_v61  ;;  %v198_v6 = vld [vmem:[%s2074_s1 + $0x598] sm:$0xff]  ;;  %v165_v10 = vld [vmem:[%s2074_s1 + $0x490] sm:$0xff] }
  0x5d   :  { %v151_v3 = vld [vmem:[%s2074_s1 + $0x420] sm:$0xff]  ;;  %1108 = vmatpush3.msra.mxu0 %v152_v62  ;;  %1143 = vmatpush3.msra.mxu1 %v184_v63  ;;  %v150_v8 = vld [vmem:[%s2074_s1 + $0x418] sm:$0xff]  ;;  %v197_v11 = vld [vmem:[%s2074_s1 + $0x590] sm:$0xff]  ;;  %v334_v17 = vrot.slane %v320_v7, %v1415_v51  ;;  %v335_v22 = vcombine.high %v327_v12, %v327_v12 }
  0x5e   :  { %v183_v4 = vld [vmem:[%s2074_s1 + $0x520] sm:$0xff]  ;;  %1109 = vmatprep.subr.mxu0 %v167_v1  ;;  %1144 = vmatprep.subr.mxu1 %v199_v2  ;;  %v182_v9 = vld [vmem:[%s2074_s1 + $0x518] sm:$0xff]  ;;  %v149_v13 = vld [vmem:[%s2074_s1 + $0x410] sm:$0xff] }
  0x5f   :  { %1110 = vmatpush3.msra.mxu0 %v151_v3  ;;  %1145 = vmatpush3.msra.mxu1 %v183_v4  ;;  %v181_v14 = vld [vmem:[%s2074_s1 + $0x510] sm:$0xff]  ;;  %v164_v15 = vld [vmem:[%s2074_s1 + $0x488] sm:$0xff]  ;;  %v163_v20 = vld [vmem:[%s2074_s1 + $0x480] sm:$0xff]  ;;  %v336_v25 = vcombine.high %v334_v17, %v334_v17 }
  0x60   :  { %1111 = vmatprep.subr.mxu0 %v166_v5  ;;  %1146 = vmatprep.subr.mxu1 %v198_v6  ;;  %v196_v16 = vld [vmem:[%s2074_s1 + $0x588] sm:$0xff]  ;;  %v195_v21 = vld [vmem:[%s2074_s1 + $0x580] sm:$0xff]  ;;  %v242_v26 = vld [vmem:[%s2074_s1 + $0x6f8] sm:$0xff] }
  0x61   :  { %1112 = vmatpush3.msra.mxu0 %v150_v8  ;;  %1147 = vmatpush3.msra.mxu1 %v182_v9  ;;  %v148_v18 = vld [vmem:[%s2074_s1 + $0x408] sm:$0xff]  ;;  %v147_v23 = vld [vmem:[%s2074_s1 + $0x400] sm:$0xff]  ;;  %v274_v27 = vld [vmem:[%s2074_s1 + $0x7f8] sm:$0xff] }
  0x62   :  { %1113 = vmatprep.subr.mxu0 %v165_v10  ;;  %1148 = vmatprep.subr.mxu1 %v197_v11  ;;  %v180_v19 = vld [vmem:[%s2074_s1 + $0x508] sm:$0xff]  ;;  %v179_v24 = vld [vmem:[%s2074_s1 + $0x500] sm:$0xff]  ;;  %v226_v28 = vld [vmem:[%s2074_s1 + $0x678] sm:$0xff] }
  0x63   :  { %1114 = vmatpush3.msra.mxu0 %v149_v13  ;;  %1149 = vmatpush3.msra.mxu1 %v181_v14  ;;  %v258_v29 = vld [vmem:[%s2074_s1 + $0x778] sm:$0xff]  ;;  %v241_v30 = vld [vmem:[%s2074_s1 + $0x6f0] sm:$0xff]  ;;  %v240_v34 = vld [vmem:[%s2074_s1 + $0x6e8] sm:$0xff] }
  0x64   :  { %1115 = vmatprep.subr.mxu0 %v164_v15  ;;  %1150 = vmatprep.subr.mxu1 %v196_v16  ;;  %v273_v31 = vld [vmem:[%s2074_s1 + $0x7f0] sm:$0xff]  ;;  %v272_v35 = vld [vmem:[%s2074_s1 + $0x7e8] sm:$0xff]  ;;  %v239_v38 = vld [vmem:[%s2074_s1 + $0x6e0] sm:$0xff] }
  0x65   :  { %1116 = vmatpush3.msra.mxu0 %v148_v18  ;;  %1151 = vmatpush3.msra.mxu1 %v180_v19  ;;  %v225_v32 = vld [vmem:[%s2074_s1 + $0x670] sm:$0xff]  ;;  %v224_v36 = vld [vmem:[%s2074_s1 + $0x668] sm:$0xff]  ;;  %v271_v39 = vld [vmem:[%s2074_s1 + $0x7e0] sm:$0xff] }
  0x66   :  { %1117 = vmatprep.subr.mxu0 %v163_v20  ;;  %1152 = vmatprep.subr.mxu1 %v195_v21  ;;  %v257_v33 = vld [vmem:[%s2074_s1 + $0x770] sm:$0xff]  ;;  %v256_v37 = vld [vmem:[%s2074_s1 + $0x768] sm:$0xff]  ;;  %v223_v40 = vld [vmem:[%s2074_s1 + $0x660] sm:$0xff] }
  0x67   :  { %1118 = vmatpush3.msra.mxu0 %v147_v23  ;;  %714 = vmatprep.mubr.f32.mxu0 %v335_v22  ;;  %v255_v41 = vld [vmem:[%s2074_s1 + $0x760] sm:$0xff]  ;;  %v238_v42 = vld [vmem:[%s2074_s1 + $0x6d8] sm:$0xff]  ;;  %v237_v46 = vld [vmem:[%s2074_s1 + $0x6d0] sm:$0xff] }
  0x68   :  { %1153 = vmatpush3.msra.mxu1 %v179_v24  ;;  %715 = vmatmul.mubr.f32.vlgmr.msra.gmra.mxu0 %v327_v12  ;;  %v270_v43 = vld [vmem:[%s2074_s1 + $0x7d8] sm:$0xff]  ;;  %v269_v47 = vld [vmem:[%s2074_s1 + $0x7d0] sm:$0xff]  ;;  %v236_v50 = vld [vmem:[%s2074_s1 + $0x6c8] sm:$0xff] }
  0x69   :  { %784 = vmatprep.mubr.f32.mxu1 %v336_v25  ;;  %1157 = vmatprep.subr.mxu0 %v242_v26  ;;  %v222_v44 = vld [vmem:[%s2074_s1 + $0x658] sm:$0xff]  ;;  %v221_v48 = vld [vmem:[%s2074_s1 + $0x650] sm:$0xff]  ;;  %v268_v52 = vld [vmem:[%s2074_s1 + $0x7c8] sm:$0xff] }
  0x6a   :  { %1192 = vmatprep.subr.mxu1 %v274_v27  ;;  %785 = vmatmul.mubr.f32.vlgmr.msra.gmra.mxu1 %v334_v17  ;;  %v254_v45 = vld [vmem:[%s2074_s1 + $0x758] sm:$0xff]  ;;  %v253_v49 = vld [vmem:[%s2074_s1 + $0x750] sm:$0xff]  ;;  %v220_v53 = vld [vmem:[%s2074_s1 + $0x648] sm:$0xff] }
  0x6b   :  { %1158 = vmatpush3.msra.mxu0 %v226_v28  ;;  %1193 = vmatpush3.msra.mxu1 %v258_v29  ;;  %v252_v54 = vld [vmem:[%s2074_s1 + $0x748] sm:$0xff]  ;;  %v235_v55 = vld [vmem:[%s2074_s1 + $0x6c0] sm:$0xff]  ;;  %v234_v59 = vld [vmem:[%s2074_s1 + $0x6b8] sm:$0xff] }
  0x6c   :  { %1159 = vmatprep.subr.mxu0 %v241_v30  ;;  %1194 = vmatprep.subr.mxu1 %v273_v31  ;;  %v267_v56 = vld [vmem:[%s2074_s1 + $0x7c0] sm:$0xff]  ;;  %v266_v60 = vld [vmem:[%s2074_s1 + $0x7b8] sm:$0xff]  ;;  %v233_v63 = vld [vmem:[%s2074_s1 + $0x6b0] sm:$0xff] }
  0x6d   :  { %1160 = vmatpush3.msra.mxu0 %v225_v32  ;;  %1195 = vmatpush3.msra.mxu1 %v257_v33  ;;  %v219_v57 = vld [vmem:[%s2074_s1 + $0x640] sm:$0xff]  ;;  %v218_v61 = vld [vmem:[%s2074_s1 + $0x638] sm:$0xff]  ;;  %v265_v0 = vld [vmem:[%s2074_s1 + $0x7b0] sm:$0xff] }
  0x6e   :  { %1161 = vmatprep.subr.mxu0 %v240_v34  ;;  %1196 = vmatprep.subr.mxu1 %v272_v35  ;;  %v251_v58 = vld [vmem:[%s2074_s1 + $0x740] sm:$0xff]  ;;  %v250_v62 = vld [vmem:[%s2074_s1 + $0x738] sm:$0xff]  ;;  %v217_v1 = vld [vmem:[%s2074_s1 + $0x630] sm:$0xff] }
  0x6f   :  { %1162 = vmatpush3.msra.mxu0 %v224_v36  ;;  %1197 = vmatpush3.msra.mxu1 %v256_v37  ;;  %v249_v2 = vld [vmem:[%s2074_s1 + $0x730] sm:$0xff]  ;;  %v232_v3 = vld [vmem:[%s2074_s1 + $0x6a8] sm:$0xff]  ;;  %v18_v5 = vld [vmem:[%s2073_s0 + $0x18] sm:$0xff] }
  0x70   :  { %1163 = vmatprep.subr.mxu0 %v239_v38  ;;  %1198 = vmatprep.subr.mxu1 %v271_v39  ;;  %v264_v4 = vld [vmem:[%s2074_s1 + $0x7a8] sm:$0xff]  ;;  %v231_v8 = vld [vmem:[%s2074_s1 + $0x6a0] sm:$0xff]  ;;  %v337_v12 = vcombine.high %v18_v5, %v18_v5  ;;  %v230_v13 = vld [vmem:[%s2074_s1 + $0x698] sm:$0xff]  ;;  %v344_v19 = vrot.slane %v18_v5, %v1415_v51 }
  0x71   :  { %1164 = vmatpush3.msra.mxu0 %v223_v40  ;;  %1199 = vmatpush3.msra.mxu1 %v255_v41  ;;  %v216_v6 = vld [vmem:[%s2074_s1 + $0x628] sm:$0xff]  ;;  %v263_v9 = vld [vmem:[%s2074_s1 + $0x7a0] sm:$0xff]  ;;  %v262_v14 = vld [vmem:[%s2074_s1 + $0x798] sm:$0xff] }
  0x72   :  { %1165 = vmatprep.subr.mxu0 %v238_v42  ;;  %1200 = vmatprep.subr.mxu1 %v270_v43  ;;  %v248_v7 = vld [vmem:[%s2074_s1 + $0x728] sm:$0xff]  ;;  %v215_v10 = vld [vmem:[%s2074_s1 + $0x620] sm:$0xff]  ;;  %v214_v15 = vld [vmem:[%s2074_s1 + $0x618] sm:$0xff]  ;;  %v351_v22 = vrot.slane %v337_v12, %v1415_v51  ;;  %v352_v28 = vcombine.high %v344_v19, %v344_v19 }
  0x73   :  { %1166 = vmatpush3.msra.mxu0 %v222_v44  ;;  %1201 = vmatpush3.msra.mxu1 %v254_v45  ;;  %v247_v11 = vld [vmem:[%s2074_s1 + $0x720] sm:$0xff]  ;;  %v246_v16 = vld [vmem:[%s2074_s1 + $0x718] sm:$0xff]  ;;  %v229_v17 = vld [vmem:[%s2074_s1 + $0x690] sm:$0xff] }
  0x74   :  { %1167 = vmatprep.subr.mxu0 %v237_v46  ;;  %1202 = vmatprep.subr.mxu1 %v269_v47  ;;  %v261_v18 = vld [vmem:[%s2074_s1 + $0x790] sm:$0xff]  ;;  %v228_v23 = vld [vmem:[%s2074_s1 + $0x688] sm:$0xff]  ;;  %v227_v26 = vld [vmem:[%s2074_s1 + $0x680] sm:$0xff]  ;;  %v353_v30 = vcombine.high %v351_v22, %v351_v22 }
  0x75   :  { %1168 = vmatpush3.msra.mxu0 %v221_v48  ;;  %1203 = vmatpush3.msra.mxu1 %v253_v49  ;;  %v213_v20 = vld [vmem:[%s2074_s1 + $0x610] sm:$0xff]  ;;  %v260_v24 = vld [vmem:[%s2074_s1 + $0x788] sm:$0xff]  ;;  %v259_v27 = vld [vmem:[%s2074_s1 + $0x780] sm:$0xff] }
  0x76   :  { %1169 = vmatprep.subr.mxu0 %v236_v50  ;;  %1204 = vmatprep.subr.mxu1 %v268_v52  ;;  %v245_v21 = vld [vmem:[%s2074_s1 + $0x710] sm:$0xff]  ;;  %v212_v25 = vld [vmem:[%s2074_s1 + $0x608] sm:$0xff]  ;;  %v211_v29 = vld [vmem:[%s2074_s1 + $0x600] sm:$0xff] }
  0x77   :  { %1170 = vmatpush3.msra.mxu0 %v220_v53  ;;  %1205 = vmatpush3.msra.mxu1 %v252_v54  ;;  %v244_v51 = vld [vmem:[%s2074_s1 + $0x708] sm:$0xff]  ;;  %v243_v31 = vld [vmem:[%s2074_s1 + $0x700] sm:$0xff]  ;;  %s1256_s1 = smov [#allocation2]  }
  0x78   :  { %1171 = vmatprep.subr.mxu0 %v235_v55  ;;  %1206 = vmatprep.subr.mxu1 %v267_v56  ;;  %v946_v37 = vld [vmem:[%s2075_s2] ss:$0 sm:$0xff]  ;;  %s938_s2 = sshll.u32 %s1256_s1, 4  ;;  %s939_s2 = int_to_ptr.vmem [resolvable:$true] %s938_s2 }
  0x79   :  { %1172 = vmatpush3.msra.mxu0 %v219_v57  ;;  %1207 = vmatpush3.msra.mxu1 %v251_v58  ;;  %s1233_s19 = scalar_lea.vmem %s939_s2, 32  ;;  %p1238_p1 = scmp.lt.s32.totalorder %s939_s2, %s939_s2 }
  0x7a   :  { %1173 = vmatprep.subr.mxu0 %v234_v59  ;;  %1208 = vmatprep.subr.mxu1 %v266_v60  ;;  %p1234_p0 = scmp.ne.s32.totalorder %s939_s2, %s1233_s19  ;;  %p1239_p2 = scmp.lt.s32.totalorder %s1233_s19, %s1233_s19 }
  0x7b   :  { %1174 = vmatpush3.msra.mxu0 %v218_v61  ;;  %1209 = vmatpush3.msra.mxu1 %v250_v62 }
  0x7c   :  { %1175 = vmatprep.subr.mxu0 %v233_v63  ;;  %1210 = vmatprep.subr.mxu1 %v265_v0  ;;  %p1240_p3 = por %p1239_p2, %p1238_p1 }
  0x7d   :  { %1176 = vmatpush3.msra.mxu0 %v217_v1  ;;  %1211 = vmatpush3.msra.mxu1 %v249_v2 }
  0x7e   :  { %1177 = vmatprep.subr.mxu0 %v232_v3  ;;  %1212 = vmatprep.subr.mxu1 %v264_v4  ;;  %p1241_p4 = pnand %p1240_p3, %p1234_p0 }
  0x7f   :  { %1178 = vmatpush3.msra.mxu0 %v216_v6  ;;  %1213 = vmatpush3.msra.mxu1 %v248_v7 }
  0x80   :  { %1179 = vmatprep.subr.mxu0 %v231_v8  ;;  %1214 = vmatprep.subr.mxu1 %v263_v9 }
  0x81   :  { %1180 = vmatpush3.msra.mxu0 %v215_v10  ;;  %1215 = vmatpush3.msra.mxu1 %v247_v11 }
  0x82   :  { %1181 = vmatprep.subr.mxu0 %v230_v13  ;;  %1216 = vmatprep.subr.mxu1 %v262_v14 }
  0x83   :  { %1182 = vmatpush3.msra.mxu0 %v214_v15  ;;  %1217 = vmatpush3.msra.mxu1 %v246_v16 }
  0x84   :  { %1183 = vmatprep.subr.mxu0 %v229_v17  ;;  %1218 = vmatprep.subr.mxu1 %v261_v18 }
  0x85   :  { %1184 = vmatpush3.msra.mxu0 %v213_v20  ;;  %1219 = vmatpush3.msra.mxu1 %v245_v21 }
  0x86   :  { %1185 = vmatprep.subr.mxu0 %v228_v23  ;;  %1220 = vmatprep.subr.mxu1 %v260_v24 }
  0x87   :  { %1186 = vmatpush3.msra.mxu0 %v212_v25  ;;  %1221 = vmatpush3.msra.mxu1 %v244_v51 }
  0x88   :  { %1187 = vmatprep.subr.mxu0 %v227_v26  ;;  %1222 = vmatprep.subr.mxu1 %v259_v27 }
  0x89   :  { %1188 = vmatpush3.msra.mxu0 %v211_v29  ;;  %854 = vmatprep.mubr.f32.mxu0 %v352_v28 }
  0x8a   :  { %1223 = vmatpush3.msra.mxu1 %v243_v31  ;;  %924 = vmatprep.mubr.f32.mxu1 %v353_v30 }
  0x8b   :  { %855 = vmatmul.mubr.f32.vlgmr.msra.gmra.mxu0 %v344_v19  ;;  %925 = vmatmul.mubr.f32.vlgmr.msra.gmra.mxu1 %v351_v22 }
  0xe4   :  { %v979_v32 = vpop.f32.mrf.mxu0 }
  0xe6   :  { %v1014_v33 = vpop.f32.mrf.mxu1  ;;  %v980_v34 = vpop.f32.mrf.mxu0 }
  0xe7   :  { %v981_v36 = vadd.f32 %v980_v34, %v979_v32 }
  0xe8   :  { %v1015_v38 = vpop.f32.mrf.mxu1 }
  0xe9   :  { %v437_v41 = vadd.f32 %v981_v36, %v946_v37  ;;  %v1016_v42 = vadd.f32 %v1015_v38, %v1014_v33 }
  0xeb   :  { %v507_v46 = vadd.f32 %v1016_v42, %v437_v41 }
 0x106   :  { %v1049_v35 = vpop.f32.mrf.mxu0 }
 0x108   :  { %v1084_v39 = vpop.f32.mrf.mxu1  ;;  %v1050_v40 = vpop.f32.mrf.mxu0 }
 0x109   :  { %v1051_v44 = vadd.f32 %v1050_v40, %v1049_v35 }
 0x10a   :  { %v1085_v45 = vpop.f32.mrf.mxu1 }
 0x10b   :  { %v577_v49 = vadd.f32 %v1051_v44, %v507_v46  ;;  %v1086_v50 = vadd.f32 %v1085_v45, %v1084_v39 }
 0x10d   :  { %v647_v54 = vadd.f32 %v1086_v50, %v577_v49 }
 0x128   :  { %v1119_v43 = vpop.f32.mrf.mxu0 }
 0x12a   :  { %v1154_v47 = vpop.f32.mrf.mxu1  ;;  %v1120_v48 = vpop.f32.mrf.mxu0 }
 0x12b   :  { %v1121_v52 = vadd.f32 %v1120_v48, %v1119_v43 }
 0x12c   :  { %v1155_v53 = vpop.f32.mrf.mxu1 }
 0x12d   :  { %v717_v55 = vadd.f32 %v1121_v52, %v647_v54  ;;  %v1156_v56 = vadd.f32 %v1155_v53, %v1154_v47 }
 0x12f   :  { %v787_v61 = vadd.f32 %v1156_v56, %v717_v55 }
 0x14b   :  { %v1189_v57 = vpop.f32.mrf.mxu0  ;;  %v1224_v58 = vpop.f32.mrf.mxu1 }
 0x14d   :  { %v1190_v59 = vpop.f32.mrf.mxu0  ;;  %v1225_v60 = vpop.f32.mrf.mxu1 }
 0x14e   :  { %v1191_v62 = vadd.f32 %v1190_v59, %v1189_v57  ;;  %v1226_v0 = vadd.f32 %v1225_v60, %v1224_v58 }
 0x150   :  { %v857_v63 = vadd.f32 %v1191_v62, %v787_v61 }
 0x152   :  { %v927_v1 = vadd.f32 %v1226_v0, %v857_v63 }
 0x154   :  { %931 = vst.msk [vmem:[#allocation2] sm:$0x3] %vm930_vm0, %v927_v1 }
 0x155   :  { %1244 = shalt.err (!%p1241_p4)
}
 0x156   :  { %941 = dma.vmem_to_hbm [thread:$0]  %s939_s2, 32, %s2076_s3, [#allocation3]  }
 0x157   :  { %1253 = dma.done.wait [#allocation3], 32  }
 0x158   :  { %1254 = vsyncadd [#allocation3], 4294967264 }
 0x159   :  { %945 = vsyncpa [#allocation3], 1 }

// kernel: deep_svdd_2d_forward.10
= control target key start
LH: loop header
LB: loop body
LE: loop exit
PB: predicated region body
PF: predicated region fallthrough
CT: control target
= control target key end

     0   :  { %s2590_s12 = smov 0   ;;  %s2592_s13 = smov 0   ;;  %s4245_s0 = inlined_call_operand.vmem [shape: f32[2,512], index: 0, kind: input, shape index: {}]   ;;  %s4246_s1 = inlined_call_operand.vmem [shape: f32[512,2048], index: 1, kind: input, shape index: {}]   ;;  %s4247_s2 = inlined_call_operand.vmem [shape: f32[1,2048], index: 2, kind: input, shape index: {}]   ;;  %s4248_s3 = inlined_call_operand.vmem [shape: f32[2,2048], index: 3, kind: output, shape index: {}]  }
   0x1   :  { %s2594_s14 = smov 0  }
   0x2 LB: > { %s2504_s15 = sadd.s32 4294967295, %s2567_s14   ;;  %s2607_s16 = sadd.s32 1, %s2567_s14   ;;  %s2567_s14 = sphi %s2594_s14, %s4251_s14   ;;  %s2563_s13 = sphi %s2592_s13, %s4250_s13   ;;  %s2559_s12 = sphi %s2590_s12, %s4249_s12  }
   0x3   : > { %s38_s17 = ssub.s32 %s2567_s14, %s2607_s16  ;;  %s41_s18 = sadd.s32 1, %s2563_s13 }
   0x4   : > { %p39_p0 = scmp.eq.s32.totalorder %s38_s17, 0  ;;  %p48_p1 = scmp.ne.s32.totalorder %s2563_s13, %s2559_s12 }
   0x5   : > { %p49_p2 = scmp.eq.s32.totalorder %s2567_s14, 0  ;;  %p2507_p4 = scmp.ge.s32.totalorder %s2567_s14, 2 }
   0x6   : > { %s2616_s19 = scalar_select %p39_p0, %s2563_s13, %s41_s18  }
   0x7   : > { %p50_p3 = por %p49_p2, %p48_p1  ;;  %129 = sbr.rel (%p2507_p4) target bundleno = 272 (0x110), region = 20 }
   0xc   : > { %132 = sbr.rel (!%p50_p3) target bundleno = 272 (0x110), region = 24  ;;  %s134_s20 = sand.u32 (%p50_p3), 1, %s2563_s13  }
   0xd   : > { %s2518_s21 = sshll.u32 (%p50_p3), %s2567_s14, 6  ;;  %s2508_s22 = sshll.u32 (%p50_p3), %s134_s20, 12 }
   0xe   : > { %s2624_s25 = scalar_lea.vmem (%p50_p3), %s4246_s1, %s2518_s21  ;;  %s2629_s26 = scalar_lea.vmem (%p50_p3), [#allocation2], %s2508_s22 }
   0xf   : > { %v152_v0 = vld [vmem:[%s2624_s25] sm:$0xff] (%p50_p3)  ;;  %v154_v1 = vld [vmem:[%s2624_s25 + $0x8] sm:$0xff] (%p50_p3)  ;;  %v156_v2 = vld [vmem:[%s2624_s25 + $0x10] sm:$0xff] (%p50_p3) }
  0x10   : > { %153 = vst [vmem:[%s2629_s26] sm:$0xff] (%p50_p3), %v152_v0  ;;  %155 = vst [vmem:[%s2629_s26 + $0x8] sm:$0xff] (%p50_p3), %v154_v1  ;;  %v158_v3 = vld [vmem:[%s2624_s25 + $0x18] sm:$0xff] (%p50_p3)  ;;  %v160_v4 = vld [vmem:[%s2624_s25 + $0x20] sm:$0xff] (%p50_p3) }
  0x11   : > { %157 = vst [vmem:[%s2629_s26 + $0x10] sm:$0xff] %v156_v2  ;;  %v162_v5 = vld [vmem:[%s2624_s25 + $0x28] sm:$0xff]  ;;  %159 = vst [vmem:[%s2629_s26 + $0x18] sm:$0xff] %v158_v3  ;;  %v164_v6 = vld [vmem:[%s2624_s25 + $0x30] sm:$0xff] }
  0x12   : > { %161 = vst [vmem:[%s2629_s26 + $0x20] sm:$0xff] %v160_v4  ;;  %163 = vst [vmem:[%s2629_s26 + $0x28] sm:$0xff] %v162_v5  ;;  %v166_v7 = vld [vmem:[%s2624_s25 + $0x38] sm:$0xff]  ;;  %v168_v8 = vld [vmem:[%s2624_s25 + $0x80] sm:$0xff] }
  0x13   : > { %165 = vst [vmem:[%s2629_s26 + $0x30] sm:$0xff] %v164_v6  ;;  %167 = vst [vmem:[%s2629_s26 + $0x38] sm:$0xff] %v166_v7  ;;  %v170_v9 = vld [vmem:[%s2624_s25 + $0x88] sm:$0xff]  ;;  %v172_v10 = vld [vmem:[%s2624_s25 + $0x90] sm:$0xff] }
  0x14   : > { %169 = vst [vmem:[%s2629_s26 + $0x40] sm:$0xff] %v168_v8  ;;  %v174_v11 = vld [vmem:[%s2624_s25 + $0x98] sm:$0xff]  ;;  %171 = vst [vmem:[%s2629_s26 + $0x48] sm:$0xff] %v170_v9  ;;  %v176_v12 = vld [vmem:[%s2624_s25 + $0xa0] sm:$0xff] }
  0x15   : > { %173 = vst [vmem:[%s2629_s26 + $0x50] sm:$0xff] %v172_v10  ;;  %175 = vst [vmem:[%s2629_s26 + $0x58] sm:$0xff] %v174_v11  ;;  %v178_v13 = vld [vmem:[%s2624_s25 + $0xa8] sm:$0xff]  ;;  %v180_v14 = vld [vmem:[%s2624_s25 + $0xb0] sm:$0xff] }
  0x16   : > { %177 = vst [vmem:[%s2629_s26 + $0x60] sm:$0xff] %v176_v12  ;;  %179 = vst [vmem:[%s2629_s26 + $0x68] sm:$0xff] %v178_v13  ;;  %v182_v15 = vld [vmem:[%s2624_s25 + $0xb8] sm:$0xff]  ;;  %v184_v16 = vld [vmem:[%s2624_s25 + $0x100] sm:$0xff] }
  0x17   : > { %181 = vst [vmem:[%s2629_s26 + $0x70] sm:$0xff] %v180_v14  ;;  %v186_v17 = vld [vmem:[%s2624_s25 + $0x108] sm:$0xff]  ;;  %183 = vst [vmem:[%s2629_s26 + $0x78] sm:$0xff] %v182_v15  ;;  %v188_v18 = vld [vmem:[%s2624_s25 + $0x110] sm:$0xff] }
  0x18   : > { %185 = vst [vmem:[%s2629_s26 + $0x80] sm:$0xff] %v184_v16  ;;  %187 = vst [vmem:[%s2629_s26 + $0x88] sm:$0xff] %v186_v17  ;;  %v190_v19 = vld [vmem:[%s2624_s25 + $0x118] sm:$0xff]  ;;  %v192_v20 = vld [vmem:[%s2624_s25 + $0x120] sm:$0xff] }
  0x19   : > { %189 = vst [vmem:[%s2629_s26 + $0x90] sm:$0xff] %v188_v18  ;;  %191 = vst [vmem:[%s2629_s26 + $0x98] sm:$0xff] %v190_v19  ;;  %v194_v21 = vld [vmem:[%s2624_s25 + $0x128] sm:$0xff]  ;;  %v196_v22 = vld [vmem:[%s2624_s25 + $0x130] sm:$0xff] }
  0x1a   : > { %193 = vst [vmem:[%s2629_s26 + $0xa0] sm:$0xff] %v192_v20  ;;  %v198_v23 = vld [vmem:[%s2624_s25 + $0x138] sm:$0xff]  ;;  %195 = vst [vmem:[%s2629_s26 + $0xa8] sm:$0xff] %v194_v21  ;;  %v200_v24 = vld [vmem:[%s2624_s25 + $0x180] sm:$0xff] }
  0x1b   : > { %197 = vst [vmem:[%s2629_s26 + $0xb0] sm:$0xff] %v196_v22  ;;  %199 = vst [vmem:[%s2629_s26 + $0xb8] sm:$0xff] %v198_v23  ;;  %v202_v25 = vld [vmem:[%s2624_s25 + $0x188] sm:$0xff]  ;;  %v204_v26 = vld [vmem:[%s2624_s25 + $0x190] sm:$0xff] }
  0x1c   : > { %201 = vst [vmem:[%s2629_s26 + $0xc0] sm:$0xff] %v200_v24  ;;  %203 = vst [vmem:[%s2629_s26 + $0xc8] sm:$0xff] %v202_v25  ;;  %v206_v27 = vld [vmem:[%s2624_s25 + $0x198] sm:$0xff]  ;;  %v208_v28 = vld [vmem:[%s2624_s25 + $0x1a0] sm:$0xff] }
  0x1d   : > { %205 = vst [vmem:[%s2629_s26 + $0xd0] sm:$0xff] %v204_v26  ;;  %v210_v29 = vld [vmem:[%s2624_s25 + $0x1a8] sm:$0xff]  ;;  %207 = vst [vmem:[%s2629_s26 + $0xd8] sm:$0xff] %v206_v27  ;;  %v212_v30 = vld [vmem:[%s2624_s25 + $0x1b0] sm:$0xff] }
  0x1e   : > { %209 = vst [vmem:[%s2629_s26 + $0xe0] sm:$0xff] %v208_v28  ;;  %211 = vst [vmem:[%s2629_s26 + $0xe8] sm:$0xff] %v210_v29  ;;  %v214_v31 = vld [vmem:[%s2624_s25 + $0x1b8] sm:$0xff]  ;;  %v216_v32 = vld [vmem:[%s2624_s25 + $0x200] sm:$0xff] }
  0x1f   : > { %213 = vst [vmem:[%s2629_s26 + $0xf0] sm:$0xff] %v212_v30  ;;  %215 = vst [vmem:[%s2629_s26 + $0xf8] sm:$0xff] %v214_v31  ;;  %v218_v33 = vld [vmem:[%s2624_s25 + $0x208] sm:$0xff]  ;;  %v220_v34 = vld [vmem:[%s2624_s25 + $0x210] sm:$0xff] }
  0x20   : > { %217 = vst [vmem:[%s2629_s26 + $0x100] sm:$0xff] %v216_v32  ;;  %v222_v35 = vld [vmem:[%s2624_s25 + $0x218] sm:$0xff]  ;;  %219 = vst [vmem:[%s2629_s26 + $0x108] sm:$0xff] %v218_v33  ;;  %v224_v36 = vld [vmem:[%s2624_s25 + $0x220] sm:$0xff] }
  0x21   : > { %221 = vst [vmem:[%s2629_s26 + $0x110] sm:$0xff] %v220_v34  ;;  %223 = vst [vmem:[%s2629_s26 + $0x118] sm:$0xff] %v222_v35  ;;  %v226_v37 = vld [vmem:[%s2624_s25 + $0x228] sm:$0xff]  ;;  %v228_v38 = vld [vmem:[%s2624_s25 + $0x230] sm:$0xff] }
  0x22   : > { %225 = vst [vmem:[%s2629_s26 + $0x120] sm:$0xff] %v224_v36  ;;  %227 = vst [vmem:[%s2629_s26 + $0x128] sm:$0xff] %v226_v37  ;;  %v230_v39 = vld [vmem:[%s2624_s25 + $0x238] sm:$0xff]  ;;  %v232_v40 = vld [vmem:[%s2624_s25 + $0x280] sm:$0xff] }
  0x23   : > { %229 = vst [vmem:[%s2629_s26 + $0x130] sm:$0xff] %v228_v38  ;;  %v234_v41 = vld [vmem:[%s2624_s25 + $0x288] sm:$0xff]  ;;  %231 = vst [vmem:[%s2629_s26 + $0x138] sm:$0xff] %v230_v39  ;;  %v236_v42 = vld [vmem:[%s2624_s25 + $0x290] sm:$0xff] }
  0x24   : > { %233 = vst [vmem:[%s2629_s26 + $0x140] sm:$0xff] %v232_v40  ;;  %235 = vst [vmem:[%s2629_s26 + $0x148] sm:$0xff] %v234_v41  ;;  %v238_v43 = vld [vmem:[%s2624_s25 + $0x298] sm:$0xff]  ;;  %v240_v44 = vld [vmem:[%s2624_s25 + $0x2a0] sm:$0xff] }
  0x25   : > { %237 = vst [vmem:[%s2629_s26 + $0x150] sm:$0xff] %v236_v42  ;;  %239 = vst [vmem:[%s2629_s26 + $0x158] sm:$0xff] %v238_v43  ;;  %v242_v45 = vld [vmem:[%s2624_s25 + $0x2a8] sm:$0xff]  ;;  %v244_v46 = vld [vmem:[%s2624_s25 + $0x2b0] sm:$0xff] }
  0x26   : > { %241 = vst [vmem:[%s2629_s26 + $0x160] sm:$0xff] %v240_v44  ;;  %v246_v47 = vld [vmem:[%s2624_s25 + $0x2b8] sm:$0xff]  ;;  %243 = vst [vmem:[%s2629_s26 + $0x168] sm:$0xff] %v242_v45  ;;  %v248_v48 = vld [vmem:[%s2624_s25 + $0x300] sm:$0xff] }
  0x27   : > { %245 = vst [vmem:[%s2629_s26 + $0x170] sm:$0xff] %v244_v46  ;;  %247 = vst [vmem:[%s2629_s26 + $0x178] sm:$0xff] %v246_v47  ;;  %v250_v49 = vld [vmem:[%s2624_s25 + $0x308] sm:$0xff]  ;;  %v252_v50 = vld [vmem:[%s2624_s25 + $0x310] sm:$0xff] }
  0x28   : > { %249 = vst [vmem:[%s2629_s26 + $0x180] sm:$0xff] %v248_v48  ;;  %251 = vst [vmem:[%s2629_s26 + $0x188] sm:$0xff] %v250_v49  ;;  %v254_v51 = vld [vmem:[%s2624_s25 + $0x318] sm:$0xff]  ;;  %v256_v52 = vld [vmem:[%s2624_s25 + $0x320] sm:$0xff] }
  0x29   : > { %253 = vst [vmem:[%s2629_s26 + $0x190] sm:$0xff] %v252_v50  ;;  %v258_v53 = vld [vmem:[%s2624_s25 + $0x328] sm:$0xff]  ;;  %255 = vst [vmem:[%s2629_s26 + $0x198] sm:$0xff] %v254_v51  ;;  %v260_v54 = vld [vmem:[%s2624_s25 + $0x330] sm:$0xff] }
  0x2a   : > { %257 = vst [vmem:[%s2629_s26 + $0x1a0] sm:$0xff] %v256_v52  ;;  %259 = vst [vmem:[%s2629_s26 + $0x1a8] sm:$0xff] %v258_v53  ;;  %v262_v55 = vld [vmem:[%s2624_s25 + $0x338] sm:$0xff]  ;;  %v264_v56 = vld [vmem:[%s2624_s25 + $0x380] sm:$0xff] }
  0x2b   : > { %261 = vst [vmem:[%s2629_s26 + $0x1b0] sm:$0xff] %v260_v54  ;;  %263 = vst [vmem:[%s2629_s26 + $0x1b8] sm:$0xff] %v262_v55  ;;  %v266_v57 = vld [vmem:[%s2624_s25 + $0x388] sm:$0xff]  ;;  %v268_v58 = vld [vmem:[%s2624_s25 + $0x390] sm:$0xff] }
  0x2c   : > { %265 = vst [vmem:[%s2629_s26 + $0x1c0] sm:$0xff] %v264_v56  ;;  %v270_v59 = vld [vmem:[%s2624_s25 + $0x398] sm:$0xff]  ;;  %267 = vst [vmem:[%s2629_s26 + $0x1c8] sm:$0xff] %v266_v57  ;;  %v272_v60 = vld [vmem:[%s2624_s25 + $0x3a0] sm:$0xff] }
  0x2d   : > { %269 = vst [vmem:[%s2629_s26 + $0x1d0] sm:$0xff] %v268_v58  ;;  %271 = vst [vmem:[%s2629_s26 + $0x1d8] sm:$0xff] %v270_v59  ;;  %v274_v61 = vld [vmem:[%s2624_s25 + $0x3a8] sm:$0xff]  ;;  %v276_v62 = vld [vmem:[%s2624_s25 + $0x3b0] sm:$0xff] }
  0x2e   : > { %273 = vst [vmem:[%s2629_s26 + $0x1e0] sm:$0xff] %v272_v60  ;;  %275 = vst [vmem:[%s2629_s26 + $0x1e8] sm:$0xff] %v274_v61  ;;  %v278_v63 = vld [vmem:[%s2624_s25 + $0x3b8] sm:$0xff]  ;;  %v280_v0 = vld [vmem:[%s2624_s25 + $0x400] sm:$0xff] }
  0x2f   : > { %277 = vst [vmem:[%s2629_s26 + $0x1f0] sm:$0xff] %v276_v62  ;;  %v282_v1 = vld [vmem:[%s2624_s25 + $0x408] sm:$0xff]  ;;  %279 = vst [vmem:[%s2629_s26 + $0x1f8] sm:$0xff] %v278_v63  ;;  %v284_v2 = vld [vmem:[%s2624_s25 + $0x410] sm:$0xff] }
  0x30   : > { %281 = vst [vmem:[%s2629_s26 + $0x200] sm:$0xff] %v280_v0  ;;  %283 = vst [vmem:[%s2629_s26 + $0x208] sm:$0xff] %v282_v1  ;;  %v286_v3 = vld [vmem:[%s2624_s25 + $0x418] sm:$0xff]  ;;  %v288_v4 = vld [vmem:[%s2624_s25 + $0x420] sm:$0xff] }
  0x31   : > { %285 = vst [vmem:[%s2629_s26 + $0x210] sm:$0xff] %v284_v2  ;;  %287 = vst [vmem:[%s2629_s26 + $0x218] sm:$0xff] %v286_v3  ;;  %v290_v5 = vld [vmem:[%s2624_s25 + $0x428] sm:$0xff]  ;;  %v292_v6 = vld [vmem:[%s2624_s25 + $0x430] sm:$0xff] }
  0x32   : > { %289 = vst [vmem:[%s2629_s26 + $0x220] sm:$0xff] %v288_v4  ;;  %v294_v7 = vld [vmem:[%s2624_s25 + $0x438] sm:$0xff]  ;;  %291 = vst [vmem:[%s2629_s26 + $0x228] sm:$0xff] %v290_v5  ;;  %v296_v8 = vld [vmem:[%s2624_s25 + $0x480] sm:$0xff] }
  0x33   : > { %293 = vst [vmem:[%s2629_s26 + $0x230] sm:$0xff] %v292_v6  ;;  %295 = vst [vmem:[%s2629_s26 + $0x238] sm:$0xff] %v294_v7  ;;  %v298_v9 = vld [vmem:[%s2624_s25 + $0x488] sm:$0xff]  ;;  %v300_v10 = vld [vmem:[%s2624_s25 + $0x490] sm:$0xff] }
  0x34   : > { %297 = vst [vmem:[%s2629_s26 + $0x240] sm:$0xff] %v296_v8  ;;  %299 = vst [vmem:[%s2629_s26 + $0x248] sm:$0xff] %v298_v9  ;;  %v302_v11 = vld [vmem:[%s2624_s25 + $0x498] sm:$0xff]  ;;  %v304_v12 = vld [vmem:[%s2624_s25 + $0x4a0] sm:$0xff] }
  0x35   : > { %301 = vst [vmem:[%s2629_s26 + $0x250] sm:$0xff] %v300_v10  ;;  %v306_v13 = vld [vmem:[%s2624_s25 + $0x4a8] sm:$0xff]  ;;  %303 = vst [vmem:[%s2629_s26 + $0x258] sm:$0xff] %v302_v11  ;;  %v308_v14 = vld [vmem:[%s2624_s25 + $0x4b0] sm:$0xff] }
  0x36   : > { %305 = vst [vmem:[%s2629_s26 + $0x260] sm:$0xff] %v304_v12  ;;  %307 = vst [vmem:[%s2629_s26 + $0x268] sm:$0xff] %v306_v13  ;;  %v310_v15 = vld [vmem:[%s2624_s25 + $0x4b8] sm:$0xff]  ;;  %v312_v16 = vld [vmem:[%s2624_s25 + $0x500] sm:$0xff] }
  0x37   : > { %309 = vst [vmem:[%s2629_s26 + $0x270] sm:$0xff] %v308_v14  ;;  %311 = vst [vmem:[%s2629_s26 + $0x278] sm:$0xff] %v310_v15  ;;  %v314_v17 = vld [vmem:[%s2624_s25 + $0x508] sm:$0xff]  ;;  %v316_v18 = vld [vmem:[%s2624_s25 + $0x510] sm:$0xff] }
  0x38   : > { %313 = vst [vmem:[%s2629_s26 + $0x280] sm:$0xff] %v312_v16  ;;  %v318_v19 = vld [vmem:[%s2624_s25 + $0x518] sm:$0xff]  ;;  %315 = vst [vmem:[%s2629_s26 + $0x288] sm:$0xff] %v314_v17  ;;  %v320_v20 = vld [vmem:[%s2624_s25 + $0x520] sm:$0xff] }
  0x39   : > { %317 = vst [vmem:[%s2629_s26 + $0x290] sm:$0xff] %v316_v18  ;;  %319 = vst [vmem:[%s2629_s26 + $0x298] sm:$0xff] %v318_v19  ;;  %v322_v21 = vld [vmem:[%s2624_s25 + $0x528] sm:$0xff]  ;;  %v324_v22 = vld [vmem:[%s2624_s25 + $0x530] sm:$0xff] }
  0x3a   : > { %321 = vst [vmem:[%s2629_s26 + $0x2a0] sm:$0xff] %v320_v20  ;;  %323 = vst [vmem:[%s2629_s26 + $0x2a8] sm:$0xff] %v322_v21  ;;  %v326_v23 = vld [vmem:[%s2624_s25 + $0x538] sm:$0xff]  ;;  %v328_v24 = vld [vmem:[%s2624_s25 + $0x580] sm:$0xff] }
  0x3b   : > { %325 = vst [vmem:[%s2629_s26 + $0x2b0] sm:$0xff] %v324_v22  ;;  %v330_v25 = vld [vmem:[%s2624_s25 + $0x588] sm:$0xff]  ;;  %327 = vst [vmem:[%s2629_s26 + $0x2b8] sm:$0xff] %v326_v23  ;;  %v332_v26 = vld [vmem:[%s2624_s25 + $0x590] sm:$0xff] }
  0x3c   : > { %329 = vst [vmem:[%s2629_s26 + $0x2c0] sm:$0xff] %v328_v24  ;;  %331 = vst [vmem:[%s2629_s26 + $0x2c8] sm:$0xff] %v330_v25  ;;  %v334_v27 = vld [vmem:[%s2624_s25 + $0x598] sm:$0xff]  ;;  %v336_v28 = vld [vmem:[%s2624_s25 + $0x5a0] sm:$0xff] }
  0x3d   : > { %333 = vst [vmem:[%s2629_s26 + $0x2d0] sm:$0xff] %v332_v26  ;;  %335 = vst [vmem:[%s2629_s26 + $0x2d8] sm:$0xff] %v334_v27  ;;  %v338_v29 = vld [vmem:[%s2624_s25 + $0x5a8] sm:$0xff]  ;;  %v340_v30 = vld [vmem:[%s2624_s25 + $0x5b0] sm:$0xff] }
  0x3e   : > { %337 = vst [vmem:[%s2629_s26 + $0x2e0] sm:$0xff] %v336_v28  ;;  %v342_v31 = vld [vmem:[%s2624_s25 + $0x5b8] sm:$0xff]  ;;  %339 = vst [vmem:[%s2629_s26 + $0x2e8] sm:$0xff] %v338_v29  ;;  %v344_v32 = vld [vmem:[%s2624_s25 + $0x600] sm:$0xff] }
  0x3f   : > { %341 = vst [vmem:[%s2629_s26 + $0x2f0] sm:$0xff] %v340_v30  ;;  %343 = vst [vmem:[%s2629_s26 + $0x2f8] sm:$0xff] %v342_v31  ;;  %v346_v33 = vld [vmem:[%s2624_s25 + $0x608] sm:$0xff]  ;;  %v348_v34 = vld [vmem:[%s2624_s25 + $0x610] sm:$0xff] }
  0x40   : > { %345 = vst [vmem:[%s2629_s26 + $0x300] sm:$0xff] %v344_v32  ;;  %347 = vst [vmem:[%s2629_s26 + $0x308] sm:$0xff] %v346_v33  ;;  %v350_v35 = vld [vmem:[%s2624_s25 + $0x618] sm:$0xff]  ;;  %v352_v36 = vld [vmem:[%s2624_s25 + $0x620] sm:$0xff] }
  0x41   : > { %349 = vst [vmem:[%s2629_s26 + $0x310] sm:$0xff] %v348_v34  ;;  %v354_v37 = vld [vmem:[%s2624_s25 + $0x628] sm:$0xff]  ;;  %351 = vst [vmem:[%s2629_s26 + $0x318] sm:$0xff] %v350_v35  ;;  %v356_v38 = vld [vmem:[%s2624_s25 + $0x630] sm:$0xff] }
  0x42   : > { %353 = vst [vmem:[%s2629_s26 + $0x320] sm:$0xff] %v352_v36  ;;  %355 = vst [vmem:[%s2629_s26 + $0x328] sm:$0xff] %v354_v37  ;;  %v358_v39 = vld [vmem:[%s2624_s25 + $0x638] sm:$0xff]  ;;  %v360_v40 = vld [vmem:[%s2624_s25 + $0x680] sm:$0xff] }
  0x43   : > { %357 = vst [vmem:[%s2629_s26 + $0x330] sm:$0xff] %v356_v38  ;;  %359 = vst [vmem:[%s2629_s26 + $0x338] sm:$0xff] %v358_v39  ;;  %v362_v41 = vld [vmem:[%s2624_s25 + $0x688] sm:$0xff]  ;;  %v364_v42 = vld [vmem:[%s2624_s25 + $0x690] sm:$0xff] }
  0x44   : > { %361 = vst [vmem:[%s2629_s26 + $0x340] sm:$0xff] %v360_v40  ;;  %v366_v43 = vld [vmem:[%s2624_s25 + $0x698] sm:$0xff]  ;;  %363 = vst [vmem:[%s2629_s26 + $0x348] sm:$0xff] %v362_v41  ;;  %v368_v44 = vld [vmem:[%s2624_s25 + $0x6a0] sm:$0xff] }
  0x45   : > { %365 = vst [vmem:[%s2629_s26 + $0x350] sm:$0xff] %v364_v42  ;;  %367 = vst [vmem:[%s2629_s26 + $0x358] sm:$0xff] %v366_v43  ;;  %v370_v45 = vld [vmem:[%s2624_s25 + $0x6a8] sm:$0xff]  ;;  %v372_v46 = vld [vmem:[%s2624_s25 + $0x6b0] sm:$0xff] }
  0x46   : > { %369 = vst [vmem:[%s2629_s26 + $0x360] sm:$0xff] %v368_v44  ;;  %371 = vst [vmem:[%s2629_s26 + $0x368] sm:$0xff] %v370_v45  ;;  %v374_v47 = vld [vmem:[%s2624_s25 + $0x6b8] sm:$0xff]  ;;  %v376_v48 = vld [vmem:[%s2624_s25 + $0x700] sm:$0xff] }
  0x47   : > { %373 = vst [vmem:[%s2629_s26 + $0x370] sm:$0xff] %v372_v46  ;;  %v378_v49 = vld [vmem:[%s2624_s25 + $0x708] sm:$0xff]  ;;  %375 = vst [vmem:[%s2629_s26 + $0x378] sm:$0xff] %v374_v47  ;;  %v380_v50 = vld [vmem:[%s2624_s25 + $0x710] sm:$0xff] }
  0x48   : > { %377 = vst [vmem:[%s2629_s26 + $0x380] sm:$0xff] %v376_v48  ;;  %379 = vst [vmem:[%s2629_s26 + $0x388] sm:$0xff] %v378_v49  ;;  %v382_v51 = vld [vmem:[%s2624_s25 + $0x718] sm:$0xff]  ;;  %v384_v52 = vld [vmem:[%s2624_s25 + $0x720] sm:$0xff] }
  0x49   : > { %381 = vst [vmem:[%s2629_s26 + $0x390] sm:$0xff] %v380_v50  ;;  %383 = vst [vmem:[%s2629_s26 + $0x398] sm:$0xff] %v382_v51  ;;  %v386_v53 = vld [vmem:[%s2624_s25 + $0x728] sm:$0xff]  ;;  %v388_v54 = vld [vmem:[%s2624_s25 + $0x730] sm:$0xff] }
  0x4a   : > { %385 = vst [vmem:[%s2629_s26 + $0x3a0] sm:$0xff] %v384_v52  ;;  %v390_v55 = vld [vmem:[%s2624_s25 + $0x738] sm:$0xff]  ;;  %387 = vst [vmem:[%s2629_s26 + $0x3a8] sm:$0xff] %v386_v53  ;;  %v392_v56 = vld [vmem:[%s2624_s25 + $0x780] sm:$0xff] }
  0x4b   : > { %389 = vst [vmem:[%s2629_s26 + $0x3b0] sm:$0xff] %v388_v54  ;;  %391 = vst [vmem:[%s2629_s26 + $0x3b8] sm:$0xff] %v390_v55  ;;  %v394_v57 = vld [vmem:[%s2624_s25 + $0x788] sm:$0xff]  ;;  %v396_v58 = vld [vmem:[%s2624_s25 + $0x790] sm:$0xff] }
  0x4c   : > { %393 = vst [vmem:[%s2629_s26 + $0x3c0] sm:$0xff] %v392_v56  ;;  %395 = vst [vmem:[%s2629_s26 + $0x3c8] sm:$0xff] %v394_v57  ;;  %v398_v59 = vld [vmem:[%s2624_s25 + $0x798] sm:$0xff]  ;;  %v400_v60 = vld [vmem:[%s2624_s25 + $0x7a0] sm:$0xff] }
  0x4d   : > { %397 = vst [vmem:[%s2629_s26 + $0x3d0] sm:$0xff] %v396_v58  ;;  %v402_v61 = vld [vmem:[%s2624_s25 + $0x7a8] sm:$0xff]  ;;  %399 = vst [vmem:[%s2629_s26 + $0x3d8] sm:$0xff] %v398_v59  ;;  %v404_v62 = vld [vmem:[%s2624_s25 + $0x7b0] sm:$0xff] }
  0x4e   : > { %401 = vst [vmem:[%s2629_s26 + $0x3e0] sm:$0xff] %v400_v60  ;;  %403 = vst [vmem:[%s2629_s26 + $0x3e8] sm:$0xff] %v402_v61  ;;  %v406_v63 = vld [vmem:[%s2624_s25 + $0x7b8] sm:$0xff]  ;;  %v408_v0 = vld [vmem:[%s2624_s25 + $0x800] sm:$0xff] }
  0x4f   : > { %405 = vst [vmem:[%s2629_s26 + $0x3f0] sm:$0xff] %v404_v62  ;;  %407 = vst [vmem:[%s2629_s26 + $0x3f8] sm:$0xff] %v406_v63  ;;  %v410_v1 = vld [vmem:[%s2624_s25 + $0x808] sm:$0xff]  ;;  %v412_v2 = vld [vmem:[%s2624_s25 + $0x810] sm:$0xff] }
  0x50   : > { %409 = vst [vmem:[%s2629_s26 + $0x400] sm:$0xff] %v408_v0  ;;  %v414_v3 = vld [vmem:[%s2624_s25 + $0x818] sm:$0xff]  ;;  %411 = vst [vmem:[%s2629_s26 + $0x408] sm:$0xff] %v410_v1  ;;  %v416_v4 = vld [vmem:[%s2624_s25 + $0x820] sm:$0xff] }
  0x51   : > { %413 = vst [vmem:[%s2629_s26 + $0x410] sm:$0xff] %v412_v2  ;;  %415 = vst [vmem:[%s2629_s26 + $0x418] sm:$0xff] %v414_v3  ;;  %v418_v5 = vld [vmem:[%s2624_s25 + $0x828] sm:$0xff]  ;;  %v420_v6 = vld [vmem:[%s2624_s25 + $0x830] sm:$0xff] }
  0x52   : > { %417 = vst [vmem:[%s2629_s26 + $0x420] sm:$0xff] %v416_v4  ;;  %419 = vst [vmem:[%s2629_s26 + $0x428] sm:$0xff] %v418_v5  ;;  %v422_v7 = vld [vmem:[%s2624_s25 + $0x838] sm:$0xff]  ;;  %v424_v8 = vld [vmem:[%s2624_s25 + $0x880] sm:$0xff] }
  0x53   : > { %421 = vst [vmem:[%s2629_s26 + $0x430] sm:$0xff] %v420_v6  ;;  %v426_v9 = vld [vmem:[%s2624_s25 + $0x888] sm:$0xff]  ;;  %423 = vst [vmem:[%s2629_s26 + $0x438] sm:$0xff] %v422_v7  ;;  %v428_v10 = vld [vmem:[%s2624_s25 + $0x890] sm:$0xff] }
  0x54   : > { %425 = vst [vmem:[%s2629_s26 + $0x440] sm:$0xff] %v424_v8  ;;  %427 = vst [vmem:[%s2629_s26 + $0x448] sm:$0xff] %v426_v9  ;;  %v430_v11 = vld [vmem:[%s2624_s25 + $0x898] sm:$0xff]  ;;  %v432_v12 = vld [vmem:[%s2624_s25 + $0x8a0] sm:$0xff] }
  0x55   : > { %429 = vst [vmem:[%s2629_s26 + $0x450] sm:$0xff] %v428_v10  ;;  %431 = vst [vmem:[%s2629_s26 + $0x458] sm:$0xff] %v430_v11  ;;  %v434_v13 = vld [vmem:[%s2624_s25 + $0x8a8] sm:$0xff]  ;;  %v436_v14 = vld [vmem:[%s2624_s25 + $0x8b0] sm:$0xff] }
  0x56   : > { %433 = vst [vmem:[%s2629_s26 + $0x460] sm:$0xff] %v432_v12  ;;  %v438_v15 = vld [vmem:[%s2624_s25 + $0x8b8] sm:$0xff]  ;;  %435 = vst [vmem:[%s2629_s26 + $0x468] sm:$0xff] %v434_v13  ;;  %v440_v16 = vld [vmem:[%s2624_s25 + $0x900] sm:$0xff] }
  0x57   : > { %437 = vst [vmem:[%s2629_s26 + $0x470] sm:$0xff] %v436_v14  ;;  %439 = vst [vmem:[%s2629_s26 + $0x478] sm:$0xff] %v438_v15  ;;  %v442_v17 = vld [vmem:[%s2624_s25 + $0x908] sm:$0xff]  ;;  %v444_v18 = vld [vmem:[%s2624_s25 + $0x910] sm:$0xff] }
  0x58   : > { %441 = vst [vmem:[%s2629_s26 + $0x480] sm:$0xff] %v440_v16  ;;  %443 = vst [vmem:[%s2629_s26 + $0x488] sm:$0xff] %v442_v17  ;;  %v446_v19 = vld [vmem:[%s2624_s25 + $0x918] sm:$0xff]  ;;  %v448_v20 = vld [vmem:[%s2624_s25 + $0x920] sm:$0xff] }
  0x59   : > { %445 = vst [vmem:[%s2629_s26 + $0x490] sm:$0xff] %v444_v18  ;;  %v450_v21 = vld [vmem:[%s2624_s25 + $0x928] sm:$0xff]  ;;  %447 = vst [vmem:[%s2629_s26 + $0x498] sm:$0xff] %v446_v19  ;;  %v452_v22 = vld [vmem:[%s2624_s25 + $0x930] sm:$0xff] }
  0x5a   : > { %449 = vst [vmem:[%s2629_s26 + $0x4a0] sm:$0xff] %v448_v20  ;;  %451 = vst [vmem:[%s2629_s26 + $0x4a8] sm:$0xff] %v450_v21  ;;  %v454_v23 = vld [vmem:[%s2624_s25 + $0x938] sm:$0xff]  ;;  %v456_v24 = vld [vmem:[%s2624_s25 + $0x980] sm:$0xff] }
  0x5b   : > { %453 = vst [vmem:[%s2629_s26 + $0x4b0] sm:$0xff] %v452_v22  ;;  %455 = vst [vmem:[%s2629_s26 + $0x4b8] sm:$0xff] %v454_v23  ;;  %v458_v25 = vld [vmem:[%s2624_s25 + $0x988] sm:$0xff]  ;;  %v460_v26 = vld [vmem:[%s2624_s25 + $0x990] sm:$0xff] }
  0x5c   : > { %457 = vst [vmem:[%s2629_s26 + $0x4c0] sm:$0xff] %v456_v24  ;;  %v462_v27 = vld [vmem:[%s2624_s25 + $0x998] sm:$0xff]  ;;  %459 = vst [vmem:[%s2629_s26 + $0x4c8] sm:$0xff] %v458_v25  ;;  %v464_v28 = vld [vmem:[%s2624_s25 + $0x9a0] sm:$0xff] }
  0x5d   : > { %461 = vst [vmem:[%s2629_s26 + $0x4d0] sm:$0xff] %v460_v26  ;;  %463 = vst [vmem:[%s2629_s26 + $0x4d8] sm:$0xff] %v462_v27  ;;  %v466_v29 = vld [vmem:[%s2624_s25 + $0x9a8] sm:$0xff]  ;;  %v468_v30 = vld [vmem:[%s2624_s25 + $0x9b0] sm:$0xff] }
  0x5e   : > { %465 = vst [vmem:[%s2629_s26 + $0x4e0] sm:$0xff] %v464_v28  ;;  %467 = vst [vmem:[%s2629_s26 + $0x4e8] sm:$0xff] %v466_v29  ;;  %v470_v31 = vld [vmem:[%s2624_s25 + $0x9b8] sm:$0xff]  ;;  %v472_v32 = vld [vmem:[%s2624_s25 + $0xa00] sm:$0xff] }
  0x5f   : > { %469 = vst [vmem:[%s2629_s26 + $0x4f0] sm:$0xff] %v468_v30  ;;  %v474_v33 = vld [vmem:[%s2624_s25 + $0xa08] sm:$0xff]  ;;  %471 = vst [vmem:[%s2629_s26 + $0x4f8] sm:$0xff] %v470_v31  ;;  %v476_v34 = vld [vmem:[%s2624_s25 + $0xa10] sm:$0xff] }
  0x60   : > { %473 = vst [vmem:[%s2629_s26 + $0x500] sm:$0xff] %v472_v32  ;;  %475 = vst [vmem:[%s2629_s26 + $0x508] sm:$0xff] %v474_v33  ;;  %v478_v35 = vld [vmem:[%s2624_s25 + $0xa18] sm:$0xff]  ;;  %v480_v36 = vld [vmem:[%s2624_s25 + $0xa20] sm:$0xff] }
  0x61   : > { %477 = vst [vmem:[%s2629_s26 + $0x510] sm:$0xff] %v476_v34  ;;  %479 = vst [vmem:[%s2629_s26 + $0x518] sm:$0xff] %v478_v35  ;;  %v482_v37 = vld [vmem:[%s2624_s25 + $0xa28] sm:$0xff]  ;;  %v484_v38 = vld [vmem:[%s2624_s25 + $0xa30] sm:$0xff] }
  0x62   : > { %481 = vst [vmem:[%s2629_s26 + $0x520] sm:$0xff] %v480_v36  ;;  %v486_v39 = vld [vmem:[%s2624_s25 + $0xa38] sm:$0xff]  ;;  %483 = vst [vmem:[%s2629_s26 + $0x528] sm:$0xff] %v482_v37  ;;  %v488_v40 = vld [vmem:[%s2624_s25 + $0xa80] sm:$0xff] }
  0x63   : > { %485 = vst [vmem:[%s2629_s26 + $0x530] sm:$0xff] %v484_v38  ;;  %487 = vst [vmem:[%s2629_s26 + $0x538] sm:$0xff] %v486_v39  ;;  %v490_v41 = vld [vmem:[%s2624_s25 + $0xa88] sm:$0xff]  ;;  %v492_v42 = vld [vmem:[%s2624_s25 + $0xa90] sm:$0xff] }
  0x64   : > { %489 = vst [vmem:[%s2629_s26 + $0x540] sm:$0xff] %v488_v40  ;;  %491 = vst [vmem:[%s2629_s26 + $0x548] sm:$0xff] %v490_v41  ;;  %v494_v43 = vld [vmem:[%s2624_s25 + $0xa98] sm:$0xff]  ;;  %v496_v44 = vld [vmem:[%s2624_s25 + $0xaa0] sm:$0xff] }
  0x65   : > { %493 = vst [vmem:[%s2629_s26 + $0x550] sm:$0xff] %v492_v42  ;;  %v498_v45 = vld [vmem:[%s2624_s25 + $0xaa8] sm:$0xff]  ;;  %495 = vst [vmem:[%s2629_s26 + $0x558] sm:$0xff] %v494_v43  ;;  %v500_v46 = vld [vmem:[%s2624_s25 + $0xab0] sm:$0xff] }
  0x66   : > { %497 = vst [vmem:[%s2629_s26 + $0x560] sm:$0xff] %v496_v44  ;;  %499 = vst [vmem:[%s2629_s26 + $0x568] sm:$0xff] %v498_v45  ;;  %v502_v47 = vld [vmem:[%s2624_s25 + $0xab8] sm:$0xff]  ;;  %v504_v48 = vld [vmem:[%s2624_s25 + $0xb00] sm:$0xff] }
  0x67   : > { %501 = vst [vmem:[%s2629_s26 + $0x570] sm:$0xff] %v500_v46  ;;  %503 = vst [vmem:[%s2629_s26 + $0x578] sm:$0xff] %v502_v47  ;;  %v506_v49 = vld [vmem:[%s2624_s25 + $0xb08] sm:$0xff]  ;;  %v508_v50 = vld [vmem:[%s2624_s25 + $0xb10] sm:$0xff] }
  0x68   : > { %505 = vst [vmem:[%s2629_s26 + $0x580] sm:$0xff] %v504_v48  ;;  %v510_v51 = vld [vmem:[%s2624_s25 + $0xb18] sm:$0xff]  ;;  %507 = vst [vmem:[%s2629_s26 + $0x588] sm:$0xff] %v506_v49  ;;  %v512_v52 = vld [vmem:[%s2624_s25 + $0xb20] sm:$0xff] }
  0x69   : > { %509 = vst [vmem:[%s2629_s26 + $0x590] sm:$0xff] %v508_v50  ;;  %511 = vst [vmem:[%s2629_s26 + $0x598] sm:$0xff] %v510_v51  ;;  %v514_v53 = vld [vmem:[%s2624_s25 + $0xb28] sm:$0xff]  ;;  %v516_v54 = vld [vmem:[%s2624_s25 + $0xb30] sm:$0xff] }
  0x6a   : > { %513 = vst [vmem:[%s2629_s26 + $0x5a0] sm:$0xff] %v512_v52  ;;  %515 = vst [vmem:[%s2629_s26 + $0x5a8] sm:$0xff] %v514_v53  ;;  %v518_v55 = vld [vmem:[%s2624_s25 + $0xb38] sm:$0xff]  ;;  %v520_v56 = vld [vmem:[%s2624_s25 + $0xb80] sm:$0xff] }
  0x6b   : > { %517 = vst [vmem:[%s2629_s26 + $0x5b0] sm:$0xff] %v516_v54  ;;  %v522_v57 = vld [vmem:[%s2624_s25 + $0xb88] sm:$0xff]  ;;  %519 = vst [vmem:[%s2629_s26 + $0x5b8] sm:$0xff] %v518_v55  ;;  %v524_v58 = vld [vmem:[%s2624_s25 + $0xb90] sm:$0xff] }
  0x6c   : > { %521 = vst [vmem:[%s2629_s26 + $0x5c0] sm:$0xff] %v520_v56  ;;  %523 = vst [vmem:[%s2629_s26 + $0x5c8] sm:$0xff] %v522_v57  ;;  %v526_v59 = vld [vmem:[%s2624_s25 + $0xb98] sm:$0xff]  ;;  %v528_v60 = vld [vmem:[%s2624_s25 + $0xba0] sm:$0xff] }
  0x6d   : > { %525 = vst [vmem:[%s2629_s26 + $0x5d0] sm:$0xff] %v524_v58  ;;  %527 = vst [vmem:[%s2629_s26 + $0x5d8] sm:$0xff] %v526_v59  ;;  %v530_v61 = vld [vmem:[%s2624_s25 + $0xba8] sm:$0xff]  ;;  %v532_v62 = vld [vmem:[%s2624_s25 + $0xbb0] sm:$0xff] }
  0x6e   : > { %529 = vst [vmem:[%s2629_s26 + $0x5e0] sm:$0xff] %v528_v60  ;;  %v534_v63 = vld [vmem:[%s2624_s25 + $0xbb8] sm:$0xff]  ;;  %531 = vst [vmem:[%s2629_s26 + $0x5e8] sm:$0xff] %v530_v61  ;;  %v536_v0 = vld [vmem:[%s2624_s25 + $0xc00] sm:$0xff] }
  0x6f   : > { %533 = vst [vmem:[%s2629_s26 + $0x5f0] sm:$0xff] %v532_v62  ;;  %535 = vst [vmem:[%s2629_s26 + $0x5f8] sm:$0xff] %v534_v63  ;;  %v538_v1 = vld [vmem:[%s2624_s25 + $0xc08] sm:$0xff]  ;;  %v540_v2 = vld [vmem:[%s2624_s25 + $0xc10] sm:$0xff] }
  0x70   : > { %537 = vst [vmem:[%s2629_s26 + $0x600] sm:$0xff] %v536_v0  ;;  %539 = vst [vmem:[%s2629_s26 + $0x608] sm:$0xff] %v538_v1  ;;  %v542_v3 = vld [vmem:[%s2624_s25 + $0xc18] sm:$0xff]  ;;  %v544_v4 = vld [vmem:[%s2624_s25 + $0xc20] sm:$0xff] }
  0x71   : > { %541 = vst [vmem:[%s2629_s26 + $0x610] sm:$0xff] %v540_v2  ;;  %v546_v5 = vld [vmem:[%s2624_s25 + $0xc28] sm:$0xff]  ;;  %543 = vst [vmem:[%s2629_s26 + $0x618] sm:$0xff] %v542_v3  ;;  %v548_v6 = vld [vmem:[%s2624_s25 + $0xc30] sm:$0xff] }
  0x72   : > { %545 = vst [vmem:[%s2629_s26 + $0x620] sm:$0xff] %v544_v4  ;;  %547 = vst [vmem:[%s2629_s26 + $0x628] sm:$0xff] %v546_v5  ;;  %v550_v7 = vld [vmem:[%s2624_s25 + $0xc38] sm:$0xff]  ;;  %v552_v8 = vld [vmem:[%s2624_s25 + $0xc80] sm:$0xff] }
  0x73   : > { %549 = vst [vmem:[%s2629_s26 + $0x630] sm:$0xff] %v548_v6  ;;  %551 = vst [vmem:[%s2629_s26 + $0x638] sm:$0xff] %v550_v7  ;;  %v554_v9 = vld [vmem:[%s2624_s25 + $0xc88] sm:$0xff]  ;;  %v556_v10 = vld [vmem:[%s2624_s25 + $0xc90] sm:$0xff] }
  0x74   : > { %553 = vst [vmem:[%s2629_s26 + $0x640] sm:$0xff] %v552_v8  ;;  %v558_v11 = vld [vmem:[%s2624_s25 + $0xc98] sm:$0xff]  ;;  %555 = vst [vmem:[%s2629_s26 + $0x648] sm:$0xff] %v554_v9  ;;  %v560_v12 = vld [vmem:[%s2624_s25 + $0xca0] sm:$0xff] }
  0x75   : > { %557 = vst [vmem:[%s2629_s26 + $0x650] sm:$0xff] %v556_v10  ;;  %559 = vst [vmem:[%s2629_s26 + $0x658] sm:$0xff] %v558_v11  ;;  %v562_v13 = vld [vmem:[%s2624_s25 + $0xca8] sm:$0xff]  ;;  %v564_v14 = vld [vmem:[%s2624_s25 + $0xcb0] sm:$0xff] }
  0x76   : > { %561 = vst [vmem:[%s2629_s26 + $0x660] sm:$0xff] %v560_v12  ;;  %563 = vst [vmem:[%s2629_s26 + $0x668] sm:$0xff] %v562_v13  ;;  %v566_v15 = vld [vmem:[%s2624_s25 + $0xcb8] sm:$0xff]  ;;  %v568_v16 = vld [vmem:[%s2624_s25 + $0xd00] sm:$0xff] }
  0x77   : > { %565 = vst [vmem:[%s2629_s26 + $0x670] sm:$0xff] %v564_v14  ;;  %v570_v17 = vld [vmem:[%s2624_s25 + $0xd08] sm:$0xff]  ;;  %567 = vst [vmem:[%s2629_s26 + $0x678] sm:$0xff] %v566_v15  ;;  %v572_v18 = vld [vmem:[%s2624_s25 + $0xd10] sm:$0xff] }
  0x78   : > { %569 = vst [vmem:[%s2629_s26 + $0x680] sm:$0xff] %v568_v16  ;;  %571 = vst [vmem:[%s2629_s26 + $0x688] sm:$0xff] %v570_v17  ;;  %v574_v19 = vld [vmem:[%s2624_s25 + $0xd18] sm:$0xff]  ;;  %v576_v20 = vld [vmem:[%s2624_s25 + $0xd20] sm:$0xff] }
  0x79   : > { %573 = vst [vmem:[%s2629_s26 + $0x690] sm:$0xff] %v572_v18  ;;  %575 = vst [vmem:[%s2629_s26 + $0x698] sm:$0xff] %v574_v19  ;;  %v578_v21 = vld [vmem:[%s2624_s25 + $0xd28] sm:$0xff]  ;;  %v580_v22 = vld [vmem:[%s2624_s25 + $0xd30] sm:$0xff] }
  0x7a   : > { %577 = vst [vmem:[%s2629_s26 + $0x6a0] sm:$0xff] %v576_v20  ;;  %v582_v23 = vld [vmem:[%s2624_s25 + $0xd38] sm:$0xff]  ;;  %579 = vst [vmem:[%s2629_s26 + $0x6a8] sm:$0xff] %v578_v21  ;;  %v584_v24 = vld [vmem:[%s2624_s25 + $0xd80] sm:$0xff] }
  0x7b   : > { %581 = vst [vmem:[%s2629_s26 + $0x6b0] sm:$0xff] %v580_v22  ;;  %583 = vst [vmem:[%s2629_s26 + $0x6b8] sm:$0xff] %v582_v23  ;;  %v586_v25 = vld [vmem:[%s2624_s25 + $0xd88] sm:$0xff]  ;;  %v588_v26 = vld [vmem:[%s2624_s25 + $0xd90] sm:$0xff] }
  0x7c   : > { %585 = vst [vmem:[%s2629_s26 + $0x6c0] sm:$0xff] %v584_v24  ;;  %587 = vst [vmem:[%s2629_s26 + $0x6c8] sm:$0xff] %v586_v25  ;;  %v590_v27 = vld [vmem:[%s2624_s25 + $0xd98] sm:$0xff]  ;;  %v592_v28 = vld [vmem:[%s2624_s25 + $0xda0] sm:$0xff] }
  0x7d   : > { %589 = vst [vmem:[%s2629_s26 + $0x6d0] sm:$0xff] %v588_v26  ;;  %v594_v29 = vld [vmem:[%s2624_s25 + $0xda8] sm:$0xff]  ;;  %591 = vst [vmem:[%s2629_s26 + $0x6d8] sm:$0xff] %v590_v27  ;;  %v596_v30 = vld [vmem:[%s2624_s25 + $0xdb0] sm:$0xff] }
  0x7e   : > { %593 = vst [vmem:[%s2629_s26 + $0x6e0] sm:$0xff] %v592_v28  ;;  %595 = vst [vmem:[%s2629_s26 + $0x6e8] sm:$0xff] %v594_v29  ;;  %v598_v31 = vld [vmem:[%s2624_s25 + $0xdb8] sm:$0xff]  ;;  %v600_v32 = vld [vmem:[%s2624_s25 + $0xe00] sm:$0xff] }
  0x7f   : > { %597 = vst [vmem:[%s2629_s26 + $0x6f0] sm:$0xff] %v596_v30  ;;  %599 = vst [vmem:[%s2629_s26 + $0x6f8] sm:$0xff] %v598_v31  ;;  %v602_v33 = vld [vmem:[%s2624_s25 + $0xe08] sm:$0xff]  ;;  %v604_v34 = vld [vmem:[%s2624_s25 + $0xe10] sm:$0xff] }
  0x80   : > { %601 = vst [vmem:[%s2629_s26 + $0x700] sm:$0xff] %v600_v32  ;;  %v606_v35 = vld [vmem:[%s2624_s25 + $0xe18] sm:$0xff]  ;;  %603 = vst [vmem:[%s2629_s26 + $0x708] sm:$0xff] %v602_v33  ;;  %v608_v36 = vld [vmem:[%s2624_s25 + $0xe20] sm:$0xff] }
  0x81   : > { %605 = vst [vmem:[%s2629_s26 + $0x710] sm:$0xff] %v604_v34  ;;  %607 = vst [vmem:[%s2629_s26 + $0x718] sm:$0xff] %v606_v35  ;;  %v610_v37 = vld [vmem:[%s2624_s25 + $0xe28] sm:$0xff]  ;;  %v612_v38 = vld [vmem:[%s2624_s25 + $0xe30] sm:$0xff] }
  0x82   : > { %609 = vst [vmem:[%s2629_s26 + $0x720] sm:$0xff] %v608_v36  ;;  %611 = vst [vmem:[%s2629_s26 + $0x728] sm:$0xff] %v610_v37  ;;  %v614_v39 = vld [vmem:[%s2624_s25 + $0xe38] sm:$0xff]  ;;  %v616_v40 = vld [vmem:[%s2624_s25 + $0xe80] sm:$0xff] }
  0x83   : > { %613 = vst [vmem:[%s2629_s26 + $0x730] sm:$0xff] %v612_v38  ;;  %v618_v41 = vld [vmem:[%s2624_s25 + $0xe88] sm:$0xff]  ;;  %615 = vst [vmem:[%s2629_s26 + $0x738] sm:$0xff] %v614_v39  ;;  %v620_v42 = vld [vmem:[%s2624_s25 + $0xe90] sm:$0xff] }
  0x84   : > { %617 = vst [vmem:[%s2629_s26 + $0x740] sm:$0xff] %v616_v40  ;;  %619 = vst [vmem:[%s2629_s26 + $0x748] sm:$0xff] %v618_v41  ;;  %v622_v43 = vld [vmem:[%s2624_s25 + $0xe98] sm:$0xff]  ;;  %v624_v44 = vld [vmem:[%s2624_s25 + $0xea0] sm:$0xff] }
  0x85   : > { %621 = vst [vmem:[%s2629_s26 + $0x750] sm:$0xff] %v620_v42  ;;  %623 = vst [vmem:[%s2629_s26 + $0x758] sm:$0xff] %v622_v43  ;;  %v626_v45 = vld [vmem:[%s2624_s25 + $0xea8] sm:$0xff]  ;;  %v628_v46 = vld [vmem:[%s2624_s25 + $0xeb0] sm:$0xff] }
  0x86   : > { %625 = vst [vmem:[%s2629_s26 + $0x760] sm:$0xff] %v624_v44  ;;  %v630_v47 = vld [vmem:[%s2624_s25 + $0xeb8] sm:$0xff]  ;;  %627 = vst [vmem:[%s2629_s26 + $0x768] sm:$0xff] %v626_v45  ;;  %v632_v48 = vld [vmem:[%s2624_s25 + $0xf00] sm:$0xff] }
  0x87   : > { %629 = vst [vmem:[%s2629_s26 + $0x770] sm:$0xff] %v628_v46  ;;  %631 = vst [vmem:[%s2629_s26 + $0x778] sm:$0xff] %v630_v47  ;;  %v634_v49 = vld [vmem:[%s2624_s25 + $0xf08] sm:$0xff]  ;;  %v636_v50 = vld [vmem:[%s2624_s25 + $0xf10] sm:$0xff] }
  0x88   : > { %633 = vst [vmem:[%s2629_s26 + $0x780] sm:$0xff] %v632_v48  ;;  %635 = vst [vmem:[%s2629_s26 + $0x788] sm:$0xff] %v634_v49  ;;  %v638_v51 = vld [vmem:[%s2624_s25 + $0xf18] sm:$0xff]  ;;  %v640_v52 = vld [vmem:[%s2624_s25 + $0xf20] sm:$0xff] }
  0x89   : > { %637 = vst [vmem:[%s2629_s26 + $0x790] sm:$0xff] %v636_v50  ;;  %v642_v53 = vld [vmem:[%s2624_s25 + $0xf28] sm:$0xff]  ;;  %639 = vst [vmem:[%s2629_s26 + $0x798] sm:$0xff] %v638_v51  ;;  %v644_v54 = vld [vmem:[%s2624_s25 + $0xf30] sm:$0xff] }
  0x8a   : > { %641 = vst [vmem:[%s2629_s26 + $0x7a0] sm:$0xff] %v640_v52  ;;  %643 = vst [vmem:[%s2629_s26 + $0x7a8] sm:$0xff] %v642_v53  ;;  %v646_v55 = vld [vmem:[%s2624_s25 + $0xf38] sm:$0xff]  ;;  %v648_v56 = vld [vmem:[%s2624_s25 + $0xf80] sm:$0xff] }
  0x8b   : > { %645 = vst [vmem:[%s2629_s26 + $0x7b0] sm:$0xff] %v644_v54  ;;  %647 = vst [vmem:[%s2629_s26 + $0x7b8] sm:$0xff] %v646_v55  ;;  %v650_v57 = vld [vmem:[%s2624_s25 + $0xf88] sm:$0xff]  ;;  %v652_v58 = vld [vmem:[%s2624_s25 + $0xf90] sm:$0xff] }
  0x8c   : > { %649 = vst [vmem:[%s2629_s26 + $0x7c0] sm:$0xff] %v648_v56  ;;  %v654_v59 = vld [vmem:[%s2624_s25 + $0xf98] sm:$0xff]  ;;  %651 = vst [vmem:[%s2629_s26 + $0x7c8] sm:$0xff] %v650_v57  ;;  %v656_v60 = vld [vmem:[%s2624_s25 + $0xfa0] sm:$0xff] }
  0x8d   : > { %653 = vst [vmem:[%s2629_s26 + $0x7d0] sm:$0xff] %v652_v58  ;;  %655 = vst [vmem:[%s2629_s26 + $0x7d8] sm:$0xff] %v654_v59  ;;  %v658_v61 = vld [vmem:[%s2624_s25 + $0xfa8] sm:$0xff]  ;;  %v660_v62 = vld [vmem:[%s2624_s25 + $0xfb0] sm:$0xff] }
  0x8e   : > { %657 = vst [vmem:[%s2629_s26 + $0x7e0] sm:$0xff] %v656_v60  ;;  %659 = vst [vmem:[%s2629_s26 + $0x7e8] sm:$0xff] %v658_v61  ;;  %v662_v63 = vld [vmem:[%s2624_s25 + $0xfb8] sm:$0xff]  ;;  %v664_v0 = vld [vmem:[%s2624_s25 + $0x1000] sm:$0xff] }
  0x8f   : > { %661 = vst [vmem:[%s2629_s26 + $0x7f0] sm:$0xff] %v660_v62  ;;  %v666_v1 = vld [vmem:[%s2624_s25 + $0x1008] sm:$0xff]  ;;  %663 = vst [vmem:[%s2629_s26 + $0x7f8] sm:$0xff] %v662_v63  ;;  %v668_v2 = vld [vmem:[%s2624_s25 + $0x1010] sm:$0xff] }
  0x90   : > { %665 = vst [vmem:[%s2629_s26 + $0x800] sm:$0xff] %v664_v0  ;;  %667 = vst [vmem:[%s2629_s26 + $0x808] sm:$0xff] %v666_v1  ;;  %v670_v3 = vld [vmem:[%s2624_s25 + $0x1018] sm:$0xff]  ;;  %v672_v4 = vld [vmem:[%s2624_s25 + $0x1020] sm:$0xff] }
  0x91   : > { %669 = vst [vmem:[%s2629_s26 + $0x810] sm:$0xff] %v668_v2  ;;  %671 = vst [vmem:[%s2629_s26 + $0x818] sm:$0xff] %v670_v3  ;;  %v674_v5 = vld [vmem:[%s2624_s25 + $0x1028] sm:$0xff]  ;;  %v676_v6 = vld [vmem:[%s2624_s25 + $0x1030] sm:$0xff] }
  0x92   : > { %673 = vst [vmem:[%s2629_s26 + $0x820] sm:$0xff] %v672_v4  ;;  %v678_v7 = vld [vmem:[%s2624_s25 + $0x1038] sm:$0xff]  ;;  %675 = vst [vmem:[%s2629_s26 + $0x828] sm:$0xff] %v674_v5  ;;  %v680_v8 = vld [vmem:[%s2624_s25 + $0x1080] sm:$0xff] }
  0x93   : > { %677 = vst [vmem:[%s2629_s26 + $0x830] sm:$0xff] %v676_v6  ;;  %679 = vst [vmem:[%s2629_s26 + $0x838] sm:$0xff] %v678_v7  ;;  %v682_v9 = vld [vmem:[%s2624_s25 + $0x1088] sm:$0xff]  ;;  %v684_v10 = vld [vmem:[%s2624_s25 + $0x1090] sm:$0xff] }
  0x94   : > { %681 = vst [vmem:[%s2629_s26 + $0x840] sm:$0xff] %v680_v8  ;;  %683 = vst [vmem:[%s2629_s26 + $0x848] sm:$0xff] %v682_v9  ;;  %v686_v11 = vld [vmem:[%s2624_s25 + $0x1098] sm:$0xff]  ;;  %v688_v12 = vld [vmem:[%s2624_s25 + $0x10a0] sm:$0xff] }
  0x95   : > { %685 = vst [vmem:[%s2629_s26 + $0x850] sm:$0xff] %v684_v10  ;;  %v690_v13 = vld [vmem:[%s2624_s25 + $0x10a8] sm:$0xff]  ;;  %687 = vst [vmem:[%s2629_s26 + $0x858] sm:$0xff] %v686_v11  ;;  %v692_v14 = vld [vmem:[%s2624_s25 + $0x10b0] sm:$0xff] }
  0x96   : > { %689 = vst [vmem:[%s2629_s26 + $0x860] sm:$0xff] %v688_v12  ;;  %691 = vst [vmem:[%s2629_s26 + $0x868] sm:$0xff] %v690_v13  ;;  %v694_v15 = vld [vmem:[%s2624_s25 + $0x10b8] sm:$0xff]  ;;  %v696_v16 = vld [vmem:[%s2624_s25 + $0x1100] sm:$0xff] }
  0x97   : > { %693 = vst [vmem:[%s2629_s26 + $0x870] sm:$0xff] %v692_v14  ;;  %695 = vst [vmem:[%s2629_s26 + $0x878] sm:$0xff] %v694_v15  ;;  %v698_v17 = vld [vmem:[%s2624_s25 + $0x1108] sm:$0xff]  ;;  %v700_v18 = vld [vmem:[%s2624_s25 + $0x1110] sm:$0xff] }
  0x98   : > { %697 = vst [vmem:[%s2629_s26 + $0x880] sm:$0xff] %v696_v16  ;;  %v702_v19 = vld [vmem:[%s2624_s25 + $0x1118] sm:$0xff]  ;;  %699 = vst [vmem:[%s2629_s26 + $0x888] sm:$0xff] %v698_v17  ;;  %v704_v20 = vld [vmem:[%s2624_s25 + $0x1120] sm:$0xff] }
  0x99   : > { %701 = vst [vmem:[%s2629_s26 + $0x890] sm:$0xff] %v700_v18  ;;  %703 = vst [vmem:[%s2629_s26 + $0x898] sm:$0xff] %v702_v19  ;;  %v706_v21 = vld [vmem:[%s2624_s25 + $0x1128] sm:$0xff]  ;;  %v708_v22 = vld [vmem:[%s2624_s25 + $0x1130] sm:$0xff] }
  0x9a   : > { %705 = vst [vmem:[%s2629_s26 + $0x8a0] sm:$0xff] %v704_v20  ;;  %707 = vst [vmem:[%s2629_s26 + $0x8a8] sm:$0xff] %v706_v21  ;;  %v710_v23 = vld [vmem:[%s2624_s25 + $0x1138] sm:$0xff]  ;;  %v712_v24 = vld [vmem:[%s2624_s25 + $0x1180] sm:$0xff] }
  0x9b   : > { %709 = vst [vmem:[%s2629_s26 + $0x8b0] sm:$0xff] %v708_v22  ;;  %v714_v25 = vld [vmem:[%s2624_s25 + $0x1188] sm:$0xff]  ;;  %711 = vst [vmem:[%s2629_s26 + $0x8b8] sm:$0xff] %v710_v23  ;;  %v716_v26 = vld [vmem:[%s2624_s25 + $0x1190] sm:$0xff] }
  0x9c   : > { %713 = vst [vmem:[%s2629_s26 + $0x8c0] sm:$0xff] %v712_v24  ;;  %715 = vst [vmem:[%s2629_s26 + $0x8c8] sm:$0xff] %v714_v25  ;;  %v718_v27 = vld [vmem:[%s2624_s25 + $0x1198] sm:$0xff]  ;;  %v720_v28 = vld [vmem:[%s2624_s25 + $0x11a0] sm:$0xff] }
  0x9d   : > { %717 = vst [vmem:[%s2629_s26 + $0x8d0] sm:$0xff] %v716_v26  ;;  %719 = vst [vmem:[%s2629_s26 + $0x8d8] sm:$0xff] %v718_v27  ;;  %v722_v29 = vld [vmem:[%s2624_s25 + $0x11a8] sm:$0xff]  ;;  %v724_v30 = vld [vmem:[%s2624_s25 + $0x11b0] sm:$0xff] }
  0x9e   : > { %721 = vst [vmem:[%s2629_s26 + $0x8e0] sm:$0xff] %v720_v28  ;;  %v726_v31 = vld [vmem:[%s2624_s25 + $0x11b8] sm:$0xff]  ;;  %723 = vst [vmem:[%s2629_s26 + $0x8e8] sm:$0xff] %v722_v29  ;;  %v728_v32 = vld [vmem:[%s2624_s25 + $0x1200] sm:$0xff] }
  0x9f   : > { %725 = vst [vmem:[%s2629_s26 + $0x8f0] sm:$0xff] %v724_v30  ;;  %727 = vst [vmem:[%s2629_s26 + $0x8f8] sm:$0xff] %v726_v31  ;;  %v730_v33 = vld [vmem:[%s2624_s25 + $0x1208] sm:$0xff]  ;;  %v732_v34 = vld [vmem:[%s2624_s25 + $0x1210] sm:$0xff] }
  0xa0   : > { %729 = vst [vmem:[%s2629_s26 + $0x900] sm:$0xff] %v728_v32  ;;  %731 = vst [vmem:[%s2629_s26 + $0x908] sm:$0xff] %v730_v33  ;;  %v734_v35 = vld [vmem:[%s2624_s25 + $0x1218] sm:$0xff]  ;;  %v736_v36 = vld [vmem:[%s2624_s25 + $0x1220] sm:$0xff] }
  0xa1   : > { %733 = vst [vmem:[%s2629_s26 + $0x910] sm:$0xff] %v732_v34  ;;  %v738_v37 = vld [vmem:[%s2624_s25 + $0x1228] sm:$0xff]  ;;  %735 = vst [vmem:[%s2629_s26 + $0x918] sm:$0xff] %v734_v35  ;;  %v740_v38 = vld [vmem:[%s2624_s25 + $0x1230] sm:$0xff] }
  0xa2   : > { %737 = vst [vmem:[%s2629_s26 + $0x920] sm:$0xff] %v736_v36  ;;  %739 = vst [vmem:[%s2629_s26 + $0x928] sm:$0xff] %v738_v37  ;;  %v742_v39 = vld [vmem:[%s2624_s25 + $0x1238] sm:$0xff]  ;;  %v744_v40 = vld [vmem:[%s2624_s25 + $0x1280] sm:$0xff] }
  0xa3   : > { %741 = vst [vmem:[%s2629_s26 + $0x930] sm:$0xff] %v740_v38  ;;  %743 = vst [vmem:[%s2629_s26 + $0x938] sm:$0xff] %v742_v39  ;;  %v746_v41 = vld [vmem:[%s2624_s25 + $0x1288] sm:$0xff]  ;;  %v748_v42 = vld [vmem:[%s2624_s25 + $0x1290] sm:$0xff] }
  0xa4   : > { %745 = vst [vmem:[%s2629_s26 + $0x940] sm:$0xff] %v744_v40  ;;  %v750_v43 = vld [vmem:[%s2624_s25 + $0x1298] sm:$0xff]  ;;  %747 = vst [vmem:[%s2629_s26 + $0x948] sm:$0xff] %v746_v41  ;;  %v752_v44 = vld [vmem:[%s2624_s25 + $0x12a0] sm:$0xff] }
  0xa5   : > { %749 = vst [vmem:[%s2629_s26 + $0x950] sm:$0xff] %v748_v42  ;;  %751 = vst [vmem:[%s2629_s26 + $0x958] sm:$0xff] %v750_v43  ;;  %v754_v45 = vld [vmem:[%s2624_s25 + $0x12a8] sm:$0xff]  ;;  %v756_v46 = vld [vmem:[%s2624_s25 + $0x12b0] sm:$0xff] }
  0xa6   : > { %753 = vst [vmem:[%s2629_s26 + $0x960] sm:$0xff] %v752_v44  ;;  %755 = vst [vmem:[%s2629_s26 + $0x968] sm:$0xff] %v754_v45  ;;  %v758_v47 = vld [vmem:[%s2624_s25 + $0x12b8] sm:$0xff]  ;;  %v760_v48 = vld [vmem:[%s2624_s25 + $0x1300] sm:$0xff] }
  0xa7   : > { %757 = vst [vmem:[%s2629_s26 + $0x970] sm:$0xff] %v756_v46  ;;  %v762_v49 = vld [vmem:[%s2624_s25 + $0x1308] sm:$0xff]  ;;  %759 = vst [vmem:[%s2629_s26 + $0x978] sm:$0xff] %v758_v47  ;;  %v764_v50 = vld [vmem:[%s2624_s25 + $0x1310] sm:$0xff] }
  0xa8   : > { %761 = vst [vmem:[%s2629_s26 + $0x980] sm:$0xff] %v760_v48  ;;  %763 = vst [vmem:[%s2629_s26 + $0x988] sm:$0xff] %v762_v49  ;;  %v766_v51 = vld [vmem:[%s2624_s25 + $0x1318] sm:$0xff]  ;;  %v768_v52 = vld [vmem:[%s2624_s25 + $0x1320] sm:$0xff] }
  0xa9   : > { %765 = vst [vmem:[%s2629_s26 + $0x990] sm:$0xff] %v764_v50  ;;  %767 = vst [vmem:[%s2629_s26 + $0x998] sm:$0xff] %v766_v51  ;;  %v770_v53 = vld [vmem:[%s2624_s25 + $0x1328] sm:$0xff]  ;;  %v772_v54 = vld [vmem:[%s2624_s25 + $0x1330] sm:$0xff] }
  0xaa   : > { %769 = vst [vmem:[%s2629_s26 + $0x9a0] sm:$0xff] %v768_v52  ;;  %v774_v55 = vld [vmem:[%s2624_s25 + $0x1338] sm:$0xff]  ;;  %771 = vst [vmem:[%s2629_s26 + $0x9a8] sm:$0xff] %v770_v53  ;;  %v776_v56 = vld [vmem:[%s2624_s25 + $0x1380] sm:$0xff] }
  0xab   : > { %773 = vst [vmem:[%s2629_s26 + $0x9b0] sm:$0xff] %v772_v54  ;;  %775 = vst [vmem:[%s2629_s26 + $0x9b8] sm:$0xff] %v774_v55  ;;  %v778_v57 = vld [vmem:[%s2624_s25 + $0x1388] sm:$0xff]  ;;  %v780_v58 = vld [vmem:[%s2624_s25 + $0x1390] sm:$0xff] }
  0xac   : > { %777 = vst [vmem:[%s2629_s26 + $0x9c0] sm:$0xff] %v776_v56  ;;  %779 = vst [vmem:[%s2629_s26 + $0x9c8] sm:$0xff] %v778_v57  ;;  %v782_v59 = vld [vmem:[%s2624_s25 + $0x1398] sm:$0xff]  ;;  %v784_v60 = vld [vmem:[%s2624_s25 + $0x13a0] sm:$0xff] }
  0xad   : > { %781 = vst [vmem:[%s2629_s26 + $0x9d0] sm:$0xff] %v780_v58  ;;  %v786_v61 = vld [vmem:[%s2624_s25 + $0x13a8] sm:$0xff]  ;;  %783 = vst [vmem:[%s2629_s26 + $0x9d8] sm:$0xff] %v782_v59  ;;  %v788_v62 = vld [vmem:[%s2624_s25 + $0x13b0] sm:$0xff] }
  0xae   : > { %785 = vst [vmem:[%s2629_s26 + $0x9e0] sm:$0xff] %v784_v60  ;;  %787 = vst [vmem:[%s2629_s26 + $0x9e8] sm:$0xff] %v786_v61  ;;  %v790_v63 = vld [vmem:[%s2624_s25 + $0x13b8] sm:$0xff]  ;;  %v792_v0 = vld [vmem:[%s2624_s25 + $0x1400] sm:$0xff] }
  0xaf   : > { %789 = vst [vmem:[%s2629_s26 + $0x9f0] sm:$0xff] %v788_v62  ;;  %791 = vst [vmem:[%s2629_s26 + $0x9f8] sm:$0xff] %v790_v63  ;;  %v794_v1 = vld [vmem:[%s2624_s25 + $0x1408] sm:$0xff]  ;;  %v796_v2 = vld [vmem:[%s2624_s25 + $0x1410] sm:$0xff] }
  0xb0   : > { %793 = vst [vmem:[%s2629_s26 + $0xa00] sm:$0xff] %v792_v0  ;;  %v798_v3 = vld [vmem:[%s2624_s25 + $0x1418] sm:$0xff]  ;;  %795 = vst [vmem:[%s2629_s26 + $0xa08] sm:$0xff] %v794_v1  ;;  %v800_v4 = vld [vmem:[%s2624_s25 + $0x1420] sm:$0xff] }
  0xb1   : > { %797 = vst [vmem:[%s2629_s26 + $0xa10] sm:$0xff] %v796_v2  ;;  %799 = vst [vmem:[%s2629_s26 + $0xa18] sm:$0xff] %v798_v3  ;;  %v802_v5 = vld [vmem:[%s2624_s25 + $0x1428] sm:$0xff]  ;;  %v804_v6 = vld [vmem:[%s2624_s25 + $0x1430] sm:$0xff] }
  0xb2   : > { %801 = vst [vmem:[%s2629_s26 + $0xa20] sm:$0xff] %v800_v4  ;;  %803 = vst [vmem:[%s2629_s26 + $0xa28] sm:$0xff] %v802_v5  ;;  %v806_v7 = vld [vmem:[%s2624_s25 + $0x1438] sm:$0xff]  ;;  %v808_v8 = vld [vmem:[%s2624_s25 + $0x1480] sm:$0xff] }
  0xb3   : > { %805 = vst [vmem:[%s2629_s26 + $0xa30] sm:$0xff] %v804_v6  ;;  %v810_v9 = vld [vmem:[%s2624_s25 + $0x1488] sm:$0xff]  ;;  %807 = vst [vmem:[%s2629_s26 + $0xa38] sm:$0xff] %v806_v7  ;;  %v812_v10 = vld [vmem:[%s2624_s25 + $0x1490] sm:$0xff] }
  0xb4   : > { %809 = vst [vmem:[%s2629_s26 + $0xa40] sm:$0xff] %v808_v8  ;;  %811 = vst [vmem:[%s2629_s26 + $0xa48] sm:$0xff] %v810_v9  ;;  %v814_v11 = vld [vmem:[%s2624_s25 + $0x1498] sm:$0xff]  ;;  %v816_v12 = vld [vmem:[%s2624_s25 + $0x14a0] sm:$0xff] }
  0xb5   : > { %813 = vst [vmem:[%s2629_s26 + $0xa50] sm:$0xff] %v812_v10  ;;  %815 = vst [vmem:[%s2629_s26 + $0xa58] sm:$0xff] %v814_v11  ;;  %v818_v13 = vld [vmem:[%s2624_s25 + $0x14a8] sm:$0xff]  ;;  %v820_v14 = vld [vmem:[%s2624_s25 + $0x14b0] sm:$0xff] }
  0xb6   : > { %817 = vst [vmem:[%s2629_s26 + $0xa60] sm:$0xff] %v816_v12  ;;  %v822_v15 = vld [vmem:[%s2624_s25 + $0x14b8] sm:$0xff]  ;;  %819 = vst [vmem:[%s2629_s26 + $0xa68] sm:$0xff] %v818_v13  ;;  %v824_v16 = vld [vmem:[%s2624_s25 + $0x1500] sm:$0xff] }
  0xb7   : > { %821 = vst [vmem:[%s2629_s26 + $0xa70] sm:$0xff] %v820_v14  ;;  %823 = vst [vmem:[%s2629_s26 + $0xa78] sm:$0xff] %v822_v15  ;;  %v826_v17 = vld [vmem:[%s2624_s25 + $0x1508] sm:$0xff]  ;;  %v828_v18 = vld [vmem:[%s2624_s25 + $0x1510] sm:$0xff] }
  0xb8   : > { %825 = vst [vmem:[%s2629_s26 + $0xa80] sm:$0xff] %v824_v16  ;;  %827 = vst [vmem:[%s2629_s26 + $0xa88] sm:$0xff] %v826_v17  ;;  %v830_v19 = vld [vmem:[%s2624_s25 + $0x1518] sm:$0xff]  ;;  %v832_v20 = vld [vmem:[%s2624_s25 + $0x1520] sm:$0xff] }
  0xb9   : > { %829 = vst [vmem:[%s2629_s26 + $0xa90] sm:$0xff] %v828_v18  ;;  %v834_v21 = vld [vmem:[%s2624_s25 + $0x1528] sm:$0xff]  ;;  %831 = vst [vmem:[%s2629_s26 + $0xa98] sm:$0xff] %v830_v19  ;;  %v836_v22 = vld [vmem:[%s2624_s25 + $0x1530] sm:$0xff] }
  0xba   : > { %833 = vst [vmem:[%s2629_s26 + $0xaa0] sm:$0xff] %v832_v20  ;;  %835 = vst [vmem:[%s2629_s26 + $0xaa8] sm:$0xff] %v834_v21  ;;  %v838_v23 = vld [vmem:[%s2624_s25 + $0x1538] sm:$0xff]  ;;  %v840_v24 = vld [vmem:[%s2624_s25 + $0x1580] sm:$0xff] }
  0xbb   : > { %837 = vst [vmem:[%s2629_s26 + $0xab0] sm:$0xff] %v836_v22  ;;  %839 = vst [vmem:[%s2629_s26 + $0xab8] sm:$0xff] %v838_v23  ;;  %v842_v25 = vld [vmem:[%s2624_s25 + $0x1588] sm:$0xff]  ;;  %v844_v26 = vld [vmem:[%s2624_s25 + $0x1590] sm:$0xff] }
  0xbc   : > { %841 = vst [vmem:[%s2629_s26 + $0xac0] sm:$0xff] %v840_v24  ;;  %v846_v27 = vld [vmem:[%s2624_s25 + $0x1598] sm:$0xff]  ;;  %843 = vst [vmem:[%s2629_s26 + $0xac8] sm:$0xff] %v842_v25  ;;  %v848_v28 = vld [vmem:[%s2624_s25 + $0x15a0] sm:$0xff] }
  0xbd   : > { %845 = vst [vmem:[%s2629_s26 + $0xad0] sm:$0xff] %v844_v26  ;;  %847 = vst [vmem:[%s2629_s26 + $0xad8] sm:$0xff] %v846_v27  ;;  %v850_v29 = vld [vmem:[%s2624_s25 + $0x15a8] sm:$0xff]  ;;  %v852_v30 = vld [vmem:[%s2624_s25 + $0x15b0] sm:$0xff] }
  0xbe   : > { %849 = vst [vmem:[%s2629_s26 + $0xae0] sm:$0xff] %v848_v28  ;;  %851 = vst [vmem:[%s2629_s26 + $0xae8] sm:$0xff] %v850_v29  ;;  %v854_v31 = vld [vmem:[%s2624_s25 + $0x15b8] sm:$0xff]  ;;  %v856_v32 = vld [vmem:[%s2624_s25 + $0x1600] sm:$0xff] }
  0xbf   : > { %853 = vst [vmem:[%s2629_s26 + $0xaf0] sm:$0xff] %v852_v30  ;;  %v858_v33 = vld [vmem:[%s2624_s25 + $0x1608] sm:$0xff]  ;;  %855 = vst [vmem:[%s2629_s26 + $0xaf8] sm:$0xff] %v854_v31  ;;  %v860_v34 = vld [vmem:[%s2624_s25 + $0x1610] sm:$0xff] }
  0xc0   : > { %857 = vst [vmem:[%s2629_s26 + $0xb00] sm:$0xff] %v856_v32  ;;  %859 = vst [vmem:[%s2629_s26 + $0xb08] sm:$0xff] %v858_v33  ;;  %v862_v35 = vld [vmem:[%s2624_s25 + $0x1618] sm:$0xff]  ;;  %v864_v36 = vld [vmem:[%s2624_s25 + $0x1620] sm:$0xff] }
  0xc1   : > { %861 = vst [vmem:[%s2629_s26 + $0xb10] sm:$0xff] %v860_v34  ;;  %863 = vst [vmem:[%s2629_s26 + $0xb18] sm:$0xff] %v862_v35  ;;  %v866_v37 = vld [vmem:[%s2624_s25 + $0x1628] sm:$0xff]  ;;  %v868_v38 = vld [vmem:[%s2624_s25 + $0x1630] sm:$0xff] }
  0xc2   : > { %865 = vst [vmem:[%s2629_s26 + $0xb20] sm:$0xff] %v864_v36  ;;  %v870_v39 = vld [vmem:[%s2624_s25 + $0x1638] sm:$0xff]  ;;  %867 = vst [vmem:[%s2629_s26 + $0xb28] sm:$0xff] %v866_v37  ;;  %v872_v40 = vld [vmem:[%s2624_s25 + $0x1680] sm:$0xff] }
  0xc3   : > { %869 = vst [vmem:[%s2629_s26 + $0xb30] sm:$0xff] %v868_v38  ;;  %871 = vst [vmem:[%s2629_s26 + $0xb38] sm:$0xff] %v870_v39  ;;  %v874_v41 = vld [vmem:[%s2624_s25 + $0x1688] sm:$0xff]  ;;  %v876_v42 = vld [vmem:[%s2624_s25 + $0x1690] sm:$0xff] }
  0xc4   : > { %873 = vst [vmem:[%s2629_s26 + $0xb40] sm:$0xff] %v872_v40  ;;  %875 = vst [vmem:[%s2629_s26 + $0xb48] sm:$0xff] %v874_v41  ;;  %v878_v43 = vld [vmem:[%s2624_s25 + $0x1698] sm:$0xff]  ;;  %v880_v44 = vld [vmem:[%s2624_s25 + $0x16a0] sm:$0xff] }
  0xc5   : > { %877 = vst [vmem:[%s2629_s26 + $0xb50] sm:$0xff] %v876_v42  ;;  %v882_v45 = vld [vmem:[%s2624_s25 + $0x16a8] sm:$0xff]  ;;  %879 = vst [vmem:[%s2629_s26 + $0xb58] sm:$0xff] %v878_v43  ;;  %v884_v46 = vld [vmem:[%s2624_s25 + $0x16b0] sm:$0xff] }
  0xc6   : > { %881 = vst [vmem:[%s2629_s26 + $0xb60] sm:$0xff] %v880_v44  ;;  %883 = vst [vmem:[%s2629_s26 + $0xb68] sm:$0xff] %v882_v45  ;;  %v886_v47 = vld [vmem:[%s2624_s25 + $0x16b8] sm:$0xff]  ;;  %v888_v48 = vld [vmem:[%s2624_s25 + $0x1700] sm:$0xff] }
  0xc7   : > { %885 = vst [vmem:[%s2629_s26 + $0xb70] sm:$0xff] %v884_v46  ;;  %887 = vst [vmem:[%s2629_s26 + $0xb78] sm:$0xff] %v886_v47  ;;  %v890_v49 = vld [vmem:[%s2624_s25 + $0x1708] sm:$0xff]  ;;  %v892_v50 = vld [vmem:[%s2624_s25 + $0x1710] sm:$0xff] }
  0xc8   : > { %889 = vst [vmem:[%s2629_s26 + $0xb80] sm:$0xff] %v888_v48  ;;  %v894_v51 = vld [vmem:[%s2624_s25 + $0x1718] sm:$0xff]  ;;  %891 = vst [vmem:[%s2629_s26 + $0xb88] sm:$0xff] %v890_v49  ;;  %v896_v52 = vld [vmem:[%s2624_s25 + $0x1720] sm:$0xff] }
  0xc9   : > { %893 = vst [vmem:[%s2629_s26 + $0xb90] sm:$0xff] %v892_v50  ;;  %895 = vst [vmem:[%s2629_s26 + $0xb98] sm:$0xff] %v894_v51  ;;  %v898_v53 = vld [vmem:[%s2624_s25 + $0x1728] sm:$0xff]  ;;  %v900_v54 = vld [vmem:[%s2624_s25 + $0x1730] sm:$0xff] }
  0xca   : > { %897 = vst [vmem:[%s2629_s26 + $0xba0] sm:$0xff] %v896_v52  ;;  %899 = vst [vmem:[%s2629_s26 + $0xba8] sm:$0xff] %v898_v53  ;;  %v902_v55 = vld [vmem:[%s2624_s25 + $0x1738] sm:$0xff]  ;;  %v904_v56 = vld [vmem:[%s2624_s25 + $0x1780] sm:$0xff] }
  0xcb   : > { %901 = vst [vmem:[%s2629_s26 + $0xbb0] sm:$0xff] %v900_v54  ;;  %v906_v57 = vld [vmem:[%s2624_s25 + $0x1788] sm:$0xff]  ;;  %903 = vst [vmem:[%s2629_s26 + $0xbb8] sm:$0xff] %v902_v55  ;;  %v908_v58 = vld [vmem:[%s2624_s25 + $0x1790] sm:$0xff] }
  0xcc   : > { %905 = vst [vmem:[%s2629_s26 + $0xbc0] sm:$0xff] %v904_v56  ;;  %907 = vst [vmem:[%s2629_s26 + $0xbc8] sm:$0xff] %v906_v57  ;;  %v910_v59 = vld [vmem:[%s2624_s25 + $0x1798] sm:$0xff]  ;;  %v912_v60 = vld [vmem:[%s2624_s25 + $0x17a0] sm:$0xff] }
  0xcd   : > { %909 = vst [vmem:[%s2629_s26 + $0xbd0] sm:$0xff] %v908_v58  ;;  %911 = vst [vmem:[%s2629_s26 + $0xbd8] sm:$0xff] %v910_v59  ;;  %v914_v61 = vld [vmem:[%s2624_s25 + $0x17a8] sm:$0xff]  ;;  %v916_v62 = vld [vmem:[%s2624_s25 + $0x17b0] sm:$0xff] }
  0xce   : > { %913 = vst [vmem:[%s2629_s26 + $0xbe0] sm:$0xff] %v912_v60  ;;  %v918_v63 = vld [vmem:[%s2624_s25 + $0x17b8] sm:$0xff]  ;;  %915 = vst [vmem:[%s2629_s26 + $0xbe8] sm:$0xff] %v914_v61  ;;  %v920_v0 = vld [vmem:[%s2624_s25 + $0x1800] sm:$0xff] }
  0xcf   : > { %917 = vst [vmem:[%s2629_s26 + $0xbf0] sm:$0xff] %v916_v62  ;;  %919 = vst [vmem:[%s2629_s26 + $0xbf8] sm:$0xff] %v918_v63  ;;  %v922_v1 = vld [vmem:[%s2624_s25 + $0x1808] sm:$0xff]  ;;  %v924_v2 = vld [vmem:[%s2624_s25 + $0x1810] sm:$0xff] }
  0xd0   : > { %921 = vst [vmem:[%s2629_s26 + $0xc00] sm:$0xff] %v920_v0  ;;  %923 = vst [vmem:[%s2629_s26 + $0xc08] sm:$0xff] %v922_v1  ;;  %v926_v3 = vld [vmem:[%s2624_s25 + $0x1818] sm:$0xff]  ;;  %v928_v4 = vld [vmem:[%s2624_s25 + $0x1820] sm:$0xff] }
  0xd1   : > { %925 = vst [vmem:[%s2629_s26 + $0xc10] sm:$0xff] %v924_v2  ;;  %v930_v5 = vld [vmem:[%s2624_s25 + $0x1828] sm:$0xff]  ;;  %927 = vst [vmem:[%s2629_s26 + $0xc18] sm:$0xff] %v926_v3  ;;  %v932_v6 = vld [vmem:[%s2624_s25 + $0x1830] sm:$0xff] }
  0xd2   : > { %929 = vst [vmem:[%s2629_s26 + $0xc20] sm:$0xff] %v928_v4  ;;  %931 = vst [vmem:[%s2629_s26 + $0xc28] sm:$0xff] %v930_v5  ;;  %v934_v7 = vld [vmem:[%s2624_s25 + $0x1838] sm:$0xff]  ;;  %v936_v8 = vld [vmem:[%s2624_s25 + $0x1880] sm:$0xff] }
  0xd3   : > { %933 = vst [vmem:[%s2629_s26 + $0xc30] sm:$0xff] %v932_v6  ;;  %935 = vst [vmem:[%s2629_s26 + $0xc38] sm:$0xff] %v934_v7  ;;  %v938_v9 = vld [vmem:[%s2624_s25 + $0x1888] sm:$0xff]  ;;  %v940_v10 = vld [vmem:[%s2624_s25 + $0x1890] sm:$0xff] }
  0xd4   : > { %937 = vst [vmem:[%s2629_s26 + $0xc40] sm:$0xff] %v936_v8  ;;  %v942_v11 = vld [vmem:[%s2624_s25 + $0x1898] sm:$0xff]  ;;  %939 = vst [vmem:[%s2629_s26 + $0xc48] sm:$0xff] %v938_v9  ;;  %v944_v12 = vld [vmem:[%s2624_s25 + $0x18a0] sm:$0xff] }
  0xd5   : > { %941 = vst [vmem:[%s2629_s26 + $0xc50] sm:$0xff] %v940_v10  ;;  %943 = vst [vmem:[%s2629_s26 + $0xc58] sm:$0xff] %v942_v11  ;;  %v946_v13 = vld [vmem:[%s2624_s25 + $0x18a8] sm:$0xff]  ;;  %v948_v14 = vld [vmem:[%s2624_s25 + $0x18b0] sm:$0xff] }
  0xd6   : > { %945 = vst [vmem:[%s2629_s26 + $0xc60] sm:$0xff] %v944_v12  ;;  %947 = vst [vmem:[%s2629_s26 + $0xc68] sm:$0xff] %v946_v13  ;;  %v950_v15 = vld [vmem:[%s2624_s25 + $0x18b8] sm:$0xff]  ;;  %v952_v16 = vld [vmem:[%s2624_s25 + $0x1900] sm:$0xff] }
  0xd7   : > { %949 = vst [vmem:[%s2629_s26 + $0xc70] sm:$0xff] %v948_v14  ;;  %v954_v17 = vld [vmem:[%s2624_s25 + $0x1908] sm:$0xff]  ;;  %951 = vst [vmem:[%s2629_s26 + $0xc78] sm:$0xff] %v950_v15  ;;  %v956_v18 = vld [vmem:[%s2624_s25 + $0x1910] sm:$0xff] }
  0xd8   : > { %953 = vst [vmem:[%s2629_s26 + $0xc80] sm:$0xff] %v952_v16  ;;  %955 = vst [vmem:[%s2629_s26 + $0xc88] sm:$0xff] %v954_v17  ;;  %v958_v19 = vld [vmem:[%s2624_s25 + $0x1918] sm:$0xff]  ;;  %v960_v20 = vld [vmem:[%s2624_s25 + $0x1920] sm:$0xff] }
  0xd9   : > { %957 = vst [vmem:[%s2629_s26 + $0xc90] sm:$0xff] %v956_v18  ;;  %959 = vst [vmem:[%s2629_s26 + $0xc98] sm:$0xff] %v958_v19  ;;  %v962_v21 = vld [vmem:[%s2624_s25 + $0x1928] sm:$0xff]  ;;  %v964_v22 = vld [vmem:[%s2624_s25 + $0x1930] sm:$0xff] }
  0xda   : > { %961 = vst [vmem:[%s2629_s26 + $0xca0] sm:$0xff] %v960_v20  ;;  %v966_v23 = vld [vmem:[%s2624_s25 + $0x1938] sm:$0xff]  ;;  %963 = vst [vmem:[%s2629_s26 + $0xca8] sm:$0xff] %v962_v21  ;;  %v968_v24 = vld [vmem:[%s2624_s25 + $0x1980] sm:$0xff] }
  0xdb   : > { %965 = vst [vmem:[%s2629_s26 + $0xcb0] sm:$0xff] %v964_v22  ;;  %967 = vst [vmem:[%s2629_s26 + $0xcb8] sm:$0xff] %v966_v23  ;;  %v970_v25 = vld [vmem:[%s2624_s25 + $0x1988] sm:$0xff]  ;;  %v972_v26 = vld [vmem:[%s2624_s25 + $0x1990] sm:$0xff] }
  0xdc   : > { %969 = vst [vmem:[%s2629_s26 + $0xcc0] sm:$0xff] %v968_v24  ;;  %971 = vst [vmem:[%s2629_s26 + $0xcc8] sm:$0xff] %v970_v25  ;;  %v974_v27 = vld [vmem:[%s2624_s25 + $0x1998] sm:$0xff]  ;;  %v976_v28 = vld [vmem:[%s2624_s25 + $0x19a0] sm:$0xff] }
  0xdd   : > { %973 = vst [vmem:[%s2629_s26 + $0xcd0] sm:$0xff] %v972_v26  ;;  %v978_v29 = vld [vmem:[%s2624_s25 + $0x19a8] sm:$0xff]  ;;  %975 = vst [vmem:[%s2629_s26 + $0xcd8] sm:$0xff] %v974_v27  ;;  %v980_v30 = vld [vmem:[%s2624_s25 + $0x19b0] sm:$0xff] }
  0xde   : > { %977 = vst [vmem:[%s2629_s26 + $0xce0] sm:$0xff] %v976_v28  ;;  %979 = vst [vmem:[%s2629_s26 + $0xce8] sm:$0xff] %v978_v29  ;;  %v982_v31 = vld [vmem:[%s2624_s25 + $0x19b8] sm:$0xff]  ;;  %v984_v32 = vld [vmem:[%s2624_s25 + $0x1a00] sm:$0xff] }
  0xdf   : > { %981 = vst [vmem:[%s2629_s26 + $0xcf0] sm:$0xff] %v980_v30  ;;  %983 = vst [vmem:[%s2629_s26 + $0xcf8] sm:$0xff] %v982_v31  ;;  %v986_v33 = vld [vmem:[%s2624_s25 + $0x1a08] sm:$0xff]  ;;  %v988_v34 = vld [vmem:[%s2624_s25 + $0x1a10] sm:$0xff] }
  0xe0   : > { %985 = vst [vmem:[%s2629_s26 + $0xd00] sm:$0xff] %v984_v32  ;;  %v990_v35 = vld [vmem:[%s2624_s25 + $0x1a18] sm:$0xff]  ;;  %987 = vst [vmem:[%s2629_s26 + $0xd08] sm:$0xff] %v986_v33  ;;  %v992_v36 = vld [vmem:[%s2624_s25 + $0x1a20] sm:$0xff] }
  0xe1   : > { %989 = vst [vmem:[%s2629_s26 + $0xd10] sm:$0xff] %v988_v34  ;;  %991 = vst [vmem:[%s2629_s26 + $0xd18] sm:$0xff] %v990_v35  ;;  %v994_v37 = vld [vmem:[%s2624_s25 + $0x1a28] sm:$0xff]  ;;  %v996_v38 = vld [vmem:[%s2624_s25 + $0x1a30] sm:$0xff] }
  0xe2   : > { %993 = vst [vmem:[%s2629_s26 + $0xd20] sm:$0xff] %v992_v36  ;;  %995 = vst [vmem:[%s2629_s26 + $0xd28] sm:$0xff] %v994_v37  ;;  %v998_v39 = vld [vmem:[%s2624_s25 + $0x1a38] sm:$0xff]  ;;  %v1000_v40 = vld [vmem:[%s2624_s25 + $0x1a80] sm:$0xff] }
  0xe3   : > { %997 = vst [vmem:[%s2629_s26 + $0xd30] sm:$0xff] %v996_v38  ;;  %v1002_v41 = vld [vmem:[%s2624_s25 + $0x1a88] sm:$0xff]  ;;  %999 = vst [vmem:[%s2629_s26 + $0xd38] sm:$0xff] %v998_v39  ;;  %v1004_v42 = vld [vmem:[%s2624_s25 + $0x1a90] sm:$0xff] }
  0xe4   : > { %1001 = vst [vmem:[%s2629_s26 + $0xd40] sm:$0xff] %v1000_v40  ;;  %1003 = vst [vmem:[%s2629_s26 + $0xd48] sm:$0xff] %v1002_v41  ;;  %v1006_v43 = vld [vmem:[%s2624_s25 + $0x1a98] sm:$0xff]  ;;  %v1008_v44 = vld [vmem:[%s2624_s25 + $0x1aa0] sm:$0xff] }
  0xe5   : > { %1005 = vst [vmem:[%s2629_s26 + $0xd50] sm:$0xff] %v1004_v42  ;;  %1007 = vst [vmem:[%s2629_s26 + $0xd58] sm:$0xff] %v1006_v43  ;;  %v1010_v45 = vld [vmem:[%s2624_s25 + $0x1aa8] sm:$0xff]  ;;  %v1012_v46 = vld [vmem:[%s2624_s25 + $0x1ab0] sm:$0xff] }
  0xe6   : > { %1009 = vst [vmem:[%s2629_s26 + $0xd60] sm:$0xff] %v1008_v44  ;;  %v1014_v47 = vld [vmem:[%s2624_s25 + $0x1ab8] sm:$0xff]  ;;  %1011 = vst [vmem:[%s2629_s26 + $0xd68] sm:$0xff] %v1010_v45  ;;  %v1016_v48 = vld [vmem:[%s2624_s25 + $0x1b00] sm:$0xff] }
  0xe7   : > { %1013 = vst [vmem:[%s2629_s26 + $0xd70] sm:$0xff] %v1012_v46  ;;  %1015 = vst [vmem:[%s2629_s26 + $0xd78] sm:$0xff] %v1014_v47  ;;  %v1018_v49 = vld [vmem:[%s2624_s25 + $0x1b08] sm:$0xff]  ;;  %v1020_v50 = vld [vmem:[%s2624_s25 + $0x1b10] sm:$0xff] }
  0xe8   : > { %1017 = vst [vmem:[%s2629_s26 + $0xd80] sm:$0xff] %v1016_v48  ;;  %1019 = vst [vmem:[%s2629_s26 + $0xd88] sm:$0xff] %v1018_v49  ;;  %v1022_v51 = vld [vmem:[%s2624_s25 + $0x1b18] sm:$0xff]  ;;  %v1024_v52 = vld [vmem:[%s2624_s25 + $0x1b20] sm:$0xff] }
  0xe9   : > { %1021 = vst [vmem:[%s2629_s26 + $0xd90] sm:$0xff] %v1020_v50  ;;  %v1026_v53 = vld [vmem:[%s2624_s25 + $0x1b28] sm:$0xff]  ;;  %1023 = vst [vmem:[%s2629_s26 + $0xd98] sm:$0xff] %v1022_v51  ;;  %v1028_v54 = vld [vmem:[%s2624_s25 + $0x1b30] sm:$0xff] }
  0xea   : > { %1025 = vst [vmem:[%s2629_s26 + $0xda0] sm:$0xff] %v1024_v52  ;;  %1027 = vst [vmem:[%s2629_s26 + $0xda8] sm:$0xff] %v1026_v53  ;;  %v1030_v55 = vld [vmem:[%s2624_s25 + $0x1b38] sm:$0xff]  ;;  %v1032_v56 = vld [vmem:[%s2624_s25 + $0x1b80] sm:$0xff] }
  0xeb   : > { %1029 = vst [vmem:[%s2629_s26 + $0xdb0] sm:$0xff] %v1028_v54  ;;  %1031 = vst [vmem:[%s2629_s26 + $0xdb8] sm:$0xff] %v1030_v55  ;;  %v1034_v57 = vld [vmem:[%s2624_s25 + $0x1b88] sm:$0xff]  ;;  %v1036_v58 = vld [vmem:[%s2624_s25 + $0x1b90] sm:$0xff] }
  0xec   : > { %1033 = vst [vmem:[%s2629_s26 + $0xdc0] sm:$0xff] %v1032_v56  ;;  %v1038_v59 = vld [vmem:[%s2624_s25 + $0x1b98] sm:$0xff]  ;;  %1035 = vst [vmem:[%s2629_s26 + $0xdc8] sm:$0xff] %v1034_v57  ;;  %v1040_v60 = vld [vmem:[%s2624_s25 + $0x1ba0] sm:$0xff] }
  0xed   : > { %1037 = vst [vmem:[%s2629_s26 + $0xdd0] sm:$0xff] %v1036_v58  ;;  %1039 = vst [vmem:[%s2629_s26 + $0xdd8] sm:$0xff] %v1038_v59  ;;  %v1042_v61 = vld [vmem:[%s2624_s25 + $0x1ba8] sm:$0xff]  ;;  %v1044_v62 = vld [vmem:[%s2624_s25 + $0x1bb0] sm:$0xff] }
  0xee   : > { %1041 = vst [vmem:[%s2629_s26 + $0xde0] sm:$0xff] %v1040_v60  ;;  %1043 = vst [vmem:[%s2629_s26 + $0xde8] sm:$0xff] %v1042_v61  ;;  %v1046_v63 = vld [vmem:[%s2624_s25 + $0x1bb8] sm:$0xff]  ;;  %v1048_v0 = vld [vmem:[%s2624_s25 + $0x1c00] sm:$0xff] }
  0xef   : > { %1045 = vst [vmem:[%s2629_s26 + $0xdf0] sm:$0xff] %v1044_v62  ;;  %v1050_v1 = vld [vmem:[%s2624_s25 + $0x1c08] sm:$0xff]  ;;  %1047 = vst [vmem:[%s2629_s26 + $0xdf8] sm:$0xff] %v1046_v63  ;;  %v1052_v2 = vld [vmem:[%s2624_s25 + $0x1c10] sm:$0xff] }
  0xf0   : > { %1049 = vst [vmem:[%s2629_s26 + $0xe00] sm:$0xff] %v1048_v0  ;;  %1051 = vst [vmem:[%s2629_s26 + $0xe08] sm:$0xff] %v1050_v1  ;;  %v1054_v3 = vld [vmem:[%s2624_s25 + $0x1c18] sm:$0xff]  ;;  %v1056_v4 = vld [vmem:[%s2624_s25 + $0x1c20] sm:$0xff] }
  0xf1   : > { %1053 = vst [vmem:[%s2629_s26 + $0xe10] sm:$0xff] %v1052_v2  ;;  %1055 = vst [vmem:[%s2629_s26 + $0xe18] sm:$0xff] %v1054_v3  ;;  %v1058_v5 = vld [vmem:[%s2624_s25 + $0x1c28] sm:$0xff]  ;;  %v1060_v6 = vld [vmem:[%s2624_s25 + $0x1c30] sm:$0xff] }
  0xf2   : > { %1057 = vst [vmem:[%s2629_s26 + $0xe20] sm:$0xff] %v1056_v4  ;;  %v1062_v7 = vld [vmem:[%s2624_s25 + $0x1c38] sm:$0xff]  ;;  %1059 = vst [vmem:[%s2629_s26 + $0xe28] sm:$0xff] %v1058_v5  ;;  %v1064_v8 = vld [vmem:[%s2624_s25 + $0x1c80] sm:$0xff] }
  0xf3   : > { %1061 = vst [vmem:[%s2629_s26 + $0xe30] sm:$0xff] %v1060_v6  ;;  %1063 = vst [vmem:[%s2629_s26 + $0xe38] sm:$0xff] %v1062_v7  ;;  %v1066_v9 = vld [vmem:[%s2624_s25 + $0x1c88] sm:$0xff]  ;;  %v1068_v10 = vld [vmem:[%s2624_s25 + $0x1c90] sm:$0xff] }
  0xf4   : > { %1065 = vst [vmem:[%s2629_s26 + $0xe40] sm:$0xff] %v1064_v8  ;;  %1067 = vst [vmem:[%s2629_s26 + $0xe48] sm:$0xff] %v1066_v9  ;;  %v1070_v11 = vld [vmem:[%s2624_s25 + $0x1c98] sm:$0xff]  ;;  %v1072_v12 = vld [vmem:[%s2624_s25 + $0x1ca0] sm:$0xff] }
  0xf5   : > { %1069 = vst [vmem:[%s2629_s26 + $0xe50] sm:$0xff] %v1068_v10  ;;  %v1074_v13 = vld [vmem:[%s2624_s25 + $0x1ca8] sm:$0xff]  ;;  %1071 = vst [vmem:[%s2629_s26 + $0xe58] sm:$0xff] %v1070_v11  ;;  %v1076_v14 = vld [vmem:[%s2624_s25 + $0x1cb0] sm:$0xff] }
  0xf6   : > { %1073 = vst [vmem:[%s2629_s26 + $0xe60] sm:$0xff] %v1072_v12  ;;  %1075 = vst [vmem:[%s2629_s26 + $0xe68] sm:$0xff] %v1074_v13  ;;  %v1078_v15 = vld [vmem:[%s2624_s25 + $0x1cb8] sm:$0xff]  ;;  %v1080_v16 = vld [vmem:[%s2624_s25 + $0x1d00] sm:$0xff] }
  0xf7   : > { %1077 = vst [vmem:[%s2629_s26 + $0xe70] sm:$0xff] %v1076_v14  ;;  %1079 = vst [vmem:[%s2629_s26 + $0xe78] sm:$0xff] %v1078_v15  ;;  %v1082_v17 = vld [vmem:[%s2624_s25 + $0x1d08] sm:$0xff]  ;;  %v1084_v18 = vld [vmem:[%s2624_s25 + $0x1d10] sm:$0xff] }
  0xf8   : > { %1081 = vst [vmem:[%s2629_s26 + $0xe80] sm:$0xff] %v1080_v16  ;;  %v1086_v19 = vld [vmem:[%s2624_s25 + $0x1d18] sm:$0xff]  ;;  %1083 = vst [vmem:[%s2629_s26 + $0xe88] sm:$0xff] %v1082_v17  ;;  %v1088_v20 = vld [vmem:[%s2624_s25 + $0x1d20] sm:$0xff] }
  0xf9   : > { %1085 = vst [vmem:[%s2629_s26 + $0xe90] sm:$0xff] %v1084_v18  ;;  %1087 = vst [vmem:[%s2629_s26 + $0xe98] sm:$0xff] %v1086_v19  ;;  %v1090_v21 = vld [vmem:[%s2624_s25 + $0x1d28] sm:$0xff]  ;;  %v1092_v22 = vld [vmem:[%s2624_s25 + $0x1d30] sm:$0xff] }
  0xfa   : > { %1089 = vst [vmem:[%s2629_s26 + $0xea0] sm:$0xff] %v1088_v20  ;;  %1091 = vst [vmem:[%s2629_s26 + $0xea8] sm:$0xff] %v1090_v21  ;;  %v1094_v23 = vld [vmem:[%s2624_s25 + $0x1d38] sm:$0xff]  ;;  %v1096_v24 = vld [vmem:[%s2624_s25 + $0x1d80] sm:$0xff] }
  0xfb   : > { %1093 = vst [vmem:[%s2629_s26 + $0xeb0] sm:$0xff] %v1092_v22  ;;  %v1098_v25 = vld [vmem:[%s2624_s25 + $0x1d88] sm:$0xff]  ;;  %1095 = vst [vmem:[%s2629_s26 + $0xeb8] sm:$0xff] %v1094_v23  ;;  %v1100_v26 = vld [vmem:[%s2624_s25 + $0x1d90] sm:$0xff] }
  0xfc   : > { %1097 = vst [vmem:[%s2629_s26 + $0xec0] sm:$0xff] %v1096_v24  ;;  %1099 = vst [vmem:[%s2629_s26 + $0xec8] sm:$0xff] %v1098_v25  ;;  %v1102_v27 = vld [vmem:[%s2624_s25 + $0x1d98] sm:$0xff]  ;;  %v1104_v28 = vld [vmem:[%s2624_s25 + $0x1da0] sm:$0xff] }
  0xfd   : > { %1101 = vst [vmem:[%s2629_s26 + $0xed0] sm:$0xff] %v1100_v26  ;;  %1103 = vst [vmem:[%s2629_s26 + $0xed8] sm:$0xff] %v1102_v27  ;;  %v1106_v29 = vld [vmem:[%s2624_s25 + $0x1da8] sm:$0xff]  ;;  %v1108_v30 = vld [vmem:[%s2624_s25 + $0x1db0] sm:$0xff] }
  0xfe   : > { %1105 = vst [vmem:[%s2629_s26 + $0xee0] sm:$0xff] %v1104_v28  ;;  %v1110_v31 = vld [vmem:[%s2624_s25 + $0x1db8] sm:$0xff]  ;;  %1107 = vst [vmem:[%s2629_s26 + $0xee8] sm:$0xff] %v1106_v29  ;;  %v1112_v32 = vld [vmem:[%s2624_s25 + $0x1e00] sm:$0xff] }
  0xff   : > { %1109 = vst [vmem:[%s2629_s26 + $0xef0] sm:$0xff] %v1108_v30  ;;  %1111 = vst [vmem:[%s2629_s26 + $0xef8] sm:$0xff] %v1110_v31  ;;  %v1114_v33 = vld [vmem:[%s2624_s25 + $0x1e08] sm:$0xff]  ;;  %v1116_v34 = vld [vmem:[%s2624_s25 + $0x1e10] sm:$0xff] }
 0x100   : > { %1113 = vst [vmem:[%s2629_s26 + $0xf00] sm:$0xff] %v1112_v32  ;;  %1115 = vst [vmem:[%s2629_s26 + $0xf08] sm:$0xff] %v1114_v33  ;;  %v1118_v35 = vld [vmem:[%s2624_s25 + $0x1e18] sm:$0xff]  ;;  %v1120_v36 = vld [vmem:[%s2624_s25 + $0x1e20] sm:$0xff] }
 0x101   : > { %1117 = vst [vmem:[%s2629_s26 + $0xf10] sm:$0xff] %v1116_v34  ;;  %v1122_v37 = vld [vmem:[%s2624_s25 + $0x1e28] sm:$0xff]  ;;  %1119 = vst [vmem:[%s2629_s26 + $0xf18] sm:$0xff] %v1118_v35  ;;  %v1124_v38 = vld [vmem:[%s2624_s25 + $0x1e30] sm:$0xff] }
 0x102   : > { %1121 = vst [vmem:[%s2629_s26 + $0xf20] sm:$0xff] %v1120_v36  ;;  %1123 = vst [vmem:[%s2629_s26 + $0xf28] sm:$0xff] %v1122_v37  ;;  %v1126_v39 = vld [vmem:[%s2624_s25 + $0x1e38] sm:$0xff]  ;;  %v1128_v40 = vld [vmem:[%s2624_s25 + $0x1e80] sm:$0xff] }
 0x103   : > { %1125 = vst [vmem:[%s2629_s26 + $0xf30] sm:$0xff] %v1124_v38  ;;  %1127 = vst [vmem:[%s2629_s26 + $0xf38] sm:$0xff] %v1126_v39  ;;  %v1130_v41 = vld [vmem:[%s2624_s25 + $0x1e88] sm:$0xff]  ;;  %v1132_v42 = vld [vmem:[%s2624_s25 + $0x1e90] sm:$0xff] }
 0x104   : > { %1129 = vst [vmem:[%s2629_s26 + $0xf40] sm:$0xff] %v1128_v40  ;;  %v1134_v43 = vld [vmem:[%s2624_s25 + $0x1e98] sm:$0xff]  ;;  %1131 = vst [vmem:[%s2629_s26 + $0xf48] sm:$0xff] %v1130_v41  ;;  %v1136_v44 = vld [vmem:[%s2624_s25 + $0x1ea0] sm:$0xff] }
 0x105   : > { %1133 = vst [vmem:[%s2629_s26 + $0xf50] sm:$0xff] %v1132_v42  ;;  %1135 = vst [vmem:[%s2629_s26 + $0xf58] sm:$0xff] %v1134_v43  ;;  %v1138_v45 = vld [vmem:[%s2624_s25 + $0x1ea8] sm:$0xff]  ;;  %v1140_v46 = vld [vmem:[%s2624_s25 + $0x1eb0] sm:$0xff] }
 0x106   : > { %1137 = vst [vmem:[%s2629_s26 + $0xf60] sm:$0xff] %v1136_v44  ;;  %1139 = vst [vmem:[%s2629_s26 + $0xf68] sm:$0xff] %v1138_v45  ;;  %v1142_v47 = vld [vmem:[%s2624_s25 + $0x1eb8] sm:$0xff]  ;;  %v1144_v48 = vld [vmem:[%s2624_s25 + $0x1f00] sm:$0xff] }
 0x107   : > { %1141 = vst [vmem:[%s2629_s26 + $0xf70] sm:$0xff] %v1140_v46  ;;  %v1146_v49 = vld [vmem:[%s2624_s25 + $0x1f08] sm:$0xff]  ;;  %1143 = vst [vmem:[%s2629_s26 + $0xf78] sm:$0xff] %v1142_v47  ;;  %v1148_v50 = vld [vmem:[%s2624_s25 + $0x1f10] sm:$0xff] }
 0x108   : > { %1145 = vst [vmem:[%s2629_s26 + $0xf80] sm:$0xff] %v1144_v48  ;;  %1147 = vst [vmem:[%s2629_s26 + $0xf88] sm:$0xff] %v1146_v49  ;;  %v1150_v51 = vld [vmem:[%s2624_s25 + $0x1f18] sm:$0xff]  ;;  %v1152_v52 = vld [vmem:[%s2624_s25 + $0x1f20] sm:$0xff] }
 0x109   : > { %1149 = vst [vmem:[%s2629_s26 + $0xf90] sm:$0xff] %v1148_v50  ;;  %1151 = vst [vmem:[%s2629_s26 + $0xf98] sm:$0xff] %v1150_v51  ;;  %v1154_v53 = vld [vmem:[%s2624_s25 + $0x1f28] sm:$0xff]  ;;  %v1156_v54 = vld [vmem:[%s2624_s25 + $0x1f30] sm:$0xff] }
 0x10a   : > { %1153 = vst [vmem:[%s2629_s26 + $0xfa0] sm:$0xff] %v1152_v52  ;;  %v1158_v55 = vld [vmem:[%s2624_s25 + $0x1f38] sm:$0xff]  ;;  %1155 = vst [vmem:[%s2629_s26 + $0xfa8] sm:$0xff] %v1154_v53  ;;  %v1160_v56 = vld [vmem:[%s2624_s25 + $0x1f80] sm:$0xff] }
 0x10b   : > { %1157 = vst [vmem:[%s2629_s26 + $0xfb0] sm:$0xff] %v1156_v54  ;;  %1159 = vst [vmem:[%s2629_s26 + $0xfb8] sm:$0xff] %v1158_v55  ;;  %v1162_v57 = vld [vmem:[%s2624_s25 + $0x1f88] sm:$0xff]  ;;  %v1164_v58 = vld [vmem:[%s2624_s25 + $0x1f90] sm:$0xff] }
 0x10c   : > { %1161 = vst [vmem:[%s2629_s26 + $0xfc0] sm:$0xff] %v1160_v56  ;;  %1163 = vst [vmem:[%s2629_s26 + $0xfc8] sm:$0xff] %v1162_v57  ;;  %v1166_v59 = vld [vmem:[%s2624_s25 + $0x1f98] sm:$0xff]  ;;  %v1168_v60 = vld [vmem:[%s2624_s25 + $0x1fa0] sm:$0xff] }
 0x10d   : > { %1165 = vst [vmem:[%s2629_s26 + $0xfd0] sm:$0xff] %v1164_v58  ;;  %v1170_v61 = vld [vmem:[%s2624_s25 + $0x1fa8] sm:$0xff]  ;;  %1167 = vst [vmem:[%s2629_s26 + $0xfd8] sm:$0xff] %v1166_v59  ;;  %v1172_v62 = vld [vmem:[%s2624_s25 + $0x1fb0] sm:$0xff] }
 0x10e   : > { %1169 = vst [vmem:[%s2629_s26 + $0xfe0] sm:$0xff] %v1168_v60  ;;  %1171 = vst [vmem:[%s2629_s26 + $0xfe8] sm:$0xff] %v1170_v61  ;;  %v1174_v63 = vld [vmem:[%s2624_s25 + $0x1fb8] sm:$0xff] }
 0x10f   : > { %1173 = vst [vmem:[%s2629_s26 + $0xff0] sm:$0xff] %v1172_v62  ;;  %1175 = vst [vmem:[%s2629_s26 + $0xff8] sm:$0xff] %v1174_v63 }
 0x110 PF: > { %p2511_p5 = scmp.ge.s32.totalorder %s2567_s14, 1  ;;  %p1188_p6 = scmp.lt.s32.totalorder %s2567_s14, 3 }
 0x112   : > { %p1189_p7 = pnand %p2511_p5, %p1188_p6 }
 0x113   : > { %s1195_s27 = sand.u32 (!%p1189_p7), 1, %s2559_s12   ;;  %s2513_s5 = sshll.u32 (!%p1189_p7), %s2504_s15, 3 }
 0x114   : > { %1192 = sbr.rel (%p1189_p7) target bundleno = 753 (0x2f1), region = 51  ;;  %s2512_s28 = sshll.u32 (!%p1189_p7), %s1195_s27, 12 }
 0x115   : > { %s3655_s29 = scalar_lea.vmem (!%p1189_p7), [#allocation2], %s2512_s28  ;;  %p1224_p8 = scmp.lt.s32.totalorder (!%p1189_p7), %s2513_s5, 15 }
 0x119   : > { %v1356_v0 = vld [vmem:[%s3655_s29 + $0x3c8] sm:$0xff]  ;;  %v1355_v2 = vld [vmem:[%s3655_s29 + $0x3c0] sm:$0xff]  ;;  %s4253_s5 = smov (!%p1224_p8, %s2513_s5), 15 }
 0x11a   : > { %v1612_v1 = vld [vmem:[%s3655_s29 + $0xbc8] sm:$0xff]  ;;  %1811 = vmatprep.subr.mxu0 %v1356_v0  ;;  %v1611_v3 = vld [vmem:[%s3655_s29 + $0xbc0] sm:$0xff]  ;;  %s1226_s8 = scalar_lea.vmem %s4247_s2, %s4253_s5  ;;  %s2515_s9 = sshll.u32 %s4253_s5, 1 }
 0x11b   : > { %1882 = vmatprep.subr.mxu1 %v1612_v1  ;;  %v1348_v4 = vld [vmem:[%s3655_s29 + $0x388] sm:$0xff]  ;;  %1812 = vmatpush1.msra.mxu0 %v1355_v2  ;;  %v1347_v6 = vld [vmem:[%s3655_s29 + $0x380] sm:$0xff]  ;;  %s4225_s12 = scalar_lea.vmem %s4248_s3, %s2515_s9 }
 0x11c   : > { %v1604_v5 = vld [vmem:[%s3655_s29 + $0xb88] sm:$0xff]  ;;  %1883 = vmatpush1.msra.mxu1 %v1611_v3  ;;  %v1603_v7 = vld [vmem:[%s3655_s29 + $0xb80] sm:$0xff]  ;;  %1813 = vmatprep.subr.mxu0 %v1348_v4 }
 0x11d   : > { %v1340_v8 = vld [vmem:[%s3655_s29 + $0x348] sm:$0xff]  ;;  %1884 = vmatprep.subr.mxu1 %v1604_v5  ;;  %v1339_v10 = vld [vmem:[%s3655_s29 + $0x340] sm:$0xff]  ;;  %1814 = vmatpush1.msra.mxu0 %v1347_v6 }
 0x11e   : > { %v1596_v9 = vld [vmem:[%s3655_s29 + $0xb48] sm:$0xff]  ;;  %v1595_v11 = vld [vmem:[%s3655_s29 + $0xb40] sm:$0xff]  ;;  %1885 = vmatpush1.msra.mxu1 %v1603_v7  ;;  %1815 = vmatprep.subr.mxu0 %v1340_v8 }
 0x11f   : > { %v1332_v12 = vld [vmem:[%s3655_s29 + $0x308] sm:$0xff]  ;;  %1886 = vmatprep.subr.mxu1 %v1596_v9  ;;  %v1331_v14 = vld [vmem:[%s3655_s29 + $0x300] sm:$0xff]  ;;  %1816 = vmatpush1.msra.mxu0 %v1339_v10 }
 0x120   : > { %v1588_v13 = vld [vmem:[%s3655_s29 + $0xb08] sm:$0xff]  ;;  %v1587_v15 = vld [vmem:[%s3655_s29 + $0xb00] sm:$0xff]  ;;  %1887 = vmatpush1.msra.mxu1 %v1595_v11  ;;  %1817 = vmatprep.subr.mxu0 %v1332_v12 }
 0x121   : > { %v1324_v16 = vld [vmem:[%s3655_s29 + $0x2c8] sm:$0xff]  ;;  %1888 = vmatprep.subr.mxu1 %v1588_v13  ;;  %v1323_v18 = vld [vmem:[%s3655_s29 + $0x2c0] sm:$0xff]  ;;  %1818 = vmatpush1.msra.mxu0 %v1331_v14 }
 0x122   : > { %v1580_v17 = vld [vmem:[%s3655_s29 + $0xac8] sm:$0xff]  ;;  %v1579_v19 = vld [vmem:[%s3655_s29 + $0xac0] sm:$0xff]  ;;  %1889 = vmatpush1.msra.mxu1 %v1587_v15  ;;  %1819 = vmatprep.subr.mxu0 %v1324_v16 }
 0x123   : > { %v1316_v20 = vld [vmem:[%s3655_s29 + $0x288] sm:$0xff]  ;;  %1890 = vmatprep.subr.mxu1 %v1580_v17  ;;  %v1315_v22 = vld [vmem:[%s3655_s29 + $0x280] sm:$0xff]  ;;  %1820 = vmatpush1.msra.mxu0 %v1323_v18 }
 0x124   : > { %v1572_v21 = vld [vmem:[%s3655_s29 + $0xa88] sm:$0xff]  ;;  %v1571_v23 = vld [vmem:[%s3655_s29 + $0xa80] sm:$0xff]  ;;  %1891 = vmatpush1.msra.mxu1 %v1579_v19  ;;  %1821 = vmatprep.subr.mxu0 %v1316_v20 }
 0x125   : > { %v1308_v24 = vld [vmem:[%s3655_s29 + $0x248] sm:$0xff]  ;;  %1892 = vmatprep.subr.mxu1 %v1572_v21  ;;  %v1307_v26 = vld [vmem:[%s3655_s29 + $0x240] sm:$0xff]  ;;  %1822 = vmatpush1.msra.mxu0 %v1315_v22 }
 0x126   : > { %v1564_v25 = vld [vmem:[%s3655_s29 + $0xa48] sm:$0xff]  ;;  %v1563_v27 = vld [vmem:[%s3655_s29 + $0xa40] sm:$0xff]  ;;  %1893 = vmatpush1.msra.mxu1 %v1571_v23  ;;  %1823 = vmatprep.subr.mxu0 %v1308_v24 }
 0x127   : > { %v1300_v28 = vld [vmem:[%s3655_s29 + $0x208] sm:$0xff]  ;;  %1894 = vmatprep.subr.mxu1 %v1564_v25  ;;  %v1299_v30 = vld [vmem:[%s3655_s29 + $0x200] sm:$0xff]  ;;  %1824 = vmatpush1.msra.mxu0 %v1307_v26 }
 0x128   : > { %v1556_v29 = vld [vmem:[%s3655_s29 + $0xa08] sm:$0xff]  ;;  %v1555_v31 = vld [vmem:[%s3655_s29 + $0xa00] sm:$0xff]  ;;  %1895 = vmatpush1.msra.mxu1 %v1563_v27  ;;  %1825 = vmatprep.subr.mxu0 %v1300_v28 }
 0x129   : > { %v1292_v32 = vld [vmem:[%s3655_s29 + $0x1c8] sm:$0xff]  ;;  %1896 = vmatprep.subr.mxu1 %v1556_v29  ;;  %v1291_v34 = vld [vmem:[%s3655_s29 + $0x1c0] sm:$0xff]  ;;  %1826 = vmatpush1.msra.mxu0 %v1299_v30  ;;  %v1749_v30 = vlaneseq }
 0x12a   : > { %v1548_v33 = vld [vmem:[%s3655_s29 + $0x9c8] sm:$0xff]  ;;  %v1547_v35 = vld [vmem:[%s3655_s29 + $0x9c0] sm:$0xff]  ;;  %1897 = vmatpush1.msra.mxu1 %v1555_v31  ;;  %1827 = vmatprep.subr.mxu0 %v1292_v32  ;;  %v2569_v31 = vmov 1983009808  }
 0x12b   : > { %v1284_v36 = vld [vmem:[%s3655_s29 + $0x188] sm:$0xff]  ;;  %1898 = vmatprep.subr.mxu1 %v1548_v33  ;;  %v1283_v38 = vld [vmem:[%s3655_s29 + $0x180] sm:$0xff]  ;;  %1828 = vmatpush1.msra.mxu0 %v1291_v34  ;;  %v1792_v32 = vunpack.c.l.s4 %v2569_v31  ;;  %v1581_v31 = vld [vmem:[%s3655_s29 + $0xad0] sm:$0xff] }
 0x12c   : > { %v1540_v37 = vld [vmem:[%s3655_s29 + $0x988] sm:$0xff]  ;;  %v1539_v39 = vld [vmem:[%s3655_s29 + $0x980] sm:$0xff]  ;;  %1899 = vmatpush1.msra.mxu1 %v1547_v35  ;;  %1829 = vmatprep.subr.mxu0 %v1284_v36 }
 0x12d   : > { %v1276_v40 = vld [vmem:[%s3655_s29 + $0x148] sm:$0xff]  ;;  %1900 = vmatprep.subr.mxu1 %v1540_v37  ;;  %v1275_v42 = vld [vmem:[%s3655_s29 + $0x140] sm:$0xff]  ;;  %1830 = vmatpush1.msra.mxu0 %v1283_v38 }
 0x12e   : > { %v1532_v41 = vld [vmem:[%s3655_s29 + $0x948] sm:$0xff]  ;;  %v1531_v43 = vld [vmem:[%s3655_s29 + $0x940] sm:$0xff]  ;;  %1901 = vmatpush1.msra.mxu1 %v1539_v39  ;;  %1831 = vmatprep.subr.mxu0 %v1276_v40 }
 0x12f   : > { %v1268_v44 = vld [vmem:[%s3655_s29 + $0x108] sm:$0xff]  ;;  %1902 = vmatprep.subr.mxu1 %v1532_v41  ;;  %v1267_v46 = vld [vmem:[%s3655_s29 + $0x100] sm:$0xff]  ;;  %1832 = vmatpush1.msra.mxu0 %v1275_v42  ;;  %v3759_v41 = vshrl.u32 %v1749_v30, 7  ;;  %v1793_v42 = vunpack.c.0.s8 %v1792_v32  ;;  %v1325_v30 = vld [vmem:[%s3655_s29 + $0x2d0] sm:$0xff] }
 0x130   : > { %v1524_v45 = vld [vmem:[%s3655_s29 + $0x908] sm:$0xff]  ;;  %v1523_v47 = vld [vmem:[%s3655_s29 + $0x900] sm:$0xff]  ;;  %1903 = vmatpush1.msra.mxu1 %v1531_v43  ;;  %1833 = vmatprep.subr.mxu0 %v1268_v44  ;;  %v1318_v32 = vld [vmem:[%s3655_s29 + $0x298] sm:$0xff] }
 0x131   : > { %v1260_v48 = vld [vmem:[%s3655_s29 + $0xc8] sm:$0xff]  ;;  %1904 = vmatprep.subr.mxu1 %v1524_v45  ;;  %v1259_v50 = vld [vmem:[%s3655_s29 + $0xc0] sm:$0xff]  ;;  %1834 = vmatpush1.msra.mxu0 %v1267_v46 }
 0x132   : > { %v1516_v49 = vld [vmem:[%s3655_s29 + $0x8c8] sm:$0xff]  ;;  %v1515_v51 = vld [vmem:[%s3655_s29 + $0x8c0] sm:$0xff]  ;;  %1905 = vmatpush1.msra.mxu1 %v1523_v47  ;;  %1835 = vmatprep.subr.mxu0 %v1260_v48 }
 0x133   : > { %v1252_v52 = vld [vmem:[%s3655_s29 + $0x88] sm:$0xff]  ;;  %1906 = vmatprep.subr.mxu1 %v1516_v49  ;;  %v1251_v54 = vld [vmem:[%s3655_s29 + $0x80] sm:$0xff]  ;;  %1836 = vmatpush1.msra.mxu0 %v1259_v50 }
 0x134   : > { %v1508_v53 = vld [vmem:[%s3655_s29 + $0x888] sm:$0xff]  ;;  %v1507_v55 = vld [vmem:[%s3655_s29 + $0x880] sm:$0xff]  ;;  %1907 = vmatpush1.msra.mxu1 %v1515_v51  ;;  %1837 = vmatprep.subr.mxu0 %v1252_v52  ;;  %v3773_v52 = vsub.s32 %v1793_v42, %v3759_v41  ;;  %v1558_v42 = vld [vmem:[%s3655_s29 + $0xa18] sm:$0xff] }
 0x135   : > { %v1244_v56 = vld [vmem:[%s3655_s29 + $0x48] sm:$0xff]  ;;  %1908 = vmatprep.subr.mxu1 %v1508_v53  ;;  %v1243_v58 = vld [vmem:[%s3655_s29 + $0x40] sm:$0xff]  ;;  %1838 = vmatpush1.msra.mxu0 %v1251_v54 }
 0x136   : > { %v1500_v57 = vld [vmem:[%s3655_s29 + $0x848] sm:$0xff]  ;;  %v1499_v59 = vld [vmem:[%s3655_s29 + $0x840] sm:$0xff]  ;;  %1909 = vmatpush1.msra.mxu1 %v1507_v55  ;;  %1839 = vmatprep.subr.mxu0 %v1244_v56 }
 0x137   : > { %v1236_v60 = vld [vmem:[%s3655_s29 + $0x8] sm:$0xff]  ;;  %1910 = vmatprep.subr.mxu1 %v1500_v57  ;;  %v1235_v62 = vld [vmem:[%s3655_s29] sm:$0xff]  ;;  %1840 = vmatpush1.msra.mxu0 %v1243_v58 }
 0x138   : > { %v1492_v61 = vld [vmem:[%s3655_s29 + $0x808] sm:$0xff]  ;;  %v1491_v63 = vld [vmem:[%s3655_s29 + $0x800] sm:$0xff]  ;;  %1911 = vmatpush1.msra.mxu1 %v1499_v59  ;;  %1841 = vmatprep.subr.mxu0 %v1236_v60 }
 0x139   : > { %v1484_v0 = vld [vmem:[%s3655_s29 + $0x7c8] sm:$0xff]  ;;  %1912 = vmatprep.subr.mxu1 %v1492_v61  ;;  %v1483_v2 = vld [vmem:[%s3655_s29 + $0x7c0] sm:$0xff]  ;;  %1842 = vmatpush1.msra.mxu0 %v1235_v62 }
 0x13a   : > { %v1740_v1 = vld [vmem:[%s3655_s29 + $0xfc8] sm:$0xff]  ;;  %v1739_v3 = vld [vmem:[%s3655_s29 + $0xfc0] sm:$0xff]  ;;  %1913 = vmatpush1.msra.mxu1 %v1491_v63  ;;  %1843 = vmatprep.subr.mxu0 %v1484_v0 }
 0x13b   : > { %v1476_v4 = vld [vmem:[%s3655_s29 + $0x788] sm:$0xff]  ;;  %1914 = vmatprep.subr.mxu1 %v1740_v1  ;;  %v1475_v6 = vld [vmem:[%s3655_s29 + $0x780] sm:$0xff]  ;;  %1844 = vmatpush2.msra.mxu0 %v1483_v2 }
 0x13c   : > { %v1732_v5 = vld [vmem:[%s3655_s29 + $0xf88] sm:$0xff]  ;;  %v1731_v7 = vld [vmem:[%s3655_s29 + $0xf80] sm:$0xff]  ;;  %1915 = vmatpush2.msra.mxu1 %v1739_v3  ;;  %1845 = vmatprep.subr.mxu0 %v1476_v4 }
 0x13d   : > { %v1468_v8 = vld [vmem:[%s3655_s29 + $0x748] sm:$0xff]  ;;  %1916 = vmatprep.subr.mxu1 %v1732_v5  ;;  %v1467_v10 = vld [vmem:[%s3655_s29 + $0x740] sm:$0xff]  ;;  %1846 = vmatpush2.msra.mxu0 %v1475_v6 }
 0x13e   : > { %v1724_v9 = vld [vmem:[%s3655_s29 + $0xf48] sm:$0xff]  ;;  %v1723_v11 = vld [vmem:[%s3655_s29 + $0xf40] sm:$0xff]  ;;  %1917 = vmatpush2.msra.mxu1 %v1731_v7  ;;  %1847 = vmatprep.subr.mxu0 %v1468_v8 }
 0x13f   : > { %v1460_v12 = vld [vmem:[%s3655_s29 + $0x708] sm:$0xff]  ;;  %1918 = vmatprep.subr.mxu1 %v1724_v9  ;;  %v1459_v14 = vld [vmem:[%s3655_s29 + $0x700] sm:$0xff]  ;;  %1848 = vmatpush2.msra.mxu0 %v1467_v10 }
 0x140   : > { %v1716_v13 = vld [vmem:[%s3655_s29 + $0xf08] sm:$0xff]  ;;  %v1715_v15 = vld [vmem:[%s3655_s29 + $0xf00] sm:$0xff]  ;;  %1919 = vmatpush2.msra.mxu1 %v1723_v11  ;;  %1849 = vmatprep.subr.mxu0 %v1460_v12  ;;  %v1358_v12 = vld [vmem:[%s3655_s29 + $0x3d8] sm:$0xff] }
 0x141   : > { %v1452_v16 = vld [vmem:[%s3655_s29 + $0x6c8] sm:$0xff]  ;;  %1920 = vmatprep.subr.mxu1 %v1716_v13  ;;  %v1451_v18 = vld [vmem:[%s3655_s29 + $0x6c0] sm:$0xff]  ;;  %1850 = vmatpush2.msra.mxu0 %v1459_v14  ;;  %v1614_v13 = vld [vmem:[%s3655_s29 + $0xbd8] sm:$0xff] }
 0x142   : > { %v1708_v17 = vld [vmem:[%s3655_s29 + $0xec8] sm:$0xff]  ;;  %v1707_v19 = vld [vmem:[%s3655_s29 + $0xec0] sm:$0xff]  ;;  %1921 = vmatpush2.msra.mxu1 %v1715_v15  ;;  %1851 = vmatprep.subr.mxu0 %v1452_v16  ;;  %v1357_v14 = vld [vmem:[%s3655_s29 + $0x3d0] sm:$0xff] }
 0x143   : > { %v1444_v20 = vld [vmem:[%s3655_s29 + $0x688] sm:$0xff]  ;;  %1922 = vmatprep.subr.mxu1 %v1708_v17  ;;  %v1443_v22 = vld [vmem:[%s3655_s29 + $0x680] sm:$0xff]  ;;  %1852 = vmatpush2.msra.mxu0 %v1451_v18  ;;  %v1613_v15 = vld [vmem:[%s3655_s29 + $0xbd0] sm:$0xff] }
 0x144   : > { %v1700_v21 = vld [vmem:[%s3655_s29 + $0xe88] sm:$0xff]  ;;  %v1699_v23 = vld [vmem:[%s3655_s29 + $0xe80] sm:$0xff]  ;;  %1923 = vmatpush2.msra.mxu1 %v1707_v19  ;;  %1853 = vmatprep.subr.mxu0 %v1444_v20  ;;  %v1350_v16 = vld [vmem:[%s3655_s29 + $0x398] sm:$0xff] }
 0x145   : > { %v1436_v24 = vld [vmem:[%s3655_s29 + $0x648] sm:$0xff]  ;;  %1924 = vmatprep.subr.mxu1 %v1700_v21  ;;  %v1435_v26 = vld [vmem:[%s3655_s29 + $0x640] sm:$0xff]  ;;  %1854 = vmatpush2.msra.mxu0 %v1443_v22  ;;  %v1606_v17 = vld [vmem:[%s3655_s29 + $0xb98] sm:$0xff] }
 0x146   : > { %v1692_v25 = vld [vmem:[%s3655_s29 + $0xe48] sm:$0xff]  ;;  %v1691_v27 = vld [vmem:[%s3655_s29 + $0xe40] sm:$0xff]  ;;  %1925 = vmatpush2.msra.mxu1 %v1699_v23  ;;  %1855 = vmatprep.subr.mxu0 %v1436_v24  ;;  %v1349_v18 = vld [vmem:[%s3655_s29 + $0x390] sm:$0xff] }
 0x147   : > { %v1428_v28 = vld [vmem:[%s3655_s29 + $0x608] sm:$0xff]  ;;  %1926 = vmatprep.subr.mxu1 %v1692_v25  ;;  %v1427_v33 = vld [vmem:[%s3655_s29 + $0x600] sm:$0xff]  ;;  %1856 = vmatpush2.msra.mxu0 %v1435_v26  ;;  %v1605_v19 = vld [vmem:[%s3655_s29 + $0xb90] sm:$0xff] }
 0x148   : > { %v1684_v29 = vld [vmem:[%s3655_s29 + $0xe08] sm:$0xff]  ;;  %v1683_v34 = vld [vmem:[%s3655_s29 + $0xe00] sm:$0xff]  ;;  %1927 = vmatpush2.msra.mxu1 %v1691_v27  ;;  %1857 = vmatprep.subr.mxu0 %v1428_v28  ;;  %v1342_v20 = vld [vmem:[%s3655_s29 + $0x358] sm:$0xff] }
 0x149   : > { %v1420_v35 = vld [vmem:[%s3655_s29 + $0x5c8] sm:$0xff]  ;;  %1928 = vmatprep.subr.mxu1 %v1684_v29  ;;  %v1419_v37 = vld [vmem:[%s3655_s29 + $0x5c0] sm:$0xff]  ;;  %1858 = vmatpush2.msra.mxu0 %v1427_v33  ;;  %v1598_v21 = vld [vmem:[%s3655_s29 + $0xb58] sm:$0xff] }
 0x14a   : > { %v1676_v36 = vld [vmem:[%s3655_s29 + $0xdc8] sm:$0xff]  ;;  %v1675_v38 = vld [vmem:[%s3655_s29 + $0xdc0] sm:$0xff]  ;;  %1929 = vmatpush2.msra.mxu1 %v1683_v34  ;;  %1859 = vmatprep.subr.mxu0 %v1420_v35  ;;  %v1341_v22 = vld [vmem:[%s3655_s29 + $0x350] sm:$0xff] }
 0x14b   : > { %v1412_v39 = vld [vmem:[%s3655_s29 + $0x588] sm:$0xff]  ;;  %1930 = vmatprep.subr.mxu1 %v1676_v36  ;;  %v1411_v43 = vld [vmem:[%s3655_s29 + $0x580] sm:$0xff]  ;;  %1860 = vmatpush2.msra.mxu0 %v1419_v37  ;;  %v1597_v23 = vld [vmem:[%s3655_s29 + $0xb50] sm:$0xff] }
 0x14c   : > { %v1668_v40 = vld [vmem:[%s3655_s29 + $0xd88] sm:$0xff]  ;;  %v1667_v44 = vld [vmem:[%s3655_s29 + $0xd80] sm:$0xff]  ;;  %1931 = vmatpush2.msra.mxu1 %v1675_v38  ;;  %1861 = vmatprep.subr.mxu0 %v1412_v39  ;;  %v1334_v24 = vld [vmem:[%s3655_s29 + $0x318] sm:$0xff] }
 0x14d   : > { %v1404_v45 = vld [vmem:[%s3655_s29 + $0x548] sm:$0xff]  ;;  %1932 = vmatprep.subr.mxu1 %v1668_v40  ;;  %v1403_v47 = vld [vmem:[%s3655_s29 + $0x540] sm:$0xff]  ;;  %1862 = vmatpush2.msra.mxu0 %v1411_v43  ;;  %v1590_v25 = vld [vmem:[%s3655_s29 + $0xb18] sm:$0xff] }
 0x14e   : > { %v1660_v46 = vld [vmem:[%s3655_s29 + $0xd48] sm:$0xff]  ;;  %v1659_v48 = vld [vmem:[%s3655_s29 + $0xd40] sm:$0xff]  ;;  %1933 = vmatpush2.msra.mxu1 %v1667_v44  ;;  %1863 = vmatprep.subr.mxu0 %v1404_v45  ;;  %v1333_v26 = vld [vmem:[%s3655_s29 + $0x310] sm:$0xff] }
 0x14f   : > { %v1234_v49 = vld [vmem:[%s4245_s0] sm:$0xff]  ;;  %v1396_v50 = vld [vmem:[%s3655_s29 + $0x508] sm:$0xff]  ;;  %1934 = vmatprep.subr.mxu1 %v1660_v46  ;;  %1864 = vmatpush2.msra.mxu0 %v1403_v47  ;;  %v1589_v27 = vld [vmem:[%s3655_s29 + $0xb10] sm:$0xff] }
 0x150   : > { %v1652_v51 = vld [vmem:[%s3655_s29 + $0xd08] sm:$0xff]  ;;  %v1395_v53 = vld [vmem:[%s3655_s29 + $0x500] sm:$0xff]  ;;  %1935 = vmatpush2.msra.mxu1 %v1659_v48  ;;  %v1790_v57 = vcombine.high %v1234_v49, %v1234_v49  ;;  %1865 = vmatprep.subr.mxu0 %v1396_v50  ;;  %v3784_v62 = vrot.slane %v1234_v49, %v3773_v52  ;;  %v1326_v28 = vld [vmem:[%s3655_s29 + $0x2d8] sm:$0xff] }
 0x151   : > { %v1651_v54 = vld [vmem:[%s3655_s29 + $0xd00] sm:$0xff]  ;;  %v1388_v55 = vld [vmem:[%s3655_s29 + $0x4c8] sm:$0xff]  ;;  %1936 = vmatprep.subr.mxu1 %v1652_v51  ;;  %1866 = vmatpush2.msra.mxu0 %v1395_v53  ;;  %v1582_v29 = vld [vmem:[%s3655_s29 + $0xad8] sm:$0xff] }
 0x152   : > { %v1644_v56 = vld [vmem:[%s3655_s29 + $0xcc8] sm:$0xff]  ;;  %v1387_v58 = vld [vmem:[%s3655_s29 + $0x4c0] sm:$0xff]  ;;  %1937 = vmatpush2.msra.mxu1 %v1651_v54  ;;  %1867 = vmatprep.subr.mxu0 %v1388_v55  ;;  %v3791_v3 = vrot.slane %v1790_v57, %v3773_v52  ;;  %v3799_v8 = vcombine.high %v3784_v62, %v3784_v62  ;;  %v1574_v33 = vld [vmem:[%s3655_s29 + $0xa98] sm:$0xff] }
 0x153   : > { %v1643_v59 = vld [vmem:[%s3655_s29 + $0xcc0] sm:$0xff]  ;;  %v1380_v60 = vld [vmem:[%s3655_s29 + $0x488] sm:$0xff]  ;;  %1938 = vmatprep.subr.mxu1 %v1644_v56  ;;  %1868 = vmatpush2.msra.mxu0 %v1387_v58  ;;  %v1317_v34 = vld [vmem:[%s3655_s29 + $0x290] sm:$0xff] }
 0x154   : > { %v1636_v61 = vld [vmem:[%s3655_s29 + $0xc88] sm:$0xff]  ;;  %v1379_v63 = vld [vmem:[%s3655_s29 + $0x480] sm:$0xff]  ;;  %1939 = vmatpush2.msra.mxu1 %v1643_v59  ;;  %1869 = vmatprep.subr.mxu0 %v1380_v60  ;;  %v3805_v11 = vcombine.high %v3791_v3, %v3791_v3  ;;  %v1573_v35 = vld [vmem:[%s3655_s29 + $0xa90] sm:$0xff] }
 0x155   : > { %v1635_v0 = vld [vmem:[%s3655_s29 + $0xc80] sm:$0xff]  ;;  %v1372_v1 = vld [vmem:[%s3655_s29 + $0x448] sm:$0xff]  ;;  %1940 = vmatprep.subr.mxu1 %v1636_v61  ;;  %1870 = vmatpush2.msra.mxu0 %v1379_v63  ;;  %v1310_v36 = vld [vmem:[%s3655_s29 + $0x258] sm:$0xff] }
 0x156   : > { %v1628_v2 = vld [vmem:[%s3655_s29 + $0xc48] sm:$0xff]  ;;  %v1371_v4 = vld [vmem:[%s3655_s29 + $0x440] sm:$0xff]  ;;  %1941 = vmatpush2.msra.mxu1 %v1635_v0  ;;  %1871 = vmatprep.subr.mxu0 %v1372_v1  ;;  %v1566_v37 = vld [vmem:[%s3655_s29 + $0xa58] sm:$0xff] }
 0x157   : > { %v1627_v5 = vld [vmem:[%s3655_s29 + $0xc40] sm:$0xff]  ;;  %v1364_v6 = vld [vmem:[%s3655_s29 + $0x408] sm:$0xff]  ;;  %1942 = vmatprep.subr.mxu1 %v1628_v2  ;;  %1872 = vmatpush2.msra.mxu0 %v1371_v4  ;;  %v1309_v38 = vld [vmem:[%s3655_s29 + $0x250] sm:$0xff] }
 0x158   : > { %v1620_v7 = vld [vmem:[%s3655_s29 + $0xc08] sm:$0xff]  ;;  %v1363_v9 = vld [vmem:[%s3655_s29 + $0x400] sm:$0xff]  ;;  %1943 = vmatpush2.msra.mxu1 %v1627_v5  ;;  %1873 = vmatprep.subr.mxu0 %v1364_v6  ;;  %v1565_v39 = vld [vmem:[%s3655_s29 + $0xa50] sm:$0xff] }
 0x159   : > { %v1619_v10 = vld [vmem:[%s3655_s29 + $0xc00] sm:$0xff]  ;;  %1944 = vmatprep.subr.mxu1 %v1620_v7  ;;  %1874 = vmatpush2.msra.mxu0 %v1363_v9  ;;  %v1302_v40 = vld [vmem:[%s3655_s29 + $0x218] sm:$0xff]  ;;  %v1301_v43 = vld [vmem:[%s3655_s29 + $0x210] sm:$0xff] }
 0x15a   : > { %1875 = vmatprep.mubr.f32.mxu0 %v3799_v8  ;;  %1945 = vmatpush2.msra.mxu1 %v1619_v10  ;;  %v1557_v44 = vld [vmem:[%s3655_s29 + $0xa10] sm:$0xff]  ;;  %v1294_v45 = vld [vmem:[%s3655_s29 + $0x1d8] sm:$0xff] }
 0x15b   : > { %1876 = vmatmul.mubr.f32.vlgmr.msra.gmra.mxu0 %v3784_v62  ;;  %1946 = vmatprep.mubr.f32.mxu1 %v3805_v11  ;;  %v1550_v46 = vld [vmem:[%s3655_s29 + $0x9d8] sm:$0xff]  ;;  %v1293_v47 = vld [vmem:[%s3655_s29 + $0x1d0] sm:$0xff] }
 0x15c   : > { %1953 = vmatprep.subr.mxu0 %v1358_v12  ;;  %2024 = vmatprep.subr.mxu1 %v1614_v13  ;;  %v1549_v48 = vld [vmem:[%s3655_s29 + $0x9d0] sm:$0xff]  ;;  %v1286_v49 = vld [vmem:[%s3655_s29 + $0x198] sm:$0xff] }
 0x15d   : > { %1947 = vmatmul.mubr.f32.vlgmr.msra.gmra.mxu1 %v3791_v3  ;;  %1954 = vmatpush1.msra.mxu0 %v1357_v14  ;;  %v1542_v50 = vld [vmem:[%s3655_s29 + $0x998] sm:$0xff]  ;;  %v1285_v51 = vld [vmem:[%s3655_s29 + $0x190] sm:$0xff] }
 0x15e   : > { %2025 = vmatpush1.msra.mxu1 %v1613_v15  ;;  %1955 = vmatprep.subr.mxu0 %v1350_v16  ;;  %v1541_v53 = vld [vmem:[%s3655_s29 + $0x990] sm:$0xff]  ;;  %v1278_v54 = vld [vmem:[%s3655_s29 + $0x158] sm:$0xff] }
 0x15f   : > { %2026 = vmatprep.subr.mxu1 %v1606_v17  ;;  %1956 = vmatpush1.msra.mxu0 %v1349_v18  ;;  %v1534_v55 = vld [vmem:[%s3655_s29 + $0x958] sm:$0xff]  ;;  %v1277_v56 = vld [vmem:[%s3655_s29 + $0x150] sm:$0xff] }
 0x160   : > { %2027 = vmatpush1.msra.mxu1 %v1605_v19  ;;  %1957 = vmatprep.subr.mxu0 %v1342_v20  ;;  %v1533_v57 = vld [vmem:[%s3655_s29 + $0x950] sm:$0xff]  ;;  %v1270_v58 = vld [vmem:[%s3655_s29 + $0x118] sm:$0xff] }
 0x161   : > { %2028 = vmatprep.subr.mxu1 %v1598_v21  ;;  %1958 = vmatpush1.msra.mxu0 %v1341_v22  ;;  %v1526_v59 = vld [vmem:[%s3655_s29 + $0x918] sm:$0xff]  ;;  %v1269_v60 = vld [vmem:[%s3655_s29 + $0x110] sm:$0xff] }
 0x162   : > { %2029 = vmatpush1.msra.mxu1 %v1597_v23  ;;  %1959 = vmatprep.subr.mxu0 %v1334_v24  ;;  %v1525_v61 = vld [vmem:[%s3655_s29 + $0x910] sm:$0xff]  ;;  %v1262_v63 = vld [vmem:[%s3655_s29 + $0xd8] sm:$0xff] }
 0x163   : > { %2030 = vmatprep.subr.mxu1 %v1590_v25  ;;  %1960 = vmatpush1.msra.mxu0 %v1333_v26  ;;  %v1518_v0 = vld [vmem:[%s3655_s29 + $0x8d8] sm:$0xff]  ;;  %v1261_v1 = vld [vmem:[%s3655_s29 + $0xd0] sm:$0xff] }
 0x164   : > { %2031 = vmatpush1.msra.mxu1 %v1589_v27  ;;  %1961 = vmatprep.subr.mxu0 %v1326_v28  ;;  %v1517_v2 = vld [vmem:[%s3655_s29 + $0x8d0] sm:$0xff]  ;;  %v1254_v4 = vld [vmem:[%s3655_s29 + $0x98] sm:$0xff] }
 0x165   : > { %2032 = vmatprep.subr.mxu1 %v1582_v29  ;;  %1962 = vmatpush1.msra.mxu0 %v1325_v30  ;;  %v1510_v5 = vld [vmem:[%s3655_s29 + $0x898] sm:$0xff]  ;;  %v1253_v6 = vld [vmem:[%s3655_s29 + $0x90] sm:$0xff] }
 0x166   : > { %2033 = vmatpush1.msra.mxu1 %v1581_v31  ;;  %1963 = vmatprep.subr.mxu0 %v1318_v32  ;;  %v1509_v7 = vld [vmem:[%s3655_s29 + $0x890] sm:$0xff]  ;;  %v1246_v9 = vld [vmem:[%s3655_s29 + $0x58] sm:$0xff] }
 0x167   : > { %2034 = vmatprep.subr.mxu1 %v1574_v33  ;;  %1964 = vmatpush1.msra.mxu0 %v1317_v34  ;;  %v1502_v10 = vld [vmem:[%s3655_s29 + $0x858] sm:$0xff]  ;;  %v1245_v12 = vld [vmem:[%s3655_s29 + $0x50] sm:$0xff] }
 0x168   : > { %2035 = vmatpush1.msra.mxu1 %v1573_v35  ;;  %1965 = vmatprep.subr.mxu0 %v1310_v36  ;;  %v1501_v13 = vld [vmem:[%s3655_s29 + $0x850] sm:$0xff]  ;;  %v1238_v14 = vld [vmem:[%s3655_s29 + $0x18] sm:$0xff] }
 0x169   : > { %2036 = vmatprep.subr.mxu1 %v1566_v37  ;;  %1966 = vmatpush1.msra.mxu0 %v1309_v38  ;;  %v1494_v15 = vld [vmem:[%s3655_s29 + $0x818] sm:$0xff]  ;;  %v1237_v16 = vld [vmem:[%s3655_s29 + $0x10] sm:$0xff] }
 0x16a   : > { %2037 = vmatpush1.msra.mxu1 %v1565_v39  ;;  %1967 = vmatprep.subr.mxu0 %v1302_v40  ;;  %v1493_v17 = vld [vmem:[%s3655_s29 + $0x810] sm:$0xff]  ;;  %v1486_v18 = vld [vmem:[%s3655_s29 + $0x7d8] sm:$0xff] }
 0x16b   : > { %2038 = vmatprep.subr.mxu1 %v1558_v42  ;;  %1968 = vmatpush1.msra.mxu0 %v1301_v43  ;;  %v1742_v19 = vld [vmem:[%s3655_s29 + $0xfd8] sm:$0xff]  ;;  %v1485_v20 = vld [vmem:[%s3655_s29 + $0x7d0] sm:$0xff] }
 0x16c   : > { %2039 = vmatpush1.msra.mxu1 %v1557_v44  ;;  %1969 = vmatprep.subr.mxu0 %v1294_v45  ;;  %v1741_v21 = vld [vmem:[%s3655_s29 + $0xfd0] sm:$0xff]  ;;  %v1478_v22 = vld [vmem:[%s3655_s29 + $0x798] sm:$0xff] }
 0x16d   : > { %2040 = vmatprep.subr.mxu1 %v1550_v46  ;;  %1970 = vmatpush1.msra.mxu0 %v1293_v47  ;;  %v1734_v23 = vld [vmem:[%s3655_s29 + $0xf98] sm:$0xff]  ;;  %v1477_v24 = vld [vmem:[%s3655_s29 + $0x790] sm:$0xff] }
 0x16e   : > { %2041 = vmatpush1.msra.mxu1 %v1549_v48  ;;  %1971 = vmatprep.subr.mxu0 %v1286_v49  ;;  %v1733_v25 = vld [vmem:[%s3655_s29 + $0xf90] sm:$0xff]  ;;  %v1470_v26 = vld [vmem:[%s3655_s29 + $0x758] sm:$0xff] }
 0x16f   : > { %2042 = vmatprep.subr.mxu1 %v1542_v50  ;;  %1972 = vmatpush1.msra.mxu0 %v1285_v51  ;;  %v1726_v27 = vld [vmem:[%s3655_s29 + $0xf58] sm:$0xff]  ;;  %v1469_v28 = vld [vmem:[%s3655_s29 + $0x750] sm:$0xff] }
 0x170   : > { %2043 = vmatpush1.msra.mxu1 %v1541_v53  ;;  %1973 = vmatprep.subr.mxu0 %v1278_v54  ;;  %v1725_v29 = vld [vmem:[%s3655_s29 + $0xf50] sm:$0xff]  ;;  %v1462_v30 = vld [vmem:[%s3655_s29 + $0x718] sm:$0xff] }
 0x171   : > { %2044 = vmatprep.subr.mxu1 %v1534_v55  ;;  %1974 = vmatpush1.msra.mxu0 %v1277_v56  ;;  %v1718_v31 = vld [vmem:[%s3655_s29 + $0xf18] sm:$0xff]  ;;  %v1461_v32 = vld [vmem:[%s3655_s29 + $0x710] sm:$0xff] }
 0x172   : > { %2045 = vmatpush1.msra.mxu1 %v1533_v57  ;;  %1975 = vmatprep.subr.mxu0 %v1270_v58  ;;  %v1717_v33 = vld [vmem:[%s3655_s29 + $0xf10] sm:$0xff]  ;;  %v1454_v34 = vld [vmem:[%s3655_s29 + $0x6d8] sm:$0xff] }
 0x173   : > { %2046 = vmatprep.subr.mxu1 %v1526_v59  ;;  %1976 = vmatpush1.msra.mxu0 %v1269_v60  ;;  %v1710_v35 = vld [vmem:[%s3655_s29 + $0xed8] sm:$0xff]  ;;  %v1453_v36 = vld [vmem:[%s3655_s29 + $0x6d0] sm:$0xff] }
 0x174   : > { %2047 = vmatpush1.msra.mxu1 %v1525_v61  ;;  %1977 = vmatprep.subr.mxu0 %v1262_v63  ;;  %v1709_v37 = vld [vmem:[%s3655_s29 + $0xed0] sm:$0xff]  ;;  %v1446_v38 = vld [vmem:[%s3655_s29 + $0x698] sm:$0xff] }
 0x175   : > { %2048 = vmatprep.subr.mxu1 %v1518_v0  ;;  %1978 = vmatpush1.msra.mxu0 %v1261_v1  ;;  %v1702_v39 = vld [vmem:[%s3655_s29 + $0xe98] sm:$0xff]  ;;  %v1445_v40 = vld [vmem:[%s3655_s29 + $0x690] sm:$0xff] }
 0x176   : > { %2049 = vmatpush1.msra.mxu1 %v1517_v2  ;;  %1979 = vmatprep.subr.mxu0 %v1254_v4  ;;  %v1701_v42 = vld [vmem:[%s3655_s29 + $0xe90] sm:$0xff]  ;;  %v1438_v43 = vld [vmem:[%s3655_s29 + $0x658] sm:$0xff] }
 0x177   : > { %2050 = vmatprep.subr.mxu1 %v1510_v5  ;;  %1980 = vmatpush1.msra.mxu0 %v1253_v6  ;;  %v1694_v44 = vld [vmem:[%s3655_s29 + $0xe58] sm:$0xff]  ;;  %v1437_v45 = vld [vmem:[%s3655_s29 + $0x650] sm:$0xff] }
 0x178   : > { %2051 = vmatpush1.msra.mxu1 %v1509_v7  ;;  %1981 = vmatprep.subr.mxu0 %v1246_v9  ;;  %v1693_v46 = vld [vmem:[%s3655_s29 + $0xe50] sm:$0xff]  ;;  %v1430_v47 = vld [vmem:[%s3655_s29 + $0x618] sm:$0xff] }
 0x179   : > { %2052 = vmatprep.subr.mxu1 %v1502_v10  ;;  %1982 = vmatpush1.msra.mxu0 %v1245_v12  ;;  %v1686_v48 = vld [vmem:[%s3655_s29 + $0xe18] sm:$0xff]  ;;  %v1429_v49 = vld [vmem:[%s3655_s29 + $0x610] sm:$0xff] }
 0x17a   : > { %2053 = vmatpush1.msra.mxu1 %v1501_v13  ;;  %1983 = vmatprep.subr.mxu0 %v1238_v14  ;;  %v1685_v50 = vld [vmem:[%s3655_s29 + $0xe10] sm:$0xff]  ;;  %v1422_v51 = vld [vmem:[%s3655_s29 + $0x5d8] sm:$0xff] }
 0x17b   : > { %2054 = vmatprep.subr.mxu1 %v1494_v15  ;;  %1984 = vmatpush1.msra.mxu0 %v1237_v16  ;;  %v1678_v53 = vld [vmem:[%s3655_s29 + $0xdd8] sm:$0xff]  ;;  %v1421_v54 = vld [vmem:[%s3655_s29 + $0x5d0] sm:$0xff] }
 0x17c   : > { %2055 = vmatpush1.msra.mxu1 %v1493_v17  ;;  %1985 = vmatprep.subr.mxu0 %v1486_v18  ;;  %v1677_v55 = vld [vmem:[%s3655_s29 + $0xdd0] sm:$0xff]  ;;  %v1414_v56 = vld [vmem:[%s3655_s29 + $0x598] sm:$0xff] }
 0x17d   : > { %2056 = vmatprep.subr.mxu1 %v1742_v19  ;;  %1986 = vmatpush2.msra.mxu0 %v1485_v20  ;;  %v1670_v57 = vld [vmem:[%s3655_s29 + $0xd98] sm:$0xff]  ;;  %v1413_v58 = vld [vmem:[%s3655_s29 + $0x590] sm:$0xff] }
 0x17e   : > { %2057 = vmatpush2.msra.mxu1 %v1741_v21  ;;  %1987 = vmatprep.subr.mxu0 %v1478_v22  ;;  %v1669_v59 = vld [vmem:[%s3655_s29 + $0xd90] sm:$0xff]  ;;  %v1406_v60 = vld [vmem:[%s3655_s29 + $0x558] sm:$0xff] }
 0x17f   : > { %2058 = vmatprep.subr.mxu1 %v1734_v23  ;;  %1988 = vmatpush2.msra.mxu0 %v1477_v24  ;;  %v1662_v61 = vld [vmem:[%s3655_s29 + $0xd58] sm:$0xff]  ;;  %v1405_v63 = vld [vmem:[%s3655_s29 + $0x550] sm:$0xff]  ;;  %v1360_v24 = vld [vmem:[%s3655_s29 + $0x3e8] sm:$0xff] }
 0x180   : > { %2059 = vmatpush2.msra.mxu1 %v1733_v25  ;;  %1989 = vmatprep.subr.mxu0 %v1470_v26  ;;  %v1661_v0 = vld [vmem:[%s3655_s29 + $0xd50] sm:$0xff]  ;;  %v1398_v1 = vld [vmem:[%s3655_s29 + $0x518] sm:$0xff]  ;;  %v1616_v25 = vld [vmem:[%s3655_s29 + $0xbe8] sm:$0xff] }
 0x181   : > { %2060 = vmatprep.subr.mxu1 %v1726_v27  ;;  %1990 = vmatpush2.msra.mxu0 %v1469_v28  ;;  %v1654_v2 = vld [vmem:[%s3655_s29 + $0xd18] sm:$0xff]  ;;  %v1397_v4 = vld [vmem:[%s3655_s29 + $0x510] sm:$0xff]  ;;  %v1359_v26 = vld [vmem:[%s3655_s29 + $0x3e0] sm:$0xff] }
 0x182   : > { %2061 = vmatpush2.msra.mxu1 %v1725_v29  ;;  %1991 = vmatprep.subr.mxu0 %v1462_v30  ;;  %v1653_v5 = vld [vmem:[%s3655_s29 + $0xd10] sm:$0xff]  ;;  %v1390_v6 = vld [vmem:[%s3655_s29 + $0x4d8] sm:$0xff]  ;;  %v1615_v27 = vld [vmem:[%s3655_s29 + $0xbe0] sm:$0xff] }
 0x183   : > { %2062 = vmatprep.subr.mxu1 %v1718_v31  ;;  %1992 = vmatpush2.msra.mxu0 %v1461_v32  ;;  %v1646_v7 = vld [vmem:[%s3655_s29 + $0xcd8] sm:$0xff]  ;;  %v1389_v9 = vld [vmem:[%s3655_s29 + $0x4d0] sm:$0xff]  ;;  %v1352_v28 = vld [vmem:[%s3655_s29 + $0x3a8] sm:$0xff] }
 0x184   : > { %2063 = vmatpush2.msra.mxu1 %v1717_v33  ;;  %1993 = vmatprep.subr.mxu0 %v1454_v34  ;;  %v1645_v10 = vld [vmem:[%s3655_s29 + $0xcd0] sm:$0xff]  ;;  %v1382_v12 = vld [vmem:[%s3655_s29 + $0x498] sm:$0xff]  ;;  %v1608_v29 = vld [vmem:[%s3655_s29 + $0xba8] sm:$0xff] }
 0x185   : > { %2064 = vmatprep.subr.mxu1 %v1710_v35  ;;  %1994 = vmatpush2.msra.mxu0 %v1453_v36  ;;  %v1638_v13 = vld [vmem:[%s3655_s29 + $0xc98] sm:$0xff]  ;;  %v1381_v14 = vld [vmem:[%s3655_s29 + $0x490] sm:$0xff]  ;;  %v1351_v30 = vld [vmem:[%s3655_s29 + $0x3a0] sm:$0xff] }
 0x186   : > { %2065 = vmatpush2.msra.mxu1 %v1709_v37  ;;  %1995 = vmatprep.subr.mxu0 %v1446_v38  ;;  %v1637_v15 = vld [vmem:[%s3655_s29 + $0xc90] sm:$0xff]  ;;  %v1374_v16 = vld [vmem:[%s3655_s29 + $0x458] sm:$0xff]  ;;  %v1607_v31 = vld [vmem:[%s3655_s29 + $0xba0] sm:$0xff] }
 0x187   : > { %2066 = vmatprep.subr.mxu1 %v1702_v39  ;;  %1996 = vmatpush2.msra.mxu0 %v1445_v40  ;;  %v1630_v17 = vld [vmem:[%s3655_s29 + $0xc58] sm:$0xff]  ;;  %v1373_v18 = vld [vmem:[%s3655_s29 + $0x450] sm:$0xff]  ;;  %v1344_v32 = vld [vmem:[%s3655_s29 + $0x368] sm:$0xff] }
 0x188   : > { %2067 = vmatpush2.msra.mxu1 %v1701_v42  ;;  %1997 = vmatprep.subr.mxu0 %v1438_v43  ;;  %v1629_v19 = vld [vmem:[%s3655_s29 + $0xc50] sm:$0xff]  ;;  %v1366_v20 = vld [vmem:[%s3655_s29 + $0x418] sm:$0xff]  ;;  %v1600_v33 = vld [vmem:[%s3655_s29 + $0xb68] sm:$0xff] }
 0x189   : > { %2068 = vmatprep.subr.mxu1 %v1694_v44  ;;  %1998 = vmatpush2.msra.mxu0 %v1437_v45  ;;  %v1622_v21 = vld [vmem:[%s3655_s29 + $0xc18] sm:$0xff]  ;;  %v1365_v22 = vld [vmem:[%s3655_s29 + $0x410] sm:$0xff]  ;;  %v1343_v34 = vld [vmem:[%s3655_s29 + $0x360] sm:$0xff] }
 0x18a   : > { %2069 = vmatpush2.msra.mxu1 %v1693_v46  ;;  %1999 = vmatprep.subr.mxu0 %v1430_v47  ;;  %v1621_v23 = vld [vmem:[%s3655_s29 + $0xc10] sm:$0xff]  ;;  %v1599_v35 = vld [vmem:[%s3655_s29 + $0xb60] sm:$0xff]  ;;  %v1336_v36 = vld [vmem:[%s3655_s29 + $0x328] sm:$0xff] }
 0x18b   : > { %2070 = vmatprep.subr.mxu1 %v1686_v48  ;;  %2000 = vmatpush2.msra.mxu0 %v1429_v49  ;;  %v1592_v37 = vld [vmem:[%s3655_s29 + $0xb28] sm:$0xff]  ;;  %v1335_v38 = vld [vmem:[%s3655_s29 + $0x320] sm:$0xff] }
 0x18c   : > { %2071 = vmatpush2.msra.mxu1 %v1685_v50  ;;  %2001 = vmatprep.subr.mxu0 %v1422_v51  ;;  %v1591_v39 = vld [vmem:[%s3655_s29 + $0xb20] sm:$0xff]  ;;  %v1328_v40 = vld [vmem:[%s3655_s29 + $0x2e8] sm:$0xff] }
 0x18d   : > { %2072 = vmatprep.subr.mxu1 %v1678_v53  ;;  %2002 = vmatpush2.msra.mxu0 %v1421_v54  ;;  %v1584_v42 = vld [vmem:[%s3655_s29 + $0xae8] sm:$0xff]  ;;  %v1327_v43 = vld [vmem:[%s3655_s29 + $0x2e0] sm:$0xff] }
 0x18e   : > { %2073 = vmatpush2.msra.mxu1 %v1677_v55  ;;  %2003 = vmatprep.subr.mxu0 %v1414_v56  ;;  %v1583_v44 = vld [vmem:[%s3655_s29 + $0xae0] sm:$0xff]  ;;  %v1320_v45 = vld [vmem:[%s3655_s29 + $0x2a8] sm:$0xff] }
 0x18f   : > { %2074 = vmatprep.subr.mxu1 %v1670_v57  ;;  %2004 = vmatpush2.msra.mxu0 %v1413_v58  ;;  %v1576_v46 = vld [vmem:[%s3655_s29 + $0xaa8] sm:$0xff]  ;;  %v1319_v47 = vld [vmem:[%s3655_s29 + $0x2a0] sm:$0xff] }
 0x190   : > { %2075 = vmatpush2.msra.mxu1 %v1669_v59  ;;  %2005 = vmatprep.subr.mxu0 %v1406_v60  ;;  %v1575_v48 = vld [vmem:[%s3655_s29 + $0xaa0] sm:$0xff]  ;;  %v1312_v49 = vld [vmem:[%s3655_s29 + $0x268] sm:$0xff] }
 0x191   : > { %2076 = vmatprep.subr.mxu1 %v1662_v61  ;;  %2006 = vmatpush2.msra.mxu0 %v1405_v63  ;;  %v1568_v50 = vld [vmem:[%s3655_s29 + $0xa68] sm:$0xff]  ;;  %v1311_v51 = vld [vmem:[%s3655_s29 + $0x260] sm:$0xff] }
 0x192   : > { %2077 = vmatpush2.msra.mxu1 %v1661_v0  ;;  %2007 = vmatprep.subr.mxu0 %v1398_v1  ;;  %v1567_v53 = vld [vmem:[%s3655_s29 + $0xa60] sm:$0xff]  ;;  %v1304_v54 = vld [vmem:[%s3655_s29 + $0x228] sm:$0xff] }
 0x193   : > { %2078 = vmatprep.subr.mxu1 %v1654_v2  ;;  %2008 = vmatpush2.msra.mxu0 %v1397_v4  ;;  %v1560_v55 = vld [vmem:[%s3655_s29 + $0xa28] sm:$0xff]  ;;  %v1303_v56 = vld [vmem:[%s3655_s29 + $0x220] sm:$0xff] }
 0x194   : > { %2079 = vmatpush2.msra.mxu1 %v1653_v5  ;;  %2009 = vmatprep.subr.mxu0 %v1390_v6  ;;  %v1559_v57 = vld [vmem:[%s3655_s29 + $0xa20] sm:$0xff]  ;;  %v1296_v58 = vld [vmem:[%s3655_s29 + $0x1e8] sm:$0xff] }
 0x195   : > { %2080 = vmatprep.subr.mxu1 %v1646_v7  ;;  %2010 = vmatpush2.msra.mxu0 %v1389_v9  ;;  %v1552_v59 = vld [vmem:[%s3655_s29 + $0x9e8] sm:$0xff]  ;;  %v1295_v60 = vld [vmem:[%s3655_s29 + $0x1e0] sm:$0xff] }
 0x196   : > { %2081 = vmatpush2.msra.mxu1 %v1645_v10  ;;  %2011 = vmatprep.subr.mxu0 %v1382_v12  ;;  %v1551_v61 = vld [vmem:[%s3655_s29 + $0x9e0] sm:$0xff]  ;;  %v1288_v63 = vld [vmem:[%s3655_s29 + $0x1a8] sm:$0xff] }
 0x197   : > { %2082 = vmatprep.subr.mxu1 %v1638_v13  ;;  %2012 = vmatpush2.msra.mxu0 %v1381_v14  ;;  %v1544_v0 = vld [vmem:[%s3655_s29 + $0x9a8] sm:$0xff]  ;;  %v1287_v1 = vld [vmem:[%s3655_s29 + $0x1a0] sm:$0xff] }
 0x198   : > { %2083 = vmatpush2.msra.mxu1 %v1637_v15  ;;  %2013 = vmatprep.subr.mxu0 %v1374_v16  ;;  %v1543_v2 = vld [vmem:[%s3655_s29 + $0x9a0] sm:$0xff]  ;;  %v1280_v4 = vld [vmem:[%s3655_s29 + $0x168] sm:$0xff] }
 0x199   : > { %2084 = vmatprep.subr.mxu1 %v1630_v17  ;;  %2014 = vmatpush2.msra.mxu0 %v1373_v18  ;;  %v1536_v5 = vld [vmem:[%s3655_s29 + $0x968] sm:$0xff]  ;;  %v1279_v6 = vld [vmem:[%s3655_s29 + $0x160] sm:$0xff] }
 0x19a   : > { %2085 = vmatpush2.msra.mxu1 %v1629_v19  ;;  %2015 = vmatprep.subr.mxu0 %v1366_v20  ;;  %v1535_v7 = vld [vmem:[%s3655_s29 + $0x960] sm:$0xff]  ;;  %v1272_v9 = vld [vmem:[%s3655_s29 + $0x128] sm:$0xff] }
 0x19b   : > { %2086 = vmatprep.subr.mxu1 %v1622_v21  ;;  %2016 = vmatpush2.msra.mxu0 %v1365_v22  ;;  %v1528_v10 = vld [vmem:[%s3655_s29 + $0x928] sm:$0xff]  ;;  %v1271_v12 = vld [vmem:[%s3655_s29 + $0x120] sm:$0xff] }
 0x19c   : > { %2017 = vmatprep.mubr.f32.mxu0 %v3799_v8  ;;  %2087 = vmatpush2.msra.mxu1 %v1621_v23  ;;  %v1527_v13 = vld [vmem:[%s3655_s29 + $0x920] sm:$0xff]  ;;  %v1264_v14 = vld [vmem:[%s3655_s29 + $0xe8] sm:$0xff] }
 0x19d   : > { %2018 = vmatmul.mubr.f32.vlgmr.msra.gmra.mxu0 %v3784_v62  ;;  %2088 = vmatprep.mubr.f32.mxu1 %v3805_v11  ;;  %v1520_v15 = vld [vmem:[%s3655_s29 + $0x8e8] sm:$0xff]  ;;  %v1263_v16 = vld [vmem:[%s3655_s29 + $0xe0] sm:$0xff] }
 0x19e   : > { %2095 = vmatprep.subr.mxu0 %v1360_v24  ;;  %2166 = vmatprep.subr.mxu1 %v1616_v25  ;;  %v1519_v17 = vld [vmem:[%s3655_s29 + $0x8e0] sm:$0xff]  ;;  %v1256_v18 = vld [vmem:[%s3655_s29 + $0xa8] sm:$0xff] }
 0x19f   : > { %2089 = vmatmul.mubr.f32.vlgmr.msra.gmra.mxu1 %v3791_v3  ;;  %2096 = vmatpush1.msra.mxu0 %v1359_v26  ;;  %v1512_v19 = vld [vmem:[%s3655_s29 + $0x8a8] sm:$0xff]  ;;  %v1255_v20 = vld [vmem:[%s3655_s29 + $0xa0] sm:$0xff] }
 0x1a0   : > { %2167 = vmatpush1.msra.mxu1 %v1615_v27  ;;  %2097 = vmatprep.subr.mxu0 %v1352_v28  ;;  %v1511_v21 = vld [vmem:[%s3655_s29 + $0x8a0] sm:$0xff]  ;;  %v1248_v22 = vld [vmem:[%s3655_s29 + $0x68] sm:$0xff] }
 0x1a1   : > { %2168 = vmatprep.subr.mxu1 %v1608_v29  ;;  %2098 = vmatpush1.msra.mxu0 %v1351_v30  ;;  %v1504_v23 = vld [vmem:[%s3655_s29 + $0x868] sm:$0xff]  ;;  %v1247_v24 = vld [vmem:[%s3655_s29 + $0x60] sm:$0xff] }
 0x1a2   : > { %2169 = vmatpush1.msra.mxu1 %v1607_v31  ;;  %2099 = vmatprep.subr.mxu0 %v1344_v32  ;;  %v1503_v25 = vld [vmem:[%s3655_s29 + $0x860] sm:$0xff]  ;;  %v1240_v26 = vld [vmem:[%s3655_s29 + $0x28] sm:$0xff] }
 0x1a3   : > { %2170 = vmatprep.subr.mxu1 %v1600_v33  ;;  %2100 = vmatpush1.msra.mxu0 %v1343_v34  ;;  %v1496_v27 = vld [vmem:[%s3655_s29 + $0x828] sm:$0xff]  ;;  %v1239_v28 = vld [vmem:[%s3655_s29 + $0x20] sm:$0xff] }
 0x1a4   : > { %2171 = vmatpush1.msra.mxu1 %v1599_v35  ;;  %2101 = vmatprep.subr.mxu0 %v1336_v36  ;;  %v1495_v29 = vld [vmem:[%s3655_s29 + $0x820] sm:$0xff]  ;;  %v1488_v30 = vld [vmem:[%s3655_s29 + $0x7e8] sm:$0xff] }
 0x1a5   : > { %2172 = vmatprep.subr.mxu1 %v1592_v37  ;;  %2102 = vmatpush1.msra.mxu0 %v1335_v38  ;;  %v1744_v31 = vld [vmem:[%s3655_s29 + $0xfe8] sm:$0xff]  ;;  %v1487_v32 = vld [vmem:[%s3655_s29 + $0x7e0] sm:$0xff] }
 0x1a6   : > { %2173 = vmatpush1.msra.mxu1 %v1591_v39  ;;  %2103 = vmatprep.subr.mxu0 %v1328_v40  ;;  %v1743_v33 = vld [vmem:[%s3655_s29 + $0xfe0] sm:$0xff]  ;;  %v1480_v34 = vld [vmem:[%s3655_s29 + $0x7a8] sm:$0xff] }
 0x1a7   : > { %2174 = vmatprep.subr.mxu1 %v1584_v42  ;;  %2104 = vmatpush1.msra.mxu0 %v1327_v43  ;;  %v1736_v35 = vld [vmem:[%s3655_s29 + $0xfa8] sm:$0xff]  ;;  %v1479_v36 = vld [vmem:[%s3655_s29 + $0x7a0] sm:$0xff] }
 0x1a8   : > { %2175 = vmatpush1.msra.mxu1 %v1583_v44  ;;  %2105 = vmatprep.subr.mxu0 %v1320_v45  ;;  %v1735_v37 = vld [vmem:[%s3655_s29 + $0xfa0] sm:$0xff]  ;;  %v1472_v38 = vld [vmem:[%s3655_s29 + $0x768] sm:$0xff] }
 0x1a9   : > { %2176 = vmatprep.subr.mxu1 %v1576_v46  ;;  %2106 = vmatpush1.msra.mxu0 %v1319_v47  ;;  %v1728_v39 = vld [vmem:[%s3655_s29 + $0xf68] sm:$0xff]  ;;  %v1471_v40 = vld [vmem:[%s3655_s29 + $0x760] sm:$0xff] }
 0x1aa   : > { %2177 = vmatpush1.msra.mxu1 %v1575_v48  ;;  %2107 = vmatprep.subr.mxu0 %v1312_v49  ;;  %v1727_v42 = vld [vmem:[%s3655_s29 + $0xf60] sm:$0xff]  ;;  %v1464_v43 = vld [vmem:[%s3655_s29 + $0x728] sm:$0xff] }
 0x1ab   : > { %2178 = vmatprep.subr.mxu1 %v1568_v50  ;;  %2108 = vmatpush1.msra.mxu0 %v1311_v51  ;;  %v1720_v44 = vld [vmem:[%s3655_s29 + $0xf28] sm:$0xff]  ;;  %v1463_v45 = vld [vmem:[%s3655_s29 + $0x720] sm:$0xff] }
 0x1ac   : > { %2179 = vmatpush1.msra.mxu1 %v1567_v53  ;;  %2109 = vmatprep.subr.mxu0 %v1304_v54  ;;  %v1719_v46 = vld [vmem:[%s3655_s29 + $0xf20] sm:$0xff]  ;;  %v1456_v47 = vld [vmem:[%s3655_s29 + $0x6e8] sm:$0xff] }
 0x1ad   : > { %2180 = vmatprep.subr.mxu1 %v1560_v55  ;;  %2110 = vmatpush1.msra.mxu0 %v1303_v56  ;;  %v1712_v48 = vld [vmem:[%s3655_s29 + $0xee8] sm:$0xff]  ;;  %v1455_v49 = vld [vmem:[%s3655_s29 + $0x6e0] sm:$0xff] }
 0x1ae   : > { %2181 = vmatpush1.msra.mxu1 %v1559_v57  ;;  %2111 = vmatprep.subr.mxu0 %v1296_v58  ;;  %v1711_v50 = vld [vmem:[%s3655_s29 + $0xee0] sm:$0xff]  ;;  %v1448_v51 = vld [vmem:[%s3655_s29 + $0x6a8] sm:$0xff] }
 0x1af   : > { %2182 = vmatprep.subr.mxu1 %v1552_v59  ;;  %2112 = vmatpush1.msra.mxu0 %v1295_v60  ;;  %v1704_v53 = vld [vmem:[%s3655_s29 + $0xea8] sm:$0xff]  ;;  %v1447_v54 = vld [vmem:[%s3655_s29 + $0x6a0] sm:$0xff] }
 0x1b0   : > { %2183 = vmatpush1.msra.mxu1 %v1551_v61  ;;  %2113 = vmatprep.subr.mxu0 %v1288_v63  ;;  %v1703_v55 = vld [vmem:[%s3655_s29 + $0xea0] sm:$0xff]  ;;  %v1440_v56 = vld [vmem:[%s3655_s29 + $0x668] sm:$0xff] }
 0x1b1   : > { %2184 = vmatprep.subr.mxu1 %v1544_v0  ;;  %2114 = vmatpush1.msra.mxu0 %v1287_v1  ;;  %v1696_v57 = vld [vmem:[%s3655_s29 + $0xe68] sm:$0xff]  ;;  %v1439_v58 = vld [vmem:[%s3655_s29 + $0x660] sm:$0xff] }
 0x1b2   : > { %2185 = vmatpush1.msra.mxu1 %v1543_v2  ;;  %2115 = vmatprep.subr.mxu0 %v1280_v4  ;;  %v1695_v59 = vld [vmem:[%s3655_s29 + $0xe60] sm:$0xff]  ;;  %v1432_v60 = vld [vmem:[%s3655_s29 + $0x628] sm:$0xff] }
 0x1b3   : > { %2186 = vmatprep.subr.mxu1 %v1536_v5  ;;  %2116 = vmatpush1.msra.mxu0 %v1279_v6  ;;  %v1688_v61 = vld [vmem:[%s3655_s29 + $0xe28] sm:$0xff]  ;;  %v1431_v63 = vld [vmem:[%s3655_s29 + $0x620] sm:$0xff] }
 0x1b4   : > { %2187 = vmatpush1.msra.mxu1 %v1535_v7  ;;  %2117 = vmatprep.subr.mxu0 %v1272_v9  ;;  %v1687_v0 = vld [vmem:[%s3655_s29 + $0xe20] sm:$0xff]  ;;  %v1424_v1 = vld [vmem:[%s3655_s29 + $0x5e8] sm:$0xff] }
 0x1b5   : > { %2188 = vmatprep.subr.mxu1 %v1528_v10  ;;  %2118 = vmatpush1.msra.mxu0 %v1271_v12  ;;  %v1680_v2 = vld [vmem:[%s3655_s29 + $0xde8] sm:$0xff]  ;;  %v1423_v4 = vld [vmem:[%s3655_s29 + $0x5e0] sm:$0xff] }
 0x1b6   : > { %2189 = vmatpush1.msra.mxu1 %v1527_v13  ;;  %2119 = vmatprep.subr.mxu0 %v1264_v14  ;;  %v1679_v5 = vld [vmem:[%s3655_s29 + $0xde0] sm:$0xff]  ;;  %v1416_v6 = vld [vmem:[%s3655_s29 + $0x5a8] sm:$0xff] }
 0x1b7   : > { %2190 = vmatprep.subr.mxu1 %v1520_v15  ;;  %2120 = vmatpush1.msra.mxu0 %v1263_v16  ;;  %v1672_v7 = vld [vmem:[%s3655_s29 + $0xda8] sm:$0xff]  ;;  %v1415_v9 = vld [vmem:[%s3655_s29 + $0x5a0] sm:$0xff] }
 0x1b8   : > { %2191 = vmatpush1.msra.mxu1 %v1519_v17  ;;  %2121 = vmatprep.subr.mxu0 %v1256_v18  ;;  %v1671_v10 = vld [vmem:[%s3655_s29 + $0xda0] sm:$0xff]  ;;  %v1408_v12 = vld [vmem:[%s3655_s29 + $0x568] sm:$0xff] }
 0x1b9   : > { %2192 = vmatprep.subr.mxu1 %v1512_v19  ;;  %2122 = vmatpush1.msra.mxu0 %v1255_v20  ;;  %v1664_v13 = vld [vmem:[%s3655_s29 + $0xd68] sm:$0xff]  ;;  %v1407_v14 = vld [vmem:[%s3655_s29 + $0x560] sm:$0xff] }
 0x1ba   : > { %2193 = vmatpush1.msra.mxu1 %v1511_v21  ;;  %2123 = vmatprep.subr.mxu0 %v1248_v22  ;;  %v1663_v15 = vld [vmem:[%s3655_s29 + $0xd60] sm:$0xff]  ;;  %v1400_v16 = vld [vmem:[%s3655_s29 + $0x528] sm:$0xff] }
 0x1bb   : > { %2194 = vmatprep.subr.mxu1 %v1504_v23  ;;  %2124 = vmatpush1.msra.mxu0 %v1247_v24  ;;  %v1656_v17 = vld [vmem:[%s3655_s29 + $0xd28] sm:$0xff]  ;;  %v1399_v18 = vld [vmem:[%s3655_s29 + $0x520] sm:$0xff] }
 0x1bc   : > { %2195 = vmatpush1.msra.mxu1 %v1503_v25  ;;  %2125 = vmatprep.subr.mxu0 %v1240_v26  ;;  %v1655_v19 = vld [vmem:[%s3655_s29 + $0xd20] sm:$0xff]  ;;  %v1392_v20 = vld [vmem:[%s3655_s29 + $0x4e8] sm:$0xff] }
 0x1bd   : > { %2196 = vmatprep.subr.mxu1 %v1496_v27  ;;  %2126 = vmatpush1.msra.mxu0 %v1239_v28  ;;  %v1648_v21 = vld [vmem:[%s3655_s29 + $0xce8] sm:$0xff]  ;;  %v1391_v22 = vld [vmem:[%s3655_s29 + $0x4e0] sm:$0xff] }
 0x1be   : > { %2197 = vmatpush1.msra.mxu1 %v1495_v29  ;;  %2127 = vmatprep.subr.mxu0 %v1488_v30  ;;  %v1647_v23 = vld [vmem:[%s3655_s29 + $0xce0] sm:$0xff]  ;;  %v1384_v24 = vld [vmem:[%s3655_s29 + $0x4a8] sm:$0xff] }
 0x1bf   : > { %2198 = vmatprep.subr.mxu1 %v1744_v31  ;;  %2128 = vmatpush2.msra.mxu0 %v1487_v32  ;;  %v1640_v25 = vld [vmem:[%s3655_s29 + $0xca8] sm:$0xff]  ;;  %v1383_v26 = vld [vmem:[%s3655_s29 + $0x4a0] sm:$0xff] }
 0x1c0   : > { %2199 = vmatpush2.msra.mxu1 %v1743_v33  ;;  %2129 = vmatprep.subr.mxu0 %v1480_v34  ;;  %v1639_v27 = vld [vmem:[%s3655_s29 + $0xca0] sm:$0xff]  ;;  %v1376_v28 = vld [vmem:[%s3655_s29 + $0x468] sm:$0xff] }
 0x1c1   : > { %2200 = vmatprep.subr.mxu1 %v1736_v35  ;;  %2130 = vmatpush2.msra.mxu0 %v1479_v36  ;;  %v1632_v29 = vld [vmem:[%s3655_s29 + $0xc68] sm:$0xff]  ;;  %v1375_v30 = vld [vmem:[%s3655_s29 + $0x460] sm:$0xff]  ;;  %v1362_v36 = vld [vmem:[%s3655_s29 + $0x3f8] sm:$0xff] }
 0x1c2   : > { %2201 = vmatpush2.msra.mxu1 %v1735_v37  ;;  %2131 = vmatprep.subr.mxu0 %v1472_v38  ;;  %v1631_v31 = vld [vmem:[%s3655_s29 + $0xc60] sm:$0xff]  ;;  %v1368_v32 = vld [vmem:[%s3655_s29 + $0x428] sm:$0xff]  ;;  %v1618_v37 = vld [vmem:[%s3655_s29 + $0xbf8] sm:$0xff] }
 0x1c3   : > { %2202 = vmatprep.subr.mxu1 %v1728_v39  ;;  %2132 = vmatpush2.msra.mxu0 %v1471_v40  ;;  %v1624_v33 = vld [vmem:[%s3655_s29 + $0xc28] sm:$0xff]  ;;  %v1367_v34 = vld [vmem:[%s3655_s29 + $0x420] sm:$0xff]  ;;  %v1361_v38 = vld [vmem:[%s3655_s29 + $0x3f0] sm:$0xff] }
 0x1c4   : > { %2203 = vmatpush2.msra.mxu1 %v1727_v42  ;;  %2133 = vmatprep.subr.mxu0 %v1464_v43  ;;  %v1623_v35 = vld [vmem:[%s3655_s29 + $0xc20] sm:$0xff]  ;;  %v1617_v39 = vld [vmem:[%s3655_s29 + $0xbf0] sm:$0xff]  ;;  %v1354_v40 = vld [vmem:[%s3655_s29 + $0x3b8] sm:$0xff] }
 0x1c5   : > { %2204 = vmatprep.subr.mxu1 %v1720_v44  ;;  %2134 = vmatpush2.msra.mxu0 %v1463_v45  ;;  %v1610_v42 = vld [vmem:[%s3655_s29 + $0xbb8] sm:$0xff]  ;;  %v1353_v43 = vld [vmem:[%s3655_s29 + $0x3b0] sm:$0xff] }
 0x1c6   : > { %2205 = vmatpush2.msra.mxu1 %v1719_v46  ;;  %2135 = vmatprep.subr.mxu0 %v1456_v47  ;;  %v1609_v44 = vld [vmem:[%s3655_s29 + $0xbb0] sm:$0xff]  ;;  %v1346_v45 = vld [vmem:[%s3655_s29 + $0x378] sm:$0xff] }
 0x1c7   : > { %2206 = vmatprep.subr.mxu1 %v1712_v48  ;;  %2136 = vmatpush2.msra.mxu0 %v1455_v49  ;;  %v1602_v46 = vld [vmem:[%s3655_s29 + $0xb78] sm:$0xff]  ;;  %v1345_v47 = vld [vmem:[%s3655_s29 + $0x370] sm:$0xff] }
 0x1c8   : > { %2207 = vmatpush2.msra.mxu1 %v1711_v50  ;;  %2137 = vmatprep.subr.mxu0 %v1448_v51  ;;  %v1601_v48 = vld [vmem:[%s3655_s29 + $0xb70] sm:$0xff]  ;;  %v1338_v49 = vld [vmem:[%s3655_s29 + $0x338] sm:$0xff] }
 0x1c9   : > { %2208 = vmatprep.subr.mxu1 %v1704_v53  ;;  %2138 = vmatpush2.msra.mxu0 %v1447_v54  ;;  %v1594_v50 = vld [vmem:[%s3655_s29 + $0xb38] sm:$0xff]  ;;  %v1337_v51 = vld [vmem:[%s3655_s29 + $0x330] sm:$0xff] }
 0x1ca   : > { %2209 = vmatpush2.msra.mxu1 %v1703_v55  ;;  %2139 = vmatprep.subr.mxu0 %v1440_v56  ;;  %v1593_v53 = vld [vmem:[%s3655_s29 + $0xb30] sm:$0xff]  ;;  %v1330_v54 = vld [vmem:[%s3655_s29 + $0x2f8] sm:$0xff] }
 0x1cb   : > { %2210 = vmatprep.subr.mxu1 %v1696_v57  ;;  %2140 = vmatpush2.msra.mxu0 %v1439_v58  ;;  %v1586_v55 = vld [vmem:[%s3655_s29 + $0xaf8] sm:$0xff]  ;;  %v1329_v56 = vld [vmem:[%s3655_s29 + $0x2f0] sm:$0xff] }
 0x1cc   : > { %2211 = vmatpush2.msra.mxu1 %v1695_v59  ;;  %2141 = vmatprep.subr.mxu0 %v1432_v60  ;;  %v1585_v57 = vld [vmem:[%s3655_s29 + $0xaf0] sm:$0xff]  ;;  %v1322_v58 = vld [vmem:[%s3655_s29 + $0x2b8] sm:$0xff] }
 0x1cd   : > { %2212 = vmatprep.subr.mxu1 %v1688_v61  ;;  %2142 = vmatpush2.msra.mxu0 %v1431_v63  ;;  %v1578_v59 = vld [vmem:[%s3655_s29 + $0xab8] sm:$0xff]  ;;  %v1321_v60 = vld [vmem:[%s3655_s29 + $0x2b0] sm:$0xff] }
 0x1ce   : > { %2213 = vmatpush2.msra.mxu1 %v1687_v0  ;;  %2143 = vmatprep.subr.mxu0 %v1424_v1  ;;  %v1577_v61 = vld [vmem:[%s3655_s29 + $0xab0] sm:$0xff]  ;;  %v1314_v63 = vld [vmem:[%s3655_s29 + $0x278] sm:$0xff] }
 0x1cf   : > { %2214 = vmatprep.subr.mxu1 %v1680_v2  ;;  %2144 = vmatpush2.msra.mxu0 %v1423_v4  ;;  %v1570_v0 = vld [vmem:[%s3655_s29 + $0xa78] sm:$0xff]  ;;  %v1313_v1 = vld [vmem:[%s3655_s29 + $0x270] sm:$0xff] }
 0x1d0   : > { %2215 = vmatpush2.msra.mxu1 %v1679_v5  ;;  %2145 = vmatprep.subr.mxu0 %v1416_v6  ;;  %v1569_v2 = vld [vmem:[%s3655_s29 + $0xa70] sm:$0xff]  ;;  %v1306_v4 = vld [vmem:[%s3655_s29 + $0x238] sm:$0xff] }
 0x1d1   : > { %2216 = vmatprep.subr.mxu1 %v1672_v7  ;;  %2146 = vmatpush2.msra.mxu0 %v1415_v9  ;;  %v1562_v5 = vld [vmem:[%s3655_s29 + $0xa38] sm:$0xff]  ;;  %v1305_v6 = vld [vmem:[%s3655_s29 + $0x230] sm:$0xff] }
 0x1d2   : > { %2217 = vmatpush2.msra.mxu1 %v1671_v10  ;;  %2147 = vmatprep.subr.mxu0 %v1408_v12  ;;  %v1561_v7 = vld [vmem:[%s3655_s29 + $0xa30] sm:$0xff]  ;;  %v1298_v9 = vld [vmem:[%s3655_s29 + $0x1f8] sm:$0xff] }
 0x1d3   : > { %2218 = vmatprep.subr.mxu1 %v1664_v13  ;;  %2148 = vmatpush2.msra.mxu0 %v1407_v14  ;;  %v1554_v10 = vld [vmem:[%s3655_s29 + $0x9f8] sm:$0xff]  ;;  %v1297_v12 = vld [vmem:[%s3655_s29 + $0x1f0] sm:$0xff] }
 0x1d4   : > { %2219 = vmatpush2.msra.mxu1 %v1663_v15  ;;  %2149 = vmatprep.subr.mxu0 %v1400_v16  ;;  %v1553_v13 = vld [vmem:[%s3655_s29 + $0x9f0] sm:$0xff]  ;;  %v1290_v14 = vld [vmem:[%s3655_s29 + $0x1b8] sm:$0xff] }
 0x1d5   : > { %2220 = vmatprep.subr.mxu1 %v1656_v17  ;;  %2150 = vmatpush2.msra.mxu0 %v1399_v18  ;;  %v1546_v15 = vld [vmem:[%s3655_s29 + $0x9b8] sm:$0xff]  ;;  %v1289_v16 = vld [vmem:[%s3655_s29 + $0x1b0] sm:$0xff] }
 0x1d6   : > { %2221 = vmatpush2.msra.mxu1 %v1655_v19  ;;  %2151 = vmatprep.subr.mxu0 %v1392_v20  ;;  %v1545_v17 = vld [vmem:[%s3655_s29 + $0x9b0] sm:$0xff]  ;;  %v1282_v18 = vld [vmem:[%s3655_s29 + $0x178] sm:$0xff] }
 0x1d7   : > { %2222 = vmatprep.subr.mxu1 %v1648_v21  ;;  %2152 = vmatpush2.msra.mxu0 %v1391_v22  ;;  %v1538_v19 = vld [vmem:[%s3655_s29 + $0x978] sm:$0xff]  ;;  %v1281_v20 = vld [vmem:[%s3655_s29 + $0x170] sm:$0xff] }
 0x1d8   : > { %2223 = vmatpush2.msra.mxu1 %v1647_v23  ;;  %2153 = vmatprep.subr.mxu0 %v1384_v24  ;;  %v1537_v21 = vld [vmem:[%s3655_s29 + $0x970] sm:$0xff]  ;;  %v1274_v22 = vld [vmem:[%s3655_s29 + $0x138] sm:$0xff] }
 0x1d9   : > { %2224 = vmatprep.subr.mxu1 %v1640_v25  ;;  %2154 = vmatpush2.msra.mxu0 %v1383_v26  ;;  %v1530_v23 = vld [vmem:[%s3655_s29 + $0x938] sm:$0xff]  ;;  %v1273_v24 = vld [vmem:[%s3655_s29 + $0x130] sm:$0xff] }
 0x1da   : > { %2225 = vmatpush2.msra.mxu1 %v1639_v27  ;;  %2155 = vmatprep.subr.mxu0 %v1376_v28  ;;  %v1529_v25 = vld [vmem:[%s3655_s29 + $0x930] sm:$0xff]  ;;  %v1266_v26 = vld [vmem:[%s3655_s29 + $0xf8] sm:$0xff] }
 0x1db   : > { %2226 = vmatprep.subr.mxu1 %v1632_v29  ;;  %2156 = vmatpush2.msra.mxu0 %v1375_v30  ;;  %v1522_v27 = vld [vmem:[%s3655_s29 + $0x8f8] sm:$0xff]  ;;  %v1265_v28 = vld [vmem:[%s3655_s29 + $0xf0] sm:$0xff] }
 0x1dc   : > { %2227 = vmatpush2.msra.mxu1 %v1631_v31  ;;  %2157 = vmatprep.subr.mxu0 %v1368_v32  ;;  %v1521_v29 = vld [vmem:[%s3655_s29 + $0x8f0] sm:$0xff]  ;;  %v1258_v30 = vld [vmem:[%s3655_s29 + $0xb8] sm:$0xff] }
 0x1dd   : > { %2228 = vmatprep.subr.mxu1 %v1624_v33  ;;  %2158 = vmatpush2.msra.mxu0 %v1367_v34  ;;  %v1514_v31 = vld [vmem:[%s3655_s29 + $0x8b8] sm:$0xff]  ;;  %v1257_v32 = vld [vmem:[%s3655_s29 + $0xb0] sm:$0xff] }
 0x1de   : > { %2159 = vmatprep.mubr.f32.mxu0 %v3799_v8  ;;  %2229 = vmatpush2.msra.mxu1 %v1623_v35  ;;  %v1513_v33 = vld [vmem:[%s3655_s29 + $0x8b0] sm:$0xff]  ;;  %v1250_v34 = vld [vmem:[%s3655_s29 + $0x78] sm:$0xff] }
 0x1df   : > { %2160 = vmatmul.mubr.f32.vlgmr.msra.gmra.mxu0 %v3784_v62  ;;  %2230 = vmatprep.mubr.f32.mxu1 %v3805_v11  ;;  %v1506_v35 = vld [vmem:[%s3655_s29 + $0x878] sm:$0xff] }
 0x1e0   : > { %2237 = vmatprep.subr.mxu0 %v1362_v36  ;;  %2308 = vmatprep.subr.mxu1 %v1618_v37  ;;  %v1249_v36 = vld [vmem:[%s3655_s29 + $0x70] sm:$0xff] }
 0x1e1   : > { %2231 = vmatmul.mubr.f32.vlgmr.msra.gmra.mxu1 %v3791_v3  ;;  %2238 = vmatpush1.msra.mxu0 %v1361_v38  ;;  %v1505_v37 = vld [vmem:[%s3655_s29 + $0x870] sm:$0xff]  ;;  %v1242_v38 = vld [vmem:[%s3655_s29 + $0x38] sm:$0xff] }
 0x1e2   : > { %2309 = vmatpush1.msra.mxu1 %v1617_v39  ;;  %2239 = vmatprep.subr.mxu0 %v1354_v40  ;;  %v1498_v39 = vld [vmem:[%s3655_s29 + $0x838] sm:$0xff]  ;;  %v1241_v40 = vld [vmem:[%s3655_s29 + $0x30] sm:$0xff] }
 0x1e3   : > { %2310 = vmatprep.subr.mxu1 %v1610_v42  ;;  %2240 = vmatpush1.msra.mxu0 %v1353_v43  ;;  %v1497_v42 = vld [vmem:[%s3655_s29 + $0x830] sm:$0xff]  ;;  %v1490_v43 = vld [vmem:[%s3655_s29 + $0x7f8] sm:$0xff] }
 0x1e4   : > { %2311 = vmatpush1.msra.mxu1 %v1609_v44  ;;  %2241 = vmatprep.subr.mxu0 %v1346_v45  ;;  %v1746_v44 = vld [vmem:[%s3655_s29 + $0xff8] sm:$0xff]  ;;  %v1489_v45 = vld [vmem:[%s3655_s29 + $0x7f0] sm:$0xff] }
 0x1e5   : > { %2312 = vmatprep.subr.mxu1 %v1602_v46  ;;  %2242 = vmatpush1.msra.mxu0 %v1345_v47  ;;  %v1745_v46 = vld [vmem:[%s3655_s29 + $0xff0] sm:$0xff]  ;;  %v1482_v47 = vld [vmem:[%s3655_s29 + $0x7b8] sm:$0xff] }
 0x1e6   : > { %2313 = vmatpush1.msra.mxu1 %v1601_v48  ;;  %2243 = vmatprep.subr.mxu0 %v1338_v49  ;;  %v1738_v48 = vld [vmem:[%s3655_s29 + $0xfb8] sm:$0xff]  ;;  %v1481_v49 = vld [vmem:[%s3655_s29 + $0x7b0] sm:$0xff] }
 0x1e7   : > { %2314 = vmatprep.subr.mxu1 %v1594_v50  ;;  %2244 = vmatpush1.msra.mxu0 %v1337_v51  ;;  %v1737_v50 = vld [vmem:[%s3655_s29 + $0xfb0] sm:$0xff]  ;;  %v1474_v51 = vld [vmem:[%s3655_s29 + $0x778] sm:$0xff] }
 0x1e8   : > { %2315 = vmatpush1.msra.mxu1 %v1593_v53  ;;  %2245 = vmatprep.subr.mxu0 %v1330_v54  ;;  %v1730_v53 = vld [vmem:[%s3655_s29 + $0xf78] sm:$0xff]  ;;  %v1473_v54 = vld [vmem:[%s3655_s29 + $0x770] sm:$0xff] }
 0x1e9   : > { %2316 = vmatprep.subr.mxu1 %v1586_v55  ;;  %2246 = vmatpush1.msra.mxu0 %v1329_v56  ;;  %v1729_v55 = vld [vmem:[%s3655_s29 + $0xf70] sm:$0xff]  ;;  %v1466_v56 = vld [vmem:[%s3655_s29 + $0x738] sm:$0xff] }
 0x1ea   : > { %2317 = vmatpush1.msra.mxu1 %v1585_v57  ;;  %2247 = vmatprep.subr.mxu0 %v1322_v58  ;;  %v1722_v57 = vld [vmem:[%s3655_s29 + $0xf38] sm:$0xff]  ;;  %v1465_v58 = vld [vmem:[%s3655_s29 + $0x730] sm:$0xff] }
 0x1eb   : > { %2318 = vmatprep.subr.mxu1 %v1578_v59  ;;  %2248 = vmatpush1.msra.mxu0 %v1321_v60  ;;  %v1721_v59 = vld [vmem:[%s3655_s29 + $0xf30] sm:$0xff]  ;;  %v1458_v60 = vld [vmem:[%s3655_s29 + $0x6f8] sm:$0xff] }
 0x1ec   : > { %2319 = vmatpush1.msra.mxu1 %v1577_v61  ;;  %2249 = vmatprep.subr.mxu0 %v1314_v63  ;;  %v1714_v61 = vld [vmem:[%s3655_s29 + $0xef8] sm:$0xff]  ;;  %v1457_v63 = vld [vmem:[%s3655_s29 + $0x6f0] sm:$0xff] }
 0x1ed   : > { %2320 = vmatprep.subr.mxu1 %v1570_v0  ;;  %2250 = vmatpush1.msra.mxu0 %v1313_v1  ;;  %v1713_v0 = vld [vmem:[%s3655_s29 + $0xef0] sm:$0xff]  ;;  %v1450_v1 = vld [vmem:[%s3655_s29 + $0x6b8] sm:$0xff] }
 0x1ee   : > { %2321 = vmatpush1.msra.mxu1 %v1569_v2  ;;  %2251 = vmatprep.subr.mxu0 %v1306_v4  ;;  %v1706_v2 = vld [vmem:[%s3655_s29 + $0xeb8] sm:$0xff]  ;;  %v1449_v4 = vld [vmem:[%s3655_s29 + $0x6b0] sm:$0xff] }
 0x1ef   : > { %2322 = vmatprep.subr.mxu1 %v1562_v5  ;;  %2252 = vmatpush1.msra.mxu0 %v1305_v6  ;;  %v1705_v5 = vld [vmem:[%s3655_s29 + $0xeb0] sm:$0xff]  ;;  %v1442_v6 = vld [vmem:[%s3655_s29 + $0x678] sm:$0xff] }
 0x1f0   : > { %2323 = vmatpush1.msra.mxu1 %v1561_v7  ;;  %2253 = vmatprep.subr.mxu0 %v1298_v9  ;;  %v1698_v7 = vld [vmem:[%s3655_s29 + $0xe78] sm:$0xff]  ;;  %v1441_v9 = vld [vmem:[%s3655_s29 + $0x670] sm:$0xff] }
 0x1f1   : > { %2324 = vmatprep.subr.mxu1 %v1554_v10  ;;  %2254 = vmatpush1.msra.mxu0 %v1297_v12  ;;  %v1697_v10 = vld [vmem:[%s3655_s29 + $0xe70] sm:$0xff]  ;;  %v1434_v12 = vld [vmem:[%s3655_s29 + $0x638] sm:$0xff] }
 0x1f2   : > { %2325 = vmatpush1.msra.mxu1 %v1553_v13  ;;  %2255 = vmatprep.subr.mxu0 %v1290_v14  ;;  %v1690_v13 = vld [vmem:[%s3655_s29 + $0xe38] sm:$0xff]  ;;  %v1433_v14 = vld [vmem:[%s3655_s29 + $0x630] sm:$0xff] }
 0x1f3   : > { %2326 = vmatprep.subr.mxu1 %v1546_v15  ;;  %2256 = vmatpush1.msra.mxu0 %v1289_v16  ;;  %v1689_v15 = vld [vmem:[%s3655_s29 + $0xe30] sm:$0xff]  ;;  %v1426_v16 = vld [vmem:[%s3655_s29 + $0x5f8] sm:$0xff] }
 0x1f4   : > { %2327 = vmatpush1.msra.mxu1 %v1545_v17  ;;  %2257 = vmatprep.subr.mxu0 %v1282_v18  ;;  %v1682_v17 = vld [vmem:[%s3655_s29 + $0xdf8] sm:$0xff]  ;;  %v1425_v18 = vld [vmem:[%s3655_s29 + $0x5f0] sm:$0xff] }
 0x1f5   : > { %2328 = vmatprep.subr.mxu1 %v1538_v19  ;;  %2258 = vmatpush1.msra.mxu0 %v1281_v20  ;;  %v1681_v19 = vld [vmem:[%s3655_s29 + $0xdf0] sm:$0xff]  ;;  %v1418_v20 = vld [vmem:[%s3655_s29 + $0x5b8] sm:$0xff] }
 0x1f6   : > { %2329 = vmatpush1.msra.mxu1 %v1537_v21  ;;  %2259 = vmatprep.subr.mxu0 %v1274_v22  ;;  %v1674_v21 = vld [vmem:[%s3655_s29 + $0xdb8] sm:$0xff]  ;;  %v1417_v22 = vld [vmem:[%s3655_s29 + $0x5b0] sm:$0xff] }
 0x1f7   : > { %2330 = vmatprep.subr.mxu1 %v1530_v23  ;;  %2260 = vmatpush1.msra.mxu0 %v1273_v24  ;;  %v1673_v23 = vld [vmem:[%s3655_s29 + $0xdb0] sm:$0xff]  ;;  %v1410_v24 = vld [vmem:[%s3655_s29 + $0x578] sm:$0xff] }
 0x1f8   : > { %2331 = vmatpush1.msra.mxu1 %v1529_v25  ;;  %2261 = vmatprep.subr.mxu0 %v1266_v26  ;;  %v1666_v25 = vld [vmem:[%s3655_s29 + $0xd78] sm:$0xff]  ;;  %v1409_v26 = vld [vmem:[%s3655_s29 + $0x570] sm:$0xff] }
 0x1f9   : > { %2332 = vmatprep.subr.mxu1 %v1522_v27  ;;  %2262 = vmatpush1.msra.mxu0 %v1265_v28  ;;  %v1665_v27 = vld [vmem:[%s3655_s29 + $0xd70] sm:$0xff]  ;;  %v1402_v28 = vld [vmem:[%s3655_s29 + $0x538] sm:$0xff] }
 0x1fa   : > { %2333 = vmatpush1.msra.mxu1 %v1521_v29  ;;  %2263 = vmatprep.subr.mxu0 %v1258_v30  ;;  %v1658_v29 = vld [vmem:[%s3655_s29 + $0xd38] sm:$0xff]  ;;  %v1401_v30 = vld [vmem:[%s3655_s29 + $0x530] sm:$0xff] }
 0x1fb   : > { %2334 = vmatprep.subr.mxu1 %v1514_v31  ;;  %2264 = vmatpush1.msra.mxu0 %v1257_v32  ;;  %v1657_v31 = vld [vmem:[%s3655_s29 + $0xd30] sm:$0xff]  ;;  %v1394_v32 = vld [vmem:[%s3655_s29 + $0x4f8] sm:$0xff] }
 0x1fc   : > { %2335 = vmatpush1.msra.mxu1 %v1513_v33  ;;  %2265 = vmatprep.subr.mxu0 %v1250_v34  ;;  %v1650_v33 = vld [vmem:[%s3655_s29 + $0xcf8] sm:$0xff]  ;;  %v1393_v34 = vld [vmem:[%s3655_s29 + $0x4f0] sm:$0xff] }
 0x1fd   : > { %2336 = vmatprep.subr.mxu1 %v1506_v35  ;;  %2266 = vmatpush1.msra.mxu0 %v1249_v36  ;;  %v1649_v35 = vld [vmem:[%s3655_s29 + $0xcf0] sm:$0xff]  ;;  %v1386_v36 = vld [vmem:[%s3655_s29 + $0x4b8] sm:$0xff] }
 0x1fe   : > { %2337 = vmatpush1.msra.mxu1 %v1505_v37  ;;  %2267 = vmatprep.subr.mxu0 %v1242_v38  ;;  %v1642_v37 = vld [vmem:[%s3655_s29 + $0xcb8] sm:$0xff]  ;;  %v1385_v38 = vld [vmem:[%s3655_s29 + $0x4b0] sm:$0xff] }
 0x1ff   : > { %2338 = vmatprep.subr.mxu1 %v1498_v39  ;;  %2268 = vmatpush1.msra.mxu0 %v1241_v40  ;;  %v1641_v39 = vld [vmem:[%s3655_s29 + $0xcb0] sm:$0xff]  ;;  %v1378_v40 = vld [vmem:[%s3655_s29 + $0x478] sm:$0xff] }
 0x200   : > { %2339 = vmatpush1.msra.mxu1 %v1497_v42  ;;  %2269 = vmatprep.subr.mxu0 %v1490_v43  ;;  %v1634_v42 = vld [vmem:[%s3655_s29 + $0xc78] sm:$0xff]  ;;  %v1377_v43 = vld [vmem:[%s3655_s29 + $0x470] sm:$0xff] }
 0x201   : > { %2340 = vmatprep.subr.mxu1 %v1746_v44  ;;  %2270 = vmatpush2.msra.mxu0 %v1489_v45  ;;  %v1633_v44 = vld [vmem:[%s3655_s29 + $0xc70] sm:$0xff]  ;;  %v1370_v45 = vld [vmem:[%s3655_s29 + $0x438] sm:$0xff] }
 0x202   : > { %2341 = vmatpush2.msra.mxu1 %v1745_v46  ;;  %2271 = vmatprep.subr.mxu0 %v1482_v47  ;;  %v1626_v46 = vld [vmem:[%s3655_s29 + $0xc38] sm:$0xff]  ;;  %v1369_v47 = vld [vmem:[%s3655_s29 + $0x430] sm:$0xff] }
 0x203   : > { %2342 = vmatprep.subr.mxu1 %v1738_v48  ;;  %2272 = vmatpush2.msra.mxu0 %v1481_v49  ;;  %v1625_v48 = vld [vmem:[%s3655_s29 + $0xc30] sm:$0xff]  ;;  %v1751_v49 = vsub.s32 0, %v3759_v41 }
 0x204   : > { %2343 = vmatpush2.msra.mxu1 %v1737_v50  ;;  %2273 = vmatprep.subr.mxu0 %v1474_v51  ;;  %v1747_v50 = vld [vmem:[%s1226_s8] sm:$0xff] }
 0x205   : > { %2344 = vmatprep.subr.mxu1 %v1730_v53  ;;  %2274 = vmatpush2.msra.mxu0 %v1473_v54  ;;  %v1752_v51 = vrot.slane %v1747_v50, %v1751_v49  ;;  %v1759_v54 = vsub.s32 2, %v3759_v41 }
 0x206   : > { %2345 = vmatpush2.msra.mxu1 %v1729_v55  ;;  %2275 = vmatprep.subr.mxu0 %v1466_v56 }
 0x207   : > { %2346 = vmatprep.subr.mxu1 %v1722_v57  ;;  %2276 = vmatpush2.msra.mxu0 %v1465_v58  ;;  %v1763_v57 = vsub.s32 3, %v3759_v41 }
 0x208   : > { %2347 = vmatpush2.msra.mxu1 %v1721_v59  ;;  %2277 = vmatprep.subr.mxu0 %v1458_v60  ;;  %v1760_v59 = vrot.slane %v1747_v50, %v1759_v54 }
 0x209   : > { %2348 = vmatprep.subr.mxu1 %v1714_v61  ;;  %2278 = vmatpush2.msra.mxu0 %v1457_v63  ;;  %v1764_v63 = vrot.slane %v1747_v50, %v1763_v57 }
 0x20a   : > { %2349 = vmatpush2.msra.mxu1 %v1713_v0  ;;  %2279 = vmatprep.subr.mxu0 %v1450_v1 }
 0x20b   : > { %2350 = vmatprep.subr.mxu1 %v1706_v2  ;;  %2280 = vmatpush2.msra.mxu0 %v1449_v4 }
 0x20c   : > { %2351 = vmatpush2.msra.mxu1 %v1705_v5  ;;  %2281 = vmatprep.subr.mxu0 %v1442_v6 }
 0x20d   : > { %2352 = vmatprep.subr.mxu1 %v1698_v7  ;;  %2282 = vmatpush2.msra.mxu0 %v1441_v9 }
 0x20e   : > { %2353 = vmatpush2.msra.mxu1 %v1697_v10  ;;  %2283 = vmatprep.subr.mxu0 %v1434_v12 }
 0x20f   : > { %2354 = vmatprep.subr.mxu1 %v1690_v13  ;;  %2284 = vmatpush2.msra.mxu0 %v1433_v14 }
 0x210   : > { %2355 = vmatpush2.msra.mxu1 %v1689_v15  ;;  %2285 = vmatprep.subr.mxu0 %v1426_v16 }
 0x211   : > { %2356 = vmatprep.subr.mxu1 %v1682_v17  ;;  %2286 = vmatpush2.msra.mxu0 %v1425_v18 }
 0x212   : > { %2357 = vmatpush2.msra.mxu1 %v1681_v19  ;;  %2287 = vmatprep.subr.mxu0 %v1418_v20  ;;  %v1767_v20 = vsub.s32 4, %v3759_v41 }
 0x213   : > { %2358 = vmatprep.subr.mxu1 %v1674_v21  ;;  %2288 = vmatpush2.msra.mxu0 %v1417_v22  ;;  %v1771_v21 = vsub.s32 5, %v3759_v41 }
 0x214   : > { %2359 = vmatpush2.msra.mxu1 %v1673_v23  ;;  %2289 = vmatprep.subr.mxu0 %v1410_v24  ;;  %v1768_v23 = vrot.slane %v1747_v50, %v1767_v20 }
 0x215   : > { %2360 = vmatprep.subr.mxu1 %v1666_v25  ;;  %2290 = vmatpush2.msra.mxu0 %v1409_v26  ;;  %v1772_v24 = vrot.slane %v1747_v50, %v1771_v21 }
 0x216   : > { %2361 = vmatpush2.msra.mxu1 %v1665_v27  ;;  %2291 = vmatprep.subr.mxu0 %v1402_v28  ;;  %v1775_v27 = vsub.s32 6, %v3759_v41 }
 0x217   : > { %2362 = vmatprep.subr.mxu1 %v1658_v29  ;;  %2292 = vmatpush2.msra.mxu0 %v1401_v30  ;;  %v1779_v30 = vsub.s32 7, %v3759_v41 }
 0x218   : > { %2363 = vmatpush2.msra.mxu1 %v1657_v31  ;;  %2293 = vmatprep.subr.mxu0 %v1394_v32  ;;  %v1776_v32 = vrot.slane %v1747_v50, %v1775_v27 }
 0x219   : > { %2364 = vmatprep.subr.mxu1 %v1650_v33  ;;  %2294 = vmatpush2.msra.mxu0 %v1393_v34 }
 0x21a   : > { %2365 = vmatpush2.msra.mxu1 %v1649_v35  ;;  %2295 = vmatprep.subr.mxu0 %v1386_v36  ;;  %v1780_v35 = vrot.slane %v1747_v50, %v1779_v30 }
 0x21b   : > { %2366 = vmatprep.subr.mxu1 %v1642_v37  ;;  %2296 = vmatpush2.msra.mxu0 %v1385_v38 }
 0x21c   : > { %2367 = vmatpush2.msra.mxu1 %v1641_v39  ;;  %2297 = vmatprep.subr.mxu0 %v1378_v40 }
 0x21d   : > { %2368 = vmatprep.subr.mxu1 %v1634_v42  ;;  %2298 = vmatpush2.msra.mxu0 %v1377_v43  ;;  %v1948_v53 = vpop.f32.mrf.mxu1 }
 0x21e   : > { %2369 = vmatpush2.msra.mxu1 %v1633_v44  ;;  %2299 = vmatprep.subr.mxu0 %v1370_v45 }
 0x21f   : > { %2370 = vmatprep.subr.mxu1 %v1626_v46  ;;  %2300 = vmatpush2.msra.mxu0 %v1369_v47  ;;  %v1950_v58 = vpop.f32.mrf.mxu1 }
 0x220   : > { %2301 = vmatprep.mubr.f32.mxu0 %v3799_v8  ;;  %2371 = vmatpush2.msra.mxu1 %v1625_v48  ;;  %v1755_v8 = vsub.s32 1, %v3759_v41 }
 0x221   : > { %2372 = vmatprep.mubr.f32.mxu1 %v3805_v11  ;;  %2302 = vmatmul.mubr.f32.vlgmr.msra.gmra.mxu0 %v3784_v62  ;;  %v1877_v11 = vpop.f32.mrf.mxu0 }
 0x222   : > { %2373 = vmatmul.mubr.f32.vlgmr.msra.gmra.mxu1 %v3791_v3  ;;  %v1756_v62 = vrot.slane %v1747_v50, %v1755_v8  ;;  %v1878_v55 = vadd.f32 %v1877_v11, %v1752_v51 }
 0x223   : > { %v1879_v3 = vpop.f32.mrf.mxu0 }
 0x224   : > { %v1880_v56 = vadd.f32 %v1879_v3, %v1756_v62  ;;  %v1949_v60 = vadd.f32 %v1948_v53, %v1878_v55 }
 0x226   : > { %v1951_v61 = vadd.f32 %v1950_v58, %v1880_v56  ;;  %v2379_v5 = vmax.f32 %v1949_v60, 0.0 }
 0x228   : > { %v2380_v6 = vmax.f32 %v1951_v61, 0.0 }
 0x22a   : > { %v2395_v14 = vcombine.low %v2379_v5, %v2380_v6 }
 0x22c   : > { %v2403_v17 = vrot.slane %v2395_v14, %v3773_v52 }
 0x25d   : > { %v2019_v0 = vpop.f32.mrf.mxu0 }
 0x25e   : > { %v2020_v1 = vadd.f32 %v2019_v0, %v1760_v59 }
 0x25f   : > { %v2090_v2 = vpop.f32.mrf.mxu1  ;;  %v2021_v4 = vpop.f32.mrf.mxu0 }
 0x260   : > { %v2091_v7 = vadd.f32 %v2090_v2, %v2020_v1  ;;  %v2022_v9 = vadd.f32 %v2021_v4, %v1764_v63 }
 0x261   : > { %v2092_v10 = vpop.f32.mrf.mxu1 }
 0x262   : > { %v2381_v12 = vmax.f32 %v2091_v7, 0.0  ;;  %v2093_v13 = vadd.f32 %v2092_v10, %v2022_v9 }
 0x264   : > { %v2382_v15 = vmax.f32 %v2093_v13, 0.0 }
 0x266   : > { %v2396_v16 = vcombine.low %v2381_v12, %v2382_v15 }
 0x268   : > { %v2410_v18 = vrot.slane %v2396_v16, %v3773_v52 }
 0x26a   : > { %v2411_v19 = vcombine.low %v2403_v17, %v2410_v18 }
 0x26c   : > { %2431 = vst [vmem:[%s4225_s12] sm:$0xff] %v2411_v19 }
 0x29f   : > { %v2161_v22 = vpop.f32.mrf.mxu0 }
 0x2a0   : > { %v2162_v28 = vadd.f32 %v2161_v22, %v1768_v23 }
 0x2a1   : > { %v2232_v25 = vpop.f32.mrf.mxu1  ;;  %v2163_v26 = vpop.f32.mrf.mxu0 }
 0x2a2   : > { %v2164_v29 = vadd.f32 %v2163_v26, %v1772_v24  ;;  %v2233_v33 = vadd.f32 %v2232_v25, %v2162_v28 }
 0x2a3   : > { %v2234_v31 = vpop.f32.mrf.mxu1 }
 0x2a4   : > { %v2235_v34 = vadd.f32 %v2234_v31, %v2164_v29  ;;  %v2383_v40 = vmax.f32 %v2233_v33, 0.0 }
 0x2a6   : > { %v2384_v42 = vmax.f32 %v2235_v34, 0.0 }
 0x2a8   : > { %v2412_v47 = vcombine.low %v2383_v40, %v2384_v42 }
 0x2aa   : > { %v2420_v8 = vrot.slane %v2412_v47, %v3773_v52 }
 0x2e1   : > { %v2303_v36 = vpop.f32.mrf.mxu0 }
 0x2e2   : > { %v2374_v37 = vpop.f32.mrf.mxu1  ;;  %v2304_v38 = vadd.f32 %v2303_v36, %v1776_v32 }
 0x2e3   : > { %v2305_v39 = vpop.f32.mrf.mxu0 }
 0x2e4   : > { %v2375_v43 = vadd.f32 %v2374_v37, %v2304_v38  ;;  %v2306_v44 = vadd.f32 %v2305_v39, %v1780_v35  ;;  %v2376_v45 = vpop.f32.mrf.mxu1 }
 0x2e6   : > { %v2377_v46 = vadd.f32 %v2376_v45, %v2306_v44  ;;  %v2385_v48 = vmax.f32 %v2375_v43, 0.0 }
 0x2e8   : > { %v2386_v49 = vmax.f32 %v2377_v46, 0.0 }
 0x2ea   : > { %v2413_v41 = vcombine.low %v2385_v48, %v2386_v49 }
 0x2ec   : > { %v2427_v11 = vrot.slane %v2413_v41, %v3773_v52 }
 0x2ee   : > { %v2428_v50 = vcombine.low %v2420_v8, %v2427_v11 }
 0x2f0   : > { %2432 = vst [vmem:[%s4225_s12 + $0x8] sm:$0xff] %v2428_v50 }
 0x2f1 PF: > { %p10_p9 = scmp.ge.s32.totalorder %s2607_s16, 4   ;;  %s4249_s12 = smov %s2563_s13 }
 0x2f2   : > { %s4250_s13 = smov %s2616_s19  ;;  %s4251_s14 = smov %s2607_s16 }
 0x2f3   :  { %12 = sbr.rel (!%p10_p9) target bundleno = 2 (0x2), region = 93 }

</bundles_post_ra>
